<compile_context>
chip_gen: v7x
topology: tpu7x:2x2x1
jax: 0.10.0
libtpu: 0.0.40
codegen_flags: <defaults>
</compile_context>

<pallas_src>
import jax
import jax.numpy as jnp
from jax.experimental import pallas as pl
from jax.experimental.pallas import tpu as pltpu


# ----------------------------------------------------------------------------
# Pallas kernel: whole forward pass for one batch tile, entirely in VMEM.
# ----------------------------------------------------------------------------
def _saae_kernel(
        # inputs
        x_ref, xn_ref,
        qw1, qb1, qw2, qb2, qw3, qb3,
        pw1, pb1, pw2, pb2,
        ow, ob,
        mw, mb, dw, db, piw, pib,
        yw, yb,
        # outputs
        mean_ref, disp_ref, pi_ref, slab_ref):
    f32 = jnp.float32
    bf16 = jnp.bfloat16

    tb = x_ref.shape[0]            # batch-tile rows (static)
    z_dim = qw3.shape[1]
    n_clusters = yw.shape[1]

    def linear(inp, w_ref, b_ref):
        # bf16 MXU operands, f32 accumulation, f32 bias add.
        return jnp.dot(inp.astype(bf16), w_ref[...],
                       preferred_element_type=f32) + b_ref[...]

    def q_net(inp):
        h1 = jnp.maximum(linear(inp, qw1, qb1), 0.0)   # Linear + (Dropout) + ReLU
        h2 = jnp.maximum(linear(h1, qw2, qb2), 0.0)    # Linear + (Dropout) + ReLU
        return linear(h2, qw3, qb3)                    # Linear -> z_dim

    # One stacked Q_net pass over [x ; x_noisy]  ->  (2*tb, z_dim)
    x_cat = jnp.concatenate([x_ref[...], xn_ref[...]], axis=0)
    z_all = q_net(x_cat)
    z = z_all[:tb]          # clean encoding
    z_noise = z_all[tb:]    # noisy encoding

    # P_net: z_dim -> M -> N
    p1 = jnp.maximum(linear(z_noise, pw1, pb1), 0.0)
    z_noise_2 = linear(p1, pw2, pb2)

    # out_net: (Dropout) + Linear(N,N) + Sigmoid
    h = jax.nn.sigmoid(linear(z_noise_2, ow, ob))

    # ZINB heads (lane-dense X_dim-wide outputs)
    mean_ref[...] = jnp.clip(jnp.exp(linear(h, mw, mb)), 1e-5, 1e6)          # MeanAct
    disp_ref[...] = jnp.clip(jax.nn.softplus(linear(h, dw, db)), 1e-4, 1e4)  # DispAct
    pi_ref[...] = jax.nn.sigmoid(linear(h, piw, pib))

    # cluster head: softmax over clusters (dim=1)
    logits = linear(z_noise, yw, yb)
    logits = logits - jnp.max(logits, axis=1, keepdims=True)
    e = jnp.exp(logits)
    y_hat = e * pl.reciprocal(jnp.sum(e, axis=1, keepdims=True), approx=True)

    # Pack the three small heads into one lane-dense slab:
    #   [ z | z_noise | y_hat | zero pad ]   (slab width is a multiple of 128)
    slab_ref[...] = jnp.zeros_like(slab_ref)
    slab_ref[:, 0:z_dim] = z
    slab_ref[:, z_dim:2 * z_dim] = z_noise
    slab_ref[:, 2 * z_dim:2 * z_dim + n_clusters] = y_hat


# ----------------------------------------------------------------------------
# Wrapper
# ----------------------------------------------------------------------------
def _pick_batch_tile(B):
    for tb in (128, 64, 32, 16, 8):
        if B % tb == 0:
            return tb
    return B  # block == full batch dim (allowed by the (8,128) rule)


def saae_forward(x, x_noisy, params):
    """Run the SAAE_net forward pass via the Pallas kernel.

    Returns (z, mean, disp, pi, z_noise, y_hat, latent), like SAAE_net.forward.
    """
    f32 = jnp.float32
    bf16 = jnp.bfloat16

    x = x.astype(f32)
    x_noisy = x_noisy.astype(f32)
    B, X_dim = x.shape
    z_dim = params["qw3"].shape[1]
    n_clusters = params["yw"].shape[1]

    tb = _pick_batch_tile(B)
    grid = (B // tb,)

    used = 2 * z_dim + n_clusters
    slab_w = max(128, ((used + 127) // 128) * 128)   # lane-dense slab width

    param_order = ["qw1", "qb1", "qw2", "qb2", "qw3", "qb3",
                   "pw1", "pb1", "pw2", "pb2",
                   "ow", "ob",
                   "mw", "mb", "dw", "db", "piw", "pib",
                   "yw", "yb"]
    # Weight matrices -> bf16 MXU operands (halves HBM/VMEM traffic); biases f32.
    param_list = [params[k].astype(bf16) if "w" in k else params[k].astype(f32)
                  for k in param_order]

    def resident(shape):
        # Full-array block + constant index_map: stays VMEM-resident across
        # the batch grid (no per-tile re-DMA of weights/biases).
        nd = len(shape)
        return pl.BlockSpec(shape, lambda i, _nd=nd: (0,) * _nd)

    in_specs = ([pl.BlockSpec((tb, X_dim), lambda i: (i, 0)),
                 pl.BlockSpec((tb, X_dim), lambda i: (i, 0))]
                + [resident(p.shape) for p in param_list])

    out_shapes = (
        jax.ShapeDtypeStruct((B, X_dim), f32),    # mean
        jax.ShapeDtypeStruct((B, X_dim), f32),    # disp
        jax.ShapeDtypeStruct((B, X_dim), f32),    # pi
        jax.ShapeDtypeStruct((B, slab_w), f32),   # [z | z_noise | y_hat | pad]
    )
    out_specs = (
        pl.BlockSpec((tb, X_dim), lambda i: (i, 0)),
        pl.BlockSpec((tb, X_dim), lambda i: (i, 0)),
        pl.BlockSpec((tb, X_dim), lambda i: (i, 0)),
        pl.BlockSpec((tb, slab_w), lambda i: (i, 0)),
    )

    fn = pl.pallas_call(
        _saae_kernel,
        out_shape=out_shapes,
        grid=grid,
        in_specs=in_specs,
        out_specs=out_specs,
        compiler_params=pltpu.CompilerParams(
            dimension_semantics=("parallel",),
            vmem_limit_bytes=32 * 1024 * 1024,
        ),
    )
    mean, disp, pi, slab = fn(x, x_noisy, *param_list)

    z = slab[:, :z_dim]
    z_noise = slab[:, z_dim:2 * z_dim]
    y_hat = slab[:, 2 * z_dim:2 * z_dim + n_clusters]
    latent = jnp.concatenate([z_noise, y_hat], axis=1)
    return z, mean, disp, pi, z_noise, y_hat, latent


# ----------------------------------------------------------------------------
# Pure-JAX reference (mirrors the kernel's bf16-operand / f32-accumulate math)
# ----------------------------------------------------------------------------
def saae_reference(x, x_noisy, params):
    f32, bf16 = jnp.float32, jnp.bfloat16

    def linear(inp, w, b):
        return jnp.dot(inp.astype(bf16), w.astype(bf16),
                       preferred_element_type=f32) + b.astype(f32)

    def q_net(inp):
        h1 = jnp.maximum(linear(inp, params["qw1"], params["qb1"]), 0.0)
        h2 = jnp.maximum(linear(h1, params["qw2"], params["qb2"]), 0.0)
        return linear(h2, params["qw3"], params["qb3"])

    x = x.astype(f32)
    x_noisy = x_noisy.astype(f32)
    z_noise = q_net(x_noisy)
    p1 = jnp.maximum(linear(z_noise, params["pw1"], params["pb1"]), 0.0)
    z_noise_2 = linear(p1, params["pw2"], params["pb2"])
    h = jax.nn.sigmoid(linear(z_noise_2, params["ow"], params["ob"]))
    mean = jnp.clip(jnp.exp(linear(h, params["mw"], params["mb"])), 1e-5, 1e6)
    disp = jnp.clip(jax.nn.softplus(linear(h, params["dw"], params["db"])), 1e-4, 1e4)
    pi = jax.nn.sigmoid(linear(h, params["piw"], params["pib"]))
    y_hat = jax.nn.softmax(linear(z_noise, params["yw"], params["yb"]), axis=1)
    latent = jnp.concatenate([z_noise, y_hat], axis=1)
    z = q_net(x)
    return z, mean, disp, pi, z_noise, y_hat, latent


# ----------------------------------------------------------------------------
# Deterministic parameter initialization (synthetic weights, no checkpoint)
# ----------------------------------------------------------------------------
def _xavier(key, fan_in, fan_out):
    std = jnp.sqrt(2.0 / (fan_in + fan_out)).astype(jnp.float32)
    return jax.random.normal(key, (fan_in, fan_out), dtype=jnp.float32) * std


def init_params(key, X_dim, N, M, z_dim, n_clusters):
    shapes = {
        "qw1": (X_dim, N), "qw2": (N, M), "qw3": (M, z_dim),
        "pw1": (z_dim, M), "pw2": (M, N),
        "ow": (N, N),
        "mw": (N, X_dim), "dw": (N, X_dim), "piw": (N, X_dim),
        "yw": (z_dim, n_clusters),
    }
    bias_name = {"qw1": "qb1", "qw2": "qb2", "qw3": "qb3",
                 "pw1": "pb1", "pw2": "pb2",
                 "ow": "ob", "mw": "mb", "dw": "db", "piw": "pib",
                 "yw": "yb"}
    keys = jax.random.split(key, len(shapes))
    params = {}
    for (name, (fi, fo)), k in zip(shapes.items(), keys):
        params[name] = _xavier(k, fi, fo)
        params[bias_name[name]] = jnp.full((1, fo), 0.01, dtype=jnp.float32)
    return params


# ----------------------------------------------------------------------------
if __name__ == "__main__":
    # Modest shapes consistent with the module's forward; batch sized so the
    # per-tile matmul M-dim is MXU-friendly and the grid has >1 parallel tile.
    B, X_dim, N, M, z_dim, n_clusters = 256, 256, 128, 64, 16, 8
    sigma = 1.0

    key = jax.random.PRNGKey(0)
    kx, knoise, kparams = jax.random.split(key, 3)

    x = jax.random.normal(kx, (B, X_dim), dtype=jnp.float32)
    params = init_params(kparams, X_dim, N, M, z_dim, n_clusters)

    # x + randn_like(x) * sigma  (glue: the torch.randn_like noise is drawn
    # deterministically here in the wrapper, outside the kernel)
    noise = jax.random.normal(knoise, x.shape, dtype=jnp.float32)
    x_noisy = x + noise * sigma

    outs = saae_forward(x, x_noisy, params)
    outs = jax.block_until_ready(outs)
    z, mean, disp, pi, z_noise, y_hat, latent = outs

    # Shape checks
    assert z.shape == (B, z_dim) and z_noise.shape == (B, z_dim)
    assert mean.shape == (B, X_dim) and disp.shape == (B, X_dim) and pi.shape == (B, X_dim)
    assert y_hat.shape == (B, n_clusters)
    assert latent.shape == (B, z_dim + n_clusters)

    # softmax rows sum to 1 (loose tolerance: approx reciprocal on the EUP)
    assert bool(jnp.allclose(jnp.sum(y_hat, axis=1), 1.0, atol=5e-3))
    # latent is concat of z_noise and y_hat
    assert bool(jnp.allclose(latent[:, :z_dim], z_noise))
    assert bool(jnp.allclose(latent[:, z_dim:], y_hat))

    # Pure-JAX reference comparison (same bf16 operand rounding as the kernel;
    # loose tolerances cover accumulation order + approx reciprocal).
    refs = saae_reference(x, x_noisy, params)
    names = ("z", "mean", "disp", "pi", "z_noise", "y_hat", "latent")
    for name, got, want in zip(names, outs, refs):
        assert bool(jnp.allclose(got, want, rtol=5e-2, atol=5e-3)), name

    print("KERNEL_OK")
</pallas_src>

<mosaic_0001>
module attributes {stable_mosaic.version = 11 : i64} {
  func.func @_saae_kernel(%arg0: i32, %arg1: memref<128x256xf32, #tpu.memory_space<vmem>>, %arg2: memref<128x256xf32, #tpu.memory_space<vmem>>, %arg3: memref<256x128xbf16, #tpu.memory_space<vmem>>, %arg4: memref<1x128xf32, #tpu.memory_space<vmem>>, %arg5: memref<128x64xbf16, #tpu.memory_space<vmem>>, %arg6: memref<1x64xf32, #tpu.memory_space<vmem>>, %arg7: memref<64x16xbf16, #tpu.memory_space<vmem>>, %arg8: memref<1x16xf32, #tpu.memory_space<vmem>>, %arg9: memref<16x64xbf16, #tpu.memory_space<vmem>>, %arg10: memref<1x64xf32, #tpu.memory_space<vmem>>, %arg11: memref<64x128xbf16, #tpu.memory_space<vmem>>, %arg12: memref<1x128xf32, #tpu.memory_space<vmem>>, %arg13: memref<128x128xbf16, #tpu.memory_space<vmem>>, %arg14: memref<1x128xf32, #tpu.memory_space<vmem>>, %arg15: memref<128x256xbf16, #tpu.memory_space<vmem>>, %arg16: memref<1x256xf32, #tpu.memory_space<vmem>>, %arg17: memref<128x256xbf16, #tpu.memory_space<vmem>>, %arg18: memref<1x256xf32, #tpu.memory_space<vmem>>, %arg19: memref<128x256xbf16, #tpu.memory_space<vmem>>, %arg20: memref<1x256xf32, #tpu.memory_space<vmem>>, %arg21: memref<16x8xbf16, #tpu.memory_space<vmem>>, %arg22: memref<1x8xf32, #tpu.memory_space<vmem>>, %arg23: memref<128x256xf32, #tpu.memory_space<vmem>>, %arg24: memref<128x256xf32, #tpu.memory_space<vmem>>, %arg25: memref<128x256xf32, #tpu.memory_space<vmem>>, %arg26: memref<128x128xf32, #tpu.memory_space<vmem>>) attributes {dimension_semantics = [#tpu.dimension_semantics<parallel>], iteration_bounds = array<i64: 2>, scalar_prefetch = 0 : i64, scratch_operands = 0 : i64, tpu.core_type = #tpu.core_type<tc>, window_params = [{transform_indices = @transform_0, window_bounds = array<i64: 128, 256>}, {transform_indices = @transform_1, window_bounds = array<i64: 128, 256>}, {pipeline_mode = #tpu.pipeline_mode<synchronous>, transform_indices = @transform_2, window_bounds = array<i64: 256, 128>}, {pipeline_mode = #tpu.pipeline_mode<synchronous>, transform_indices = @transform_3, window_bounds = array<i64: 1, 128>}, {pipeline_mode = #tpu.pipeline_mode<synchronous>, transform_indices = @transform_4, window_bounds = array<i64: 128, 64>}, {pipeline_mode = #tpu.pipeline_mode<synchronous>, transform_indices = @transform_5, window_bounds = array<i64: 1, 64>}, {pipeline_mode = #tpu.pipeline_mode<synchronous>, transform_indices = @transform_6, window_bounds = array<i64: 64, 16>}, {pipeline_mode = #tpu.pipeline_mode<synchronous>, transform_indices = @transform_7, window_bounds = array<i64: 1, 16>}, {pipeline_mode = #tpu.pipeline_mode<synchronous>, transform_indices = @transform_8, window_bounds = array<i64: 16, 64>}, {pipeline_mode = #tpu.pipeline_mode<synchronous>, transform_indices = @transform_9, window_bounds = array<i64: 1, 64>}, {pipeline_mode = #tpu.pipeline_mode<synchronous>, transform_indices = @transform_10, window_bounds = array<i64: 64, 128>}, {pipeline_mode = #tpu.pipeline_mode<synchronous>, transform_indices = @transform_11, window_bounds = array<i64: 1, 128>}, {pipeline_mode = #tpu.pipeline_mode<synchronous>, transform_indices = @transform_12, window_bounds = array<i64: 128, 128>}, {pipeline_mode = #tpu.pipeline_mode<synchronous>, transform_indices = @transform_13, window_bounds = array<i64: 1, 128>}, {pipeline_mode = #tpu.pipeline_mode<synchronous>, transform_indices = @transform_14, window_bounds = array<i64: 128, 256>}, {pipeline_mode = #tpu.pipeline_mode<synchronous>, transform_indices = @transform_15, window_bounds = array<i64: 1, 256>}, {pipeline_mode = #tpu.pipeline_mode<synchronous>, transform_indices = @transform_16, window_bounds = array<i64: 128, 256>}, {pipeline_mode = #tpu.pipeline_mode<synchronous>, transform_indices = @transform_17, window_bounds = array<i64: 1, 256>}, {pipeline_mode = #tpu.pipeline_mode<synchronous>, transform_indices = @transform_18, window_bounds = array<i64: 128, 256>}, {pipeline_mode = #tpu.pipeline_mode<synchronous>, transform_indices = @transform_19, window_bounds = array<i64: 1, 256>}, {pipeline_mode = #tpu.pipeline_mode<synchronous>, transform_indices = @transform_20, window_bounds = array<i64: 16, 8>}, {pipeline_mode = #tpu.pipeline_mode<synchronous>, transform_indices = @transform_21, window_bounds = array<i64: 1, 8>}, {transform_indices = @transform_22, window_bounds = array<i64: 128, 256>}, {transform_indices = @transform_23, window_bounds = array<i64: 128, 256>}, {transform_indices = @transform_24, window_bounds = array<i64: 128, 256>}, {transform_indices = @transform_25, window_bounds = array<i64: 128, 128>}]} {
    %c0 = arith.constant 0 : index
    %c0_0 = arith.constant 0 : index
    %0 = vector.load %arg1[%c0, %c0_0] : memref<128x256xf32, #tpu.memory_space<vmem>>, vector<128x256xf32>
    %c0_1 = arith.constant 0 : index
    %c0_2 = arith.constant 0 : index
    %1 = vector.load %arg2[%c0_1, %c0_2] : memref<128x256xf32, #tpu.memory_space<vmem>>, vector<128x256xf32>
    %2 = tpu.concatenate %0, %1 in 0 : vector<128x256xf32>, vector<128x256xf32> -> vector<256x256xf32>
    %3 = arith.truncf %2 : vector<256x256xf32> to vector<256x256xbf16>
    %c0_3 = arith.constant 0 : index
    %c0_4 = arith.constant 0 : index
    %4 = vector.load %arg3[%c0_3, %c0_4] : memref<256x128xbf16, #tpu.memory_space<vmem>>, vector<256x128xbf16>
    %cst = arith.constant dense<0.000000e+00> : vector<256x128xf32>
    %5 = tpu.matmul %3, %4, %cst {dimension_numbers = #tpu.dot_dimension_numbers<[1], [0], [0], [1], [0, 0, 1, 1], [], []>} : vector<256x256xbf16>, vector<256x128xbf16>, vector<256x128xf32> -> vector<256x128xf32>
    %c0_5 = arith.constant 0 : index
    %c0_6 = arith.constant 0 : index
    %6 = vector.load %arg4[%c0_5, %c0_6] : memref<1x128xf32, #tpu.memory_space<vmem>>, vector<1x128xf32>
    %7 = vector.broadcast %6 : vector<1x128xf32> to vector<256x128xf32>
    %8 = arith.addf %5, %7 : vector<256x128xf32>
    %cst_7 = arith.constant 0.000000e+00 : f32
    %9 = vector.broadcast %cst_7 : f32 to vector<256x128xf32>
    %10 = arith.maximumf %8, %9 : vector<256x128xf32>
    %11 = arith.truncf %10 : vector<256x128xf32> to vector<256x128xbf16>
    %c0_8 = arith.constant 0 : index
    %c0_9 = arith.constant 0 : index
    %12 = vector.load %arg5[%c0_8, %c0_9] : memref<128x64xbf16, #tpu.memory_space<vmem>>, vector<128x64xbf16>
    %cst_10 = arith.constant dense<0.000000e+00> : vector<256x64xf32>
    %13 = tpu.matmul %11, %12, %cst_10 {dimension_numbers = #tpu.dot_dimension_numbers<[1], [0], [0], [1], [0, 0, 1, 1], [], []>} : vector<256x128xbf16>, vector<128x64xbf16>, vector<256x64xf32> -> vector<256x64xf32>
    %c0_11 = arith.constant 0 : index
    %c0_12 = arith.constant 0 : index
    %14 = vector.load %arg6[%c0_11, %c0_12] : memref<1x64xf32, #tpu.memory_space<vmem>>, vector<1x64xf32>
    %15 = vector.broadcast %14 : vector<1x64xf32> to vector<256x64xf32>
    %16 = arith.addf %13, %15 : vector<256x64xf32>
    %cst_13 = arith.constant 0.000000e+00 : f32
    %17 = vector.broadcast %cst_13 : f32 to vector<256x64xf32>
    %18 = arith.maximumf %16, %17 : vector<256x64xf32>
    %19 = arith.truncf %18 : vector<256x64xf32> to vector<256x64xbf16>
    %c0_14 = arith.constant 0 : index
    %c0_15 = arith.constant 0 : index
    %20 = vector.load %arg7[%c0_14, %c0_15] : memref<64x16xbf16, #tpu.memory_space<vmem>>, vector<64x16xbf16>
    %cst_16 = arith.constant dense<0.000000e+00> : vector<256x16xf32>
    %21 = tpu.matmul %19, %20, %cst_16 {dimension_numbers = #tpu.dot_dimension_numbers<[1], [0], [0], [1], [0, 0, 1, 1], [], []>} : vector<256x64xbf16>, vector<64x16xbf16>, vector<256x16xf32> -> vector<256x16xf32>
    %c0_17 = arith.constant 0 : index
    %c0_18 = arith.constant 0 : index
    %22 = vector.load %arg8[%c0_17, %c0_18] : memref<1x16xf32, #tpu.memory_space<vmem>>, vector<1x16xf32>
    %23 = vector.broadcast %22 : vector<1x16xf32> to vector<256x16xf32>
    %24 = arith.addf %21, %23 : vector<256x16xf32>
    %25 = vector.extract_strided_slice %24 {offsets = [0, 0], sizes = [128, 16], strides = [1, 1]} : vector<256x16xf32> to vector<128x16xf32>
    %26 = vector.extract_strided_slice %24 {offsets = [128, 0], sizes = [128, 16], strides = [1, 1]} : vector<256x16xf32> to vector<128x16xf32>
    %27 = arith.truncf %26 : vector<128x16xf32> to vector<128x16xbf16>
    %c0_19 = arith.constant 0 : index
    %c0_20 = arith.constant 0 : index
    %28 = vector.load %arg9[%c0_19, %c0_20] : memref<16x64xbf16, #tpu.memory_space<vmem>>, vector<16x64xbf16>
    %cst_21 = arith.constant dense<0.000000e+00> : vector<128x64xf32>
    %29 = tpu.matmul %27, %28, %cst_21 {dimension_numbers = #tpu.dot_dimension_numbers<[1], [0], [0], [1], [0, 0, 1, 1], [], []>} : vector<128x16xbf16>, vector<16x64xbf16>, vector<128x64xf32> -> vector<128x64xf32>
    %c0_22 = arith.constant 0 : index
    %c0_23 = arith.constant 0 : index
    %30 = vector.load %arg10[%c0_22, %c0_23] : memref<1x64xf32, #tpu.memory_space<vmem>>, vector<1x64xf32>
    %31 = vector.broadcast %30 : vector<1x64xf32> to vector<128x64xf32>
    %32 = arith.addf %29, %31 : vector<128x64xf32>
    %cst_24 = arith.constant 0.000000e+00 : f32
    %33 = vector.broadcast %cst_24 : f32 to vector<128x64xf32>
    %34 = arith.maximumf %32, %33 : vector<128x64xf32>
    %35 = arith.truncf %34 : vector<128x64xf32> to vector<128x64xbf16>
    %c0_25 = arith.constant 0 : index
    %c0_26 = arith.constant 0 : index
    %36 = vector.load %arg11[%c0_25, %c0_26] : memref<64x128xbf16, #tpu.memory_space<vmem>>, vector<64x128xbf16>
    %cst_27 = arith.constant dense<0.000000e+00> : vector<128x128xf32>
    %37 = tpu.matmul %35, %36, %cst_27 {dimension_numbers = #tpu.dot_dimension_numbers<[1], [0], [0], [1], [0, 0, 1, 1], [], []>} : vector<128x64xbf16>, vector<64x128xbf16>, vector<128x128xf32> -> vector<128x128xf32>
    %c0_28 = arith.constant 0 : index
    %c0_29 = arith.constant 0 : index
    %38 = vector.load %arg12[%c0_28, %c0_29] : memref<1x128xf32, #tpu.memory_space<vmem>>, vector<1x128xf32>
    %39 = vector.broadcast %38 : vector<1x128xf32> to vector<128x128xf32>
    %40 = arith.addf %37, %39 : vector<128x128xf32>
    %41 = arith.truncf %40 : vector<128x128xf32> to vector<128x128xbf16>
    %c0_30 = arith.constant 0 : index
    %c0_31 = arith.constant 0 : index
    %42 = vector.load %arg13[%c0_30, %c0_31] : memref<128x128xbf16, #tpu.memory_space<vmem>>, vector<128x128xbf16>
    %cst_32 = arith.constant dense<0.000000e+00> : vector<128x128xf32>
    %43 = tpu.matmul %41, %42, %cst_32 {dimension_numbers = #tpu.dot_dimension_numbers<[1], [0], [0], [1], [0, 0, 1, 1], [], []>} : vector<128x128xbf16>, vector<128x128xbf16>, vector<128x128xf32> -> vector<128x128xf32>
    %c0_33 = arith.constant 0 : index
    %c0_34 = arith.constant 0 : index
    %44 = vector.load %arg14[%c0_33, %c0_34] : memref<1x128xf32, #tpu.memory_space<vmem>>, vector<1x128xf32>
    %45 = vector.broadcast %44 : vector<1x128xf32> to vector<128x128xf32>
    %46 = arith.addf %43, %45 : vector<128x128xf32>
    %47 = arith.negf %46 : vector<128x128xf32>
    %48 = math.exp %47 : vector<128x128xf32>
    %cst_35 = arith.constant 1.000000e+00 : f32
    %49 = vector.broadcast %cst_35 : f32 to vector<128x128xf32>
    %50 = arith.addf %49, %48 : vector<128x128xf32>
    %51 = arith.divf %49, %50 : vector<128x128xf32>
    %52 = arith.truncf %51 : vector<128x128xf32> to vector<128x128xbf16>
    %c0_36 = arith.constant 0 : index
    %c0_37 = arith.constant 0 : index
    %53 = vector.load %arg15[%c0_36, %c0_37] : memref<128x256xbf16, #tpu.memory_space<vmem>>, vector<128x256xbf16>
    %cst_38 = arith.constant dense<0.000000e+00> : vector<128x256xf32>
    %54 = tpu.matmul %52, %53, %cst_38 {dimension_numbers = #tpu.dot_dimension_numbers<[1], [0], [0], [1], [0, 0, 1, 1], [], []>} : vector<128x128xbf16>, vector<128x256xbf16>, vector<128x256xf32> -> vector<128x256xf32>
    %c0_39 = arith.constant 0 : index
    %c0_40 = arith.constant 0 : index
    %55 = vector.load %arg16[%c0_39, %c0_40] : memref<1x256xf32, #tpu.memory_space<vmem>>, vector<1x256xf32>
    %56 = vector.broadcast %55 : vector<1x256xf32> to vector<128x256xf32>
    %57 = arith.addf %54, %56 : vector<128x256xf32>
    %58 = math.exp %57 : vector<128x256xf32>
    %cst_41 = arith.constant 9.99999974E-6 : f32
    %cst_42 = arith.constant 1.000000e+06 : f32
    %59 = vector.broadcast %cst_41 : f32 to vector<128x256xf32>
    %60 = arith.maximumf %59, %58 : vector<128x256xf32>
    %61 = vector.broadcast %cst_42 : f32 to vector<128x256xf32>
    %62 = arith.minimumf %61, %60 : vector<128x256xf32>
    %c0_43 = arith.constant 0 : index
    %c0_44 = arith.constant 0 : index
    %63 = vector.load %arg23[%c0_43, %c0_44] : memref<128x256xf32, #tpu.memory_space<vmem>>, vector<128x256xf32>
    tpu.vector_store %arg23[%c0_43, %c0_44], %62 {strides = array<i32>} : memref<128x256xf32, #tpu.memory_space<vmem>>, vector<128x256xf32>,
    %64 = arith.truncf %51 : vector<128x128xf32> to vector<128x128xbf16>
    %c0_45 = arith.constant 0 : index
    %c0_46 = arith.constant 0 : index
    %65 = vector.load %arg17[%c0_45, %c0_46] : memref<128x256xbf16, #tpu.memory_space<vmem>>, vector<128x256xbf16>
    %cst_47 = arith.constant dense<0.000000e+00> : vector<128x256xf32>
    %66 = tpu.matmul %64, %65, %cst_47 {dimension_numbers = #tpu.dot_dimension_numbers<[1], [0], [0], [1], [0, 0, 1, 1], [], []>} : vector<128x128xbf16>, vector<128x256xbf16>, vector<128x256xf32> -> vector<128x256xf32>
    %c0_48 = arith.constant 0 : index
    %c0_49 = arith.constant 0 : index
    %67 = vector.load %arg18[%c0_48, %c0_49] : memref<1x256xf32, #tpu.memory_space<vmem>>, vector<1x256xf32>
    %68 = vector.broadcast %67 : vector<1x256xf32> to vector<128x256xf32>
    %69 = arith.addf %66, %68 : vector<128x256xf32>
    %cst_50 = arith.constant 0.000000e+00 : f32
    %70 = vector.broadcast %cst_50 : f32 to vector<128x256xf32>
    %71 = arith.maximumf %69, %70 : vector<128x256xf32>
    %72 = vector.broadcast %cst_50 : f32 to vector<128x256xf32>
    %73 = arith.subf %69, %72 : vector<128x256xf32>
    %74 = arith.cmpf one, %73, %73 : vector<128x256xf32>
    %75 = vector.broadcast %cst_50 : f32 to vector<128x256xf32>
    %76 = arith.addf %69, %75 : vector<128x256xf32>
    %77 = math.absf %73 : vector<128x256xf32>
    %cst_51 = arith.constant 0.000000e+00 : f32
    %78 = vector.broadcast %cst_51 : f32 to vector<128x256xf32>
    %79 = arith.subf %78, %77 : vector<128x256xf32>
    %80 = math.exp %79 : vector<128x256xf32>
    %81 = math.log1p %80 : vector<128x256xf32>
    %82 = arith.addf %71, %81 : vector<128x256xf32>
    %83 = arith.select %74, %76, %82 : vector<128x256xi1>, vector<128x256xf32>
    %cst_52 = arith.constant 9.99999974E-5 : f32
    %cst_53 = arith.constant 1.000000e+04 : f32
    %84 = vector.broadcast %cst_52 : f32 to vector<128x256xf32>
    %85 = arith.maximumf %84, %83 : vector<128x256xf32>
    %86 = vector.broadcast %cst_53 : f32 to vector<128x256xf32>
    %87 = arith.minimumf %86, %85 : vector<128x256xf32>
    %c0_54 = arith.constant 0 : index
    %c0_55 = arith.constant 0 : index
    %88 = vector.load %arg24[%c0_54, %c0_55] : memref<128x256xf32, #tpu.memory_space<vmem>>, vector<128x256xf32>
    tpu.vector_store %arg24[%c0_54, %c0_55], %87 {strides = array<i32>} : memref<128x256xf32, #tpu.memory_space<vmem>>, vector<128x256xf32>,
    %89 = arith.truncf %51 : vector<128x128xf32> to vector<128x128xbf16>
    %c0_56 = arith.constant 0 : index
    %c0_57 = arith.constant 0 : index
    %90 = vector.load %arg19[%c0_56, %c0_57] : memref<128x256xbf16, #tpu.memory_space<vmem>>, vector<128x256xbf16>
    %cst_58 = arith.constant dense<0.000000e+00> : vector<128x256xf32>
    %91 = tpu.matmul %89, %90, %cst_58 {dimension_numbers = #tpu.dot_dimension_numbers<[1], [0], [0], [1], [0, 0, 1, 1], [], []>} : vector<128x128xbf16>, vector<128x256xbf16>, vector<128x256xf32> -> vector<128x256xf32>
    %c0_59 = arith.constant 0 : index
    %c0_60 = arith.constant 0 : index
    %92 = vector.load %arg20[%c0_59, %c0_60] : memref<1x256xf32, #tpu.memory_space<vmem>>, vector<1x256xf32>
    %93 = vector.broadcast %92 : vector<1x256xf32> to vector<128x256xf32>
    %94 = arith.addf %91, %93 : vector<128x256xf32>
    %95 = arith.negf %94 : vector<128x256xf32>
    %96 = math.exp %95 : vector<128x256xf32>
    %cst_61 = arith.constant 1.000000e+00 : f32
    %97 = vector.broadcast %cst_61 : f32 to vector<128x256xf32>
    %98 = arith.addf %97, %96 : vector<128x256xf32>
    %99 = arith.divf %97, %98 : vector<128x256xf32>
    %c0_62 = arith.constant 0 : index
    %c0_63 = arith.constant 0 : index
    %100 = vector.load %arg25[%c0_62, %c0_63] : memref<128x256xf32, #tpu.memory_space<vmem>>, vector<128x256xf32>
    tpu.vector_store %arg25[%c0_62, %c0_63], %99 {strides = array<i32>} : memref<128x256xf32, #tpu.memory_space<vmem>>, vector<128x256xf32>,
    %101 = arith.truncf %26 : vector<128x16xf32> to vector<128x16xbf16>
    %c0_64 = arith.constant 0 : index
    %c0_65 = arith.constant 0 : index
    %102 = vector.load %arg21[%c0_64, %c0_65] : memref<16x8xbf16, #tpu.memory_space<vmem>>, vector<16x8xbf16>
    %cst_66 = arith.constant dense<0.000000e+00> : vector<128x8xf32>
    %103 = tpu.matmul %101, %102, %cst_66 {dimension_numbers = #tpu.dot_dimension_numbers<[1], [0], [0], [1], [0, 0, 1, 1], [], []>} : vector<128x16xbf16>, vector<16x8xbf16>, vector<128x8xf32> -> vector<128x8xf32>
    %c0_67 = arith.constant 0 : index
    %c0_68 = arith.constant 0 : index
    %104 = vector.load %arg22[%c0_67, %c0_68] : memref<1x8xf32, #tpu.memory_space<vmem>>, vector<1x8xf32>
    %105 = vector.broadcast %104 : vector<1x8xf32> to vector<128x8xf32>
    %106 = arith.addf %103, %105 : vector<128x8xf32>
    %cst_69 = arith.constant dense<0xFF800000> : vector<128xf32>
    %107 = vector.multi_reduction <maximumf>, %106, %cst_69 [1] : vector<128x8xf32> to vector<128xf32>
    %108 = vector.shape_cast %107 : vector<128xf32> to vector<128x1xf32>
    %109 = vector.broadcast %108 : vector<128x1xf32> to vector<128x8xf32>
    %110 = arith.subf %106, %109 : vector<128x8xf32>
    %111 = math.exp %110 : vector<128x8xf32>
    %cst_70 = arith.constant dense<0.000000e+00> : vector<128xf32>
    %112 = vector.multi_reduction <add>, %111, %cst_70 [1] : vector<128x8xf32> to vector<128xf32>
    %113 = vector.shape_cast %112 : vector<128xf32> to vector<128x1xf32>
    %114 = tpu.reciprocal %113 {approx = true} : vector<128x1xf32> -> vector<128x1xf32>
    %115 = vector.broadcast %114 : vector<128x1xf32> to vector<128x8xf32>
    %116 = arith.mulf %111, %115 : vector<128x8xf32>
    %cst_71 = arith.constant 0.000000e+00 : f32
    %117 = vector.broadcast %cst_71 : f32 to vector<128x128xf32>
    %c0_72 = arith.constant 0 : index
    %c0_73 = arith.constant 0 : index
    %118 = vector.load %arg26[%c0_72, %c0_73] : memref<128x128xf32, #tpu.memory_space<vmem>>, vector<128x128xf32>
    tpu.vector_store %arg26[%c0_72, %c0_73], %117 {strides = array<i32>} : memref<128x128xf32, #tpu.memory_space<vmem>>, vector<128x128xf32>,
    %c0_74 = arith.constant 0 : index
    %c0_75 = arith.constant 0 : index
    %119 = vector.load %arg26[%c0_74, %c0_75] : memref<128x128xf32, #tpu.memory_space<vmem>>, vector<128x16xf32>
    tpu.vector_store %arg26[%c0_74, %c0_75], %25 {strides = array<i32>} : memref<128x128xf32, #tpu.memory_space<vmem>>, vector<128x16xf32>,
    %c0_76 = arith.constant 0 : index
    %c16 = arith.constant 16 : index
    %120 = vector.load %arg26[%c0_76, %c16] : memref<128x128xf32, #tpu.memory_space<vmem>>, vector<128x16xf32>
    tpu.vector_store %arg26[%c0_76, %c16], %26 {strides = array<i32>} : memref<128x128xf32, #tpu.memory_space<vmem>>, vector<128x16xf32>,
    %c0_77 = arith.constant 0 : index
    %c32 = arith.constant 32 : index
    %121 = vector.load %arg26[%c0_77, %c32] : memref<128x128xf32, #tpu.memory_space<vmem>>, vector<128x8xf32>
    tpu.vector_store %arg26[%c0_77, %c32], %116 {strides = array<i32>} : memref<128x128xf32, #tpu.memory_space<vmem>>, vector<128x8xf32>,
    return
  }
  func.func @transform_0(%arg0: i32) -> (i32, i32) {
    %c0_i32 = arith.constant 0 : i32
    %c0_i32_0 = arith.constant 0 : i32
    return %arg0, %c0_i32 : i32, i32
  }
  func.func @transform_1(%arg0: i32) -> (i32, i32) {
    %c0_i32 = arith.constant 0 : i32
    %c0_i32_0 = arith.constant 0 : i32
    return %arg0, %c0_i32 : i32, i32
  }
  func.func @transform_2(%arg0: i32) -> (i32, i32) {
    %c0_i32 = arith.constant 0 : i32
    %c0_i32_0 = arith.constant 0 : i32
    %c0_i32_1 = arith.constant 0 : i32
    return %c0_i32, %c0_i32_0 : i32, i32
  }
  func.func @transform_3(%arg0: i32) -> (i32, i32) {
    %c0_i32 = arith.constant 0 : i32
    %c0_i32_0 = arith.constant 0 : i32
    %c0_i32_1 = arith.constant 0 : i32
    return %c0_i32, %c0_i32_0 : i32, i32
  }
  func.func @transform_4(%arg0: i32) -> (i32, i32) {
    %c0_i32 = arith.constant 0 : i32
    %c0_i32_0 = arith.constant 0 : i32
    %c0_i32_1 = arith.constant 0 : i32
    return %c0_i32, %c0_i32_0 : i32, i32
  }
  func.func @transform_5(%arg0: i32) -> (i32, i32) {
    %c0_i32 = arith.constant 0 : i32
    %c0_i32_0 = arith.constant 0 : i32
    %c0_i32_1 = arith.constant 0 : i32
    return %c0_i32, %c0_i32_0 : i32, i32
  }
  func.func @transform_6(%arg0: i32) -> (i32, i32) {
    %c0_i32 = arith.constant 0 : i32
    %c0_i32_0 = arith.constant 0 : i32
    %c0_i32_1 = arith.constant 0 : i32
    return %c0_i32, %c0_i32_0 : i32, i32
  }
  func.func @transform_7(%arg0: i32) -> (i32, i32) {
    %c0_i32 = arith.constant 0 : i32
    %c0_i32_0 = arith.constant 0 : i32
    %c0_i32_1 = arith.constant 0 : i32
    return %c0_i32, %c0_i32_0 : i32, i32
  }
  func.func @transform_8(%arg0: i32) -> (i32, i32) {
    %c0_i32 = arith.constant 0 : i32
    %c0_i32_0 = arith.constant 0 : i32
    %c0_i32_1 = arith.constant 0 : i32
    return %c0_i32, %c0_i32_0 : i32, i32
  }
  func.func @transform_9(%arg0: i32) -> (i32, i32) {
    %c0_i32 = arith.constant 0 : i32
    %c0_i32_0 = arith.constant 0 : i32
    %c0_i32_1 = arith.constant 0 : i32
    return %c0_i32, %c0_i32_0 : i32, i32
  }
  func.func @transform_10(%arg0: i32) -> (i32, i32) {
    %c0_i32 = arith.constant 0 : i32
    %c0_i32_0 = arith.constant 0 : i32
    %c0_i32_1 = arith.constant 0 : i32
    return %c0_i32, %c0_i32_0 : i32, i32
  }
  func.func @transform_11(%arg0: i32) -> (i32, i32) {
    %c0_i32 = arith.constant 0 : i32
    %c0_i32_0 = arith.constant 0 : i32
    %c0_i32_1 = arith.constant 0 : i32
    return %c0_i32, %c0_i32_0 : i32, i32
  }
  func.func @transform_12(%arg0: i32) -> (i32, i32) {
    %c0_i32 = arith.constant 0 : i32
    %c0_i32_0 = arith.constant 0 : i32
    %c0_i32_1 = arith.constant 0 : i32
    return %c0_i32, %c0_i32_0 : i32, i32
  }
  func.func @transform_13(%arg0: i32) -> (i32, i32) {
    %c0_i32 = arith.constant 0 : i32
    %c0_i32_0 = arith.constant 0 : i32
    %c0_i32_1 = arith.constant 0 : i32
    return %c0_i32, %c0_i32_0 : i32, i32
  }
  func.func @transform_14(%arg0: i32) -> (i32, i32) {
    %c0_i32 = arith.constant 0 : i32
    %c0_i32_0 = arith.constant 0 : i32
    %c0_i32_1 = arith.constant 0 : i32
    return %c0_i32, %c0_i32_0 : i32, i32
  }
  func.func @transform_15(%arg0: i32) -> (i32, i32) {
    %c0_i32 = arith.constant 0 : i32
    %c0_i32_0 = arith.constant 0 : i32
    %c0_i32_1 = arith.constant 0 : i32
    return %c0_i32, %c0_i32_0 : i32, i32
  }
  func.func @transform_16(%arg0: i32) -> (i32, i32) {
    %c0_i32 = arith.constant 0 : i32
    %c0_i32_0 = arith.constant 0 : i32
    %c0_i32_1 = arith.constant 0 : i32
    return %c0_i32, %c0_i32_0 : i32, i32
  }
  func.func @transform_17(%arg0: i32) -> (i32, i32) {
    %c0_i32 = arith.constant 0 : i32
    %c0_i32_0 = arith.constant 0 : i32
    %c0_i32_1 = arith.constant 0 : i32
    return %c0_i32, %c0_i32_0 : i32, i32
  }
  func.func @transform_18(%arg0: i32) -> (i32, i32) {
    %c0_i32 = arith.constant 0 : i32
    %c0_i32_0 = arith.constant 0 : i32
    %c0_i32_1 = arith.constant 0 : i32
    return %c0_i32, %c0_i32_0 : i32, i32
  }
  func.func @transform_19(%arg0: i32) -> (i32, i32) {
    %c0_i32 = arith.constant 0 : i32
    %c0_i32_0 = arith.constant 0 : i32
    %c0_i32_1 = arith.constant 0 : i32
    return %c0_i32, %c0_i32_0 : i32, i32
  }
  func.func @transform_20(%arg0: i32) -> (i32, i32) {
    %c0_i32 = arith.constant 0 : i32
    %c0_i32_0 = arith.constant 0 : i32
    %c0_i32_1 = arith.constant 0 : i32
    return %c0_i32, %c0_i32_0 : i32, i32
  }
  func.func @transform_21(%arg0: i32) -> (i32, i32) {
    %c0_i32 = arith.constant 0 : i32
    %c0_i32_0 = arith.constant 0 : i32
    %c0_i32_1 = arith.constant 0 : i32
    return %c0_i32, %c0_i32_0 : i32, i32
  }
  func.func @transform_22(%arg0: i32) -> (i32, i32) {
    %c0_i32 = arith.constant 0 : i32
    %c0_i32_0 = arith.constant 0 : i32
    return %arg0, %c0_i32 : i32, i32
  }
  func.func @transform_23(%arg0: i32) -> (i32, i32) {
    %c0_i32 = arith.constant 0 : i32
    %c0_i32_0 = arith.constant 0 : i32
    return %arg0, %c0_i32 : i32, i32
  }
  func.func @transform_24(%arg0: i32) -> (i32, i32) {
    %c0_i32 = arith.constant 0 : i32
    %c0_i32_0 = arith.constant 0 : i32
    return %arg0, %c0_i32 : i32, i32
  }
  func.func @transform_25(%arg0: i32) -> (i32, i32) {
    %c0_i32 = arith.constant 0 : i32
    %c0_i32_0 = arith.constant 0 : i32
    return %arg0, %c0_i32 : i32, i32
  }
}

</mosaic_0001>

<bundles_post_ra>
// kernel: tpu_custom_call.1
= control target key start
LH: loop header
LB: loop body
LE: loop exit
PB: predicated region body
PF: predicated region fallthrough
CT: control target
= control target key end

     0   :  { %s9815_s0 = inlined_call_operand.hbm [shape: f32[256,256], index: 0, kind: input, shape index: {}]   ;;  %s9816_s1 = inlined_call_operand.hbm [shape: f32[256,256], index: 1, kind: input, shape index: {}]   ;;  %s9817_s2 = inlined_call_operand.vmem [shape: bf16[256,128], index: 2, kind: input, shape index: {}]   ;;  %s9818_s3 = inlined_call_operand.vmem [shape: f32[1,128], index: 3, kind: input, shape index: {}]   ;;  %s9819_s4 = inlined_call_operand.vmem [shape: bf16[128,64], index: 4, kind: input, shape index: {}]   ;;  %s9820_s5 = inlined_call_operand.hbm [shape: f32[1,64], index: 5, kind: input, shape index: {}]   ;;  %s9821_s6 = inlined_call_operand.vmem [shape: bf16[64,16], index: 6, kind: input, shape index: {}]   ;;  %s9822_s7 = inlined_call_operand.hbm [shape: f32[1,16], index: 7, kind: input, shape index: {}]   ;;  %s9823_s8 = inlined_call_operand.hbm [shape: bf16[16,64], index: 8, kind: input, shape index: {}]   ;;  %s9824_s9 = inlined_call_operand.hbm [shape: f32[1,64], index: 9, kind: input, shape index: {}]   ;;  %s9825_s10 = inlined_call_operand.hbm [shape: bf16[64,128], index: 10, kind: input, shape index: {}]   ;;  %s9826_s11 = inlined_call_operand.hbm [shape: f32[1,128], index: 11, kind: input, shape index: {}]   ;;  %s9827_s12 = inlined_call_operand.vmem [shape: bf16[128,128], index: 12, kind: input, shape index: {}]   ;;  %s9828_s13 = inlined_call_operand.hbm [shape: f32[1,128], index: 13, kind: input, shape index: {}]   ;;  %s9829_s14 = inlined_call_operand.hbm [shape: bf16[128,256], index: 14, kind: input, shape index: {}]   ;;  %s9830_s15 = inlined_call_operand.vmem [shape: f32[1,256], index: 15, kind: input, shape index: {}]   ;;  %s9831_s16 = inlined_call_operand.hbm [shape: bf16[128,256], index: 16, kind: input, shape index: {}]   ;;  %s9832_s17 = inlined_call_operand.vmem [shape: f32[1,256], index: 17, kind: input, shape index: {}]   ;;  %s9833_s18 = inlined_call_operand.hbm [shape: bf16[128,256], index: 18, kind: input, shape index: {}]   ;;  %s9834_s19 = inlined_call_operand.vmem [shape: f32[1,256], index: 19, kind: input, shape index: {}]   ;;  %s9835_s20 = inlined_call_operand.vmem [shape: bf16[16,8], index: 20, kind: input, shape index: {}]   ;;  %s9836_s21 = inlined_call_operand.vmem [shape: f32[1,8], index: 21, kind: input, shape index: {}]   ;;  %s9837_s22 = inlined_call_operand.hbm [shape: f32[256,256], index: 22, kind: output, shape index: {0}]   ;;  %s9838_s23 = inlined_call_operand.hbm [shape: f32[256,256], index: 23, kind: output, shape index: {1}]   ;;  %s9839_s24 = inlined_call_operand.hbm [shape: f32[256,256], index: 24, kind: output, shape index: {2}]   ;;  %s9840_s25 = inlined_call_operand.hbm [shape: f32[256,128], index: 25, kind: output, shape index: {3}]  }
   0x1   :  { %9894 = sst [smem:[#allocation92_spill]] %s9815_s0 }
   0x2   :  { %9895 = sst [smem:[#allocation93_spill]] %s9816_s1 }
   0x3   :  { %9896 = sst [smem:[#allocation94_spill]] %s9817_s2 }
   0x4   :  { %9897 = sst [smem:[#allocation95_spill]] %s9818_s3 }
   0x5   :  { %9898 = sst [smem:[#allocation96_spill]] %s9819_s4 }
   0x6   :  { %9899 = sst [smem:[#allocation97_spill]] %s9820_s5 }
   0x7   :  { %9900 = sst [smem:[#allocation98_spill]] %s9821_s6 }
   0x8   :  { %9901 = sst [smem:[#allocation99_spill]] %s9822_s7 }
   0x9   :  { %9902 = sst [smem:[#allocation100_spill]] %s9823_s8 }
   0xa   :  { %9903 = sst [smem:[#allocation101_spill]] %s9824_s9 }
   0xb   :  { %9904 = sst [smem:[#allocation102_spill]] %s9825_s10 }
   0xc   :  { %9905 = sst [smem:[#allocation103_spill]] %s9826_s11 }
   0xd   :  { %9906 = sst [smem:[#allocation104_spill]] %s9827_s12 }
   0xe   :  { %9907 = sst [smem:[#allocation105_spill]] %s9828_s13 }
   0xf   :  { %9908 = sst [smem:[#allocation106_spill]] %s9829_s14 }
  0x10   :  { %9909 = sst [smem:[#allocation107_spill]] %s9830_s15 }
  0x11   :  { %9910 = sst [smem:[#allocation108_spill]] %s9831_s16 }
  0x12   :  { %9911 = sst [smem:[#allocation109_spill]] %s9832_s17 }
  0x13   :  { %9912 = sst [smem:[#allocation110_spill]] %s9833_s18 }
  0x14   :  { %9913 = sst [smem:[#allocation111_spill]] %s9834_s19 }
  0x15   :  { %9914 = sst [smem:[#allocation112_spill]] %s9835_s20 }
  0x16   :  { %9915 = sst [smem:[#allocation113_spill]] %s9836_s21 }
  0x17   :  { %9916 = sst [smem:[#allocation114_spill]] %s9837_s22 }
  0x18   :  { %9917 = sst [smem:[#allocation115_spill]] %s9838_s23 }
  0x19   :  { %9918 = sst [smem:[#allocation116_spill]] %s9839_s24 }
  0x1a   :  { %9919 = sst [smem:[#allocation117_spill]] %s9840_s25 }
  0x1b   :  { %31 = vsyncpa [#allocation3], 0 }
  0x1c   :  { %33 = vsyncpa [#allocation3 + $0x1], 0 }
  0x1d   :  { %34 = vsyncpa [#allocation6], 0 }
  0x1e   :  { %36 = vsyncpa [#allocation6 + $0x1], 0 }
  0x1f   :  { %37 = vsyncpa [#allocation9], 0 }
  0x20   :  { %38 = vsyncpa [#allocation12], 0 }
  0x21   :  { %39 = vsyncpa [#allocation15], 0 }
  0x22   :  { %40 = vsyncpa [#allocation18], 0 }
  0x23   :  { %41 = vsyncpa [#allocation21], 0 }
  0x24   :  { %42 = vsyncpa [#allocation4], 0 }
  0x25   :  { %44 = vsyncpa [#allocation4 + $0x1], 0 }
  0x26   :  { %45 = vsyncpa [#allocation24], 0 }
  0x27   :  { %47 = vsyncpa [#allocation24 + $0x1], 0 }
  0x28   :  { %48 = vsyncpa [#allocation27], 0 }
  0x29   :  { %50 = vsyncpa [#allocation27 + $0x1], 0  ;;  %s7201_s29 = smov 0   ;;  %s7203_s2 = smov 0  }
  0x2a   :  { %s7205_s6 = smov 0   ;;  %s7207_s30 = smov 0  }
  0x2b LB: > { %s7042_s7 = smov [#allocation7]   ;;  %s7222_s26 = sadd.s32 4294967295, %s7040_s30   ;;  %s7040_s30 = sphi %s7207_s30, %s10149_s30   ;;  %s7036_s6 = sphi %s7205_s6, %s10148_s6   ;;  %s7032_s2 = sphi %s7203_s2, %s10147_s2   ;;  %s7028_s29 = sphi %s7201_s29, %s10146_s29  }
  0x2c   : > { %s659_s3 = sshll.u32 %s7042_s7, 4  ;;  %p5140_p0 = scmp.ge.s32.totalorder %s7040_s30, 1  ;;  %s7227_s3 = int_to_ptr.vmem [resolvable:$true] %s659_s3 }
  0x2d   : > { %p9855_p1 = scmp.eq.s32.totalorder %s7222_s26, 0  ;;  %p637_p2 = scmp.lt.s32.totalorder %s7040_s30, 3 }
  0x2e   : > { %s7043_s8 = smov [#allocation8]   ;;  %s7044_s4 = smov [#allocation11]  }
  0x2f   : > { %p7229_p3 = pnand %p5140_p0, %p637_p2  ;;  %s673_s27 = sshll.u32 %s7043_s8, 4  ;;  %s7236_s27 = int_to_ptr.vmem [resolvable:$true] %s673_s27 }
  0x30   : > { %s697_s28 = sshll.u32 %s7044_s4, 4  ;;  %s7045_s5 = smov [#allocation14]   ;;  %s7244_s28 = int_to_ptr.vmem [resolvable:$true] %s697_s28 }
  0x31   : > { %s9920_s1 = scalar_select %p7229_p3, 1, 0 }
  0x32   : > { %p5824_p5 = pneg %p7229_p3  ;;  %s7246_s0 = sshll.u32 %s7045_s5, 4  ;;  %s722_s0 = int_to_ptr.vmem [resolvable:$true] %s7246_s0 }
  0x33   : > { %s9922_s22 = sld [smem:[#allocation97_spill]] }
  0x34   : > { %p7240_p6 = pnand %p5824_p5, %p9855_p1 }
  0x36   : > { %p7256_p8 = pneg %p7240_p6 }
  0x39   : > { %s6514_s24 = scalar_lea.hbm %s9922_s22, 16 }
  0x3a   : > { %p6515_p7 = scmp.ne.s32.totalorder %s9922_s22, %s6514_s24  ;;  %p6521_p11 = scmp.lt.u32.totalorder %s6514_s24, %s9922_s22 }
  0x3c   : > { %p6517_p9 = pnand %p7256_p8, %p6515_p7 }
  0x3e   : > { %p6518_p10 = pneg %p6517_p9 }
  0x40   : > { %p6523_p12 = pnand %p6521_p11, %p6518_p10 }
  0x42   : > { %6526 = shalt.err (!%p6523_p12)
}
  0x43   : > { %s6527_s23 = scalar_lea.vmem %s7227_s3, 16  ;;  %s6534_s25 = scalar_lea.vmem %s7227_s3, 32 }
  0x44   : > { %p6528_p13 = scmp.ne.s32.totalorder %s7227_s3, %s6527_s23  ;;  %p6535_p5 = scmp.lt.s32.totalorder %s7227_s3, %s7227_s3 }
  0x45   : > { %p6536_p7 = scmp.lt.s32.totalorder %s6534_s25, %s6527_s23 }
  0x46   : > { %p6530_p0 = pnand %p6528_p13, %p7256_p8 }
  0x47   : > { %p6537_p9 = por %p6536_p7, %p6535_p5 }
  0x48   : > { %p6531_p2 = pneg %p6530_p0 }
  0x4a   : > { %p6538_p4 = pnand %p6537_p9, %p6531_p2 }
  0x4c   : > { %6541 = shalt.err (!%p6538_p4)
}
  0x4d   : > { %5827 = dma.hbm_to_vmem [thread:$0]  (!%p7240_p6), %s9922_s22, 16, %s7227_s3, [#allocation6]  }
  0x4e   : > { %s9924_s5 = sld [smem:[#allocation99_spill]] }
  0x54   : > { %s6542_s19 = scalar_lea.hbm %s9924_s5, 16 }
  0x55   : > { %p6543_p10 = scmp.ne.s32.totalorder %s9924_s5, %s6542_s19  ;;  %p6549_p4 = scmp.lt.u32.totalorder %s6542_s19, %s9924_s5 }
  0x57   : > { %p6545_p11 = pnand %p6543_p10, %p7256_p8 }
  0x59   : > { %p6546_p12 = pneg %p6545_p11 }
  0x5b   : > { %p6551_p13 = pnand %p6549_p4, %p6546_p12 }
  0x5d   : > { %6554 = shalt.err (!%p6551_p13)
}
  0x5e   : > { %s6555_s3 = scalar_lea.vmem %s7236_s27, 16  ;;  %s6562_s15 = scalar_lea.vmem %s7236_s27, 32 }
  0x5f   : > { %p6556_p0 = scmp.ne.s32.totalorder %s7236_s27, %s6555_s3  ;;  %p6563_p7 = scmp.lt.s32.totalorder %s7236_s27, %s7236_s27 }
  0x60   : > { %p6564_p9 = scmp.lt.s32.totalorder %s6562_s15, %s6555_s3 }
  0x61   : > { %p6558_p2 = pnand %p6556_p0, %p7256_p8 }
  0x62   : > { %p6565_p10 = por %p6564_p9, %p6563_p7 }
  0x63   : > { %p6559_p5 = pneg %p6558_p2 }
  0x65   : > { %p6566_p11 = pnand %p6565_p10, %p6559_p5 }
  0x67   : > { %6569 = shalt.err (!%p6566_p11)
}
  0x68   : > { %5830 = dma.hbm_to_vmem [thread:$0]  (!%p7240_p6), %s9924_s5, 16, %s7236_s27, [#allocation9]  }
  0x69   : > { %s9925_s7 = sld [smem:[#allocation101_spill]] }
  0x6f   : > { %s6570_s8 = scalar_lea.hbm %s9925_s7, 16 }
  0x70   : > { %p6571_p12 = scmp.ne.s32.totalorder %s9925_s7, %s6570_s8  ;;  %p6577_p0 = scmp.lt.u32.totalorder %s6570_s8, %s9925_s7 }
  0x72   : > { %p6573_p4 = pnand %p6571_p12, %p7256_p8 }
  0x74   : > { %p6574_p13 = pneg %p6573_p4 }
  0x76   : > { %p6579_p2 = pnand %p6577_p0, %p6574_p13 }
  0x78   : > { %6582 = shalt.err (!%p6579_p2)
}
  0x79   : > { %s6583_s27 = scalar_lea.vmem %s7244_s28, 16  ;;  %s6590_s17 = scalar_lea.vmem %s7244_s28, 32 }
  0x7a   : > { %p6584_p5 = scmp.ne.s32.totalorder %s7244_s28, %s6583_s27  ;;  %p6591_p10 = scmp.lt.s32.totalorder %s7244_s28, %s7244_s28 }
  0x7b   : > { %p6592_p11 = scmp.lt.s32.totalorder %s6590_s17, %s6583_s27 }
  0x7c   : > { %p6586_p7 = pnand %p6584_p5, %p7256_p8 }
  0x7d   : > { %p6593_p12 = por %p6592_p11, %p6591_p10 }
  0x7e   : > { %p6587_p9 = pneg %p6586_p7 }
  0x80   : > { %p6594_p4 = pnand %p6593_p12, %p6587_p9 }
  0x82   : > { %6597 = shalt.err (!%p6594_p4)
}
  0x83   : > { %5836 = dma.hbm_to_vmem [thread:$0]  (!%p7240_p6), %s9925_s7, 16, %s7244_s28, [#allocation12]  }
  0x84   : > { %s7046_s24 = smov [#allocation17]   ;;  %s9926_s11 = sld [smem:[#allocation103_spill]] }
  0x85   : > { %s745_s8 = sshll.u32 %s7046_s24, 4  ;;  %s746_s8 = int_to_ptr.vmem [resolvable:$true] %s745_s8 }
  0x8a   : > { %s6598_s3 = scalar_lea.hbm %s9926_s11, 16 }
  0x8b   : > { %p6599_p13 = scmp.ne.s32.totalorder %s9926_s11, %s6598_s3  ;;  %p6605_p5 = scmp.lt.u32.totalorder %s6598_s3, %s9926_s11 }
  0x8d   : > { %p6601_p0 = pnand %p6599_p13, %p7256_p8 }
  0x8f   : > { %p6602_p2 = pneg %p6601_p0 }
  0x91   : > { %p6607_p7 = pnand %p6605_p5, %p6602_p2 }
  0x93   : > { %6610 = shalt.err (!%p6607_p7)
}
  0x94   : > { %s6611_s28 = scalar_lea.vmem %s722_s0, 16  ;;  %s6618_s19 = scalar_lea.vmem %s722_s0, 32 }
  0x95   : > { %p6612_p9 = scmp.ne.s32.totalorder %s722_s0, %s6611_s28  ;;  %p6619_p12 = scmp.lt.s32.totalorder %s722_s0, %s722_s0 }
  0x96   : > { %p6620_p4 = scmp.lt.s32.totalorder %s6618_s19, %s6611_s28 }
  0x97   : > { %p6614_p10 = pnand %p6612_p9, %p7256_p8 }
  0x98   : > { %p6621_p1 = por %p6620_p4, %p6619_p12 }
  0x99   : > { %p6615_p11 = pneg %p6614_p10 }
  0x9b   : > { %p6622_p3 = pnand %p6621_p1, %p6615_p11 }
  0x9d   : > { %6625 = shalt.err (!%p6622_p3)
}
  0x9e   : > { %5842 = dma.hbm_to_vmem [thread:$0]  (!%p7240_p6), %s9926_s11, 16, %s722_s0, [#allocation15]  }
  0x9f   : > { %s9927_s14 = sld [smem:[#allocation106_spill]] }
  0xa5   : > { %s6626_s25 = scalar_lea.hbm %s9927_s14, 2048 }
  0xa6   : > { %p6627_p13 = scmp.ne.s32.totalorder %s9927_s14, %s6626_s25  ;;  %p6633_p3 = scmp.lt.u32.totalorder %s6626_s25, %s9927_s14 }
  0xa8   : > { %p6629_p0 = pnand %p6627_p13, %p7256_p8 }
  0xaa   : > { %p6630_p1 = pneg %p6629_p0 }
  0xac   : > { %p6635_p2 = pnand %p6633_p3, %p6630_p1 }
  0xae   : > { %6638 = shalt.err (!%p6635_p2)
}
  0xaf   : > { %s6639_s28 = scalar_lea.vmem %s746_s8, 2048  ;;  %p6647_p10 = scmp.lt.s32.totalorder %s746_s8, %s746_s8 }
  0xb0   : > { %p6640_p5 = scmp.ne.s32.totalorder %s746_s8, %s6639_s28  ;;  %p6648_p11 = scmp.lt.s32.totalorder %s6639_s28, %s6639_s28 }
  0xb2   : > { %p6642_p7 = pnand %p6640_p5, %p7256_p8  ;;  %p6649_p12 = por %p6648_p11, %p6647_p10 }
  0xb4   : > { %p6643_p9 = pneg %p6642_p7 }
  0xb6   : > { %p6650_p4 = pnand %p6649_p12, %p6643_p9 }
  0xb8   : > { %6653 = shalt.err (!%p6650_p4)
}
  0xb9   : > { %s9858_s0 = smov 128   ;;  %s9860_s19 = smov 8  }
  0xba   : > { %5848 = dma.hbm_to_vmem [thread:$0]  (!%p7240_p6), %s9927_s14, 2048, %s746_s8, [#allocation18], %s9858_s0, %s9858_s0, %s9860_s19  }
  0xbb   : > { %s7049_s5 = smov [#allocation10]   ;;  %s9928_s15 = sld [smem:[#allocation100_spill]] }
  0xbc   : > { %s683_s23 = sshll.u32 %s7049_s5, 4  ;;  %s684_s23 = int_to_ptr.vmem [resolvable:$true] %s683_s23 }
  0xc1   : > { %s6654_s27 = scalar_lea.hbm %s9928_s15, 128 }
  0xc2   : > { %p6655_p13 = scmp.ne.s32.totalorder %s9928_s15, %s6654_s27  ;;  %p6661_p3 = scmp.lt.u32.totalorder %s6654_s27, %s9928_s15 }
  0xc4   : > { %p6657_p0 = pnand %p6655_p13, %p7256_p8 }
  0xc6   : > { %p6658_p1 = pneg %p6657_p0 }
  0xc8   : > { %p6663_p2 = pnand %p6661_p3, %p6658_p1 }
  0xca   : > { %6666 = shalt.err (!%p6663_p2)
}
  0xcb   : > { %s6667_s8 = scalar_lea.vmem %s684_s23, 128  ;;  %p6675_p10 = scmp.lt.s32.totalorder %s684_s23, %s684_s23 }
  0xcc   : > { %p6668_p5 = scmp.ne.s32.totalorder %s684_s23, %s6667_s8  ;;  %p6676_p11 = scmp.lt.s32.totalorder %s6667_s8, %s6667_s8 }
  0xce   : > { %p6670_p7 = pnand %p6668_p5, %p7256_p8  ;;  %p6677_p12 = por %p6676_p11, %p6675_p10 }
  0xd0   : > { %p6671_p9 = pneg %p6670_p7 }
  0xd2   : > { %p6678_p4 = pnand %p6677_p12, %p6671_p9 }
  0xd4   : > { %6681 = shalt.err (!%p6678_p4)
}
  0xd5   : > { %s7050_s21 = smov 64   ;;  %s7051_s24 = smov 4  }
  0xd6   : > { %5833 = dma.hbm_to_vmem [thread:$0]  (!%p7240_p6), %s9928_s15, 128, %s684_s23, [#allocation9], %s7050_s21, %s7050_s21, %s7051_s24  }
  0xd7   : > { %s7052_s5 = smov [#allocation13]   ;;  %s7053_s3 = smov [#allocation16]  }
  0xd8   : > { %s707_s25 = sshll.u32 %s7052_s5, 4  ;;  %s735_s27 = sshll.u32 %s7053_s3, 4  ;;  %s708_s25 = int_to_ptr.vmem [resolvable:$true] %s707_s25  ;;  %s7384_s27 = int_to_ptr.vmem [resolvable:$true] %s735_s27 }
  0xd9   : > { %s9929_s10 = sld [smem:[#allocation102_spill]] }
  0xdf   : > { %s6682_s8 = scalar_lea.hbm %s9929_s10, 512 }
  0xe0   : > { %p6683_p13 = scmp.ne.s32.totalorder %s9929_s10, %s6682_s8  ;;  %p6689_p3 = scmp.lt.u32.totalorder %s6682_s8, %s9929_s10 }
  0xe2   : > { %p6685_p0 = pnand %p6683_p13, %p7256_p8 }
  0xe4   : > { %p6686_p1 = pneg %p6685_p0 }
  0xe6   : > { %p6691_p2 = pnand %p6689_p3, %p6686_p1 }
  0xe8   : > { %6694 = shalt.err (!%p6691_p2)
}
  0xe9   : > { %s6695_s7 = scalar_lea.vmem %s708_s25, 512  ;;  %p6703_p10 = scmp.lt.s32.totalorder %s708_s25, %s708_s25 }
  0xea   : > { %p6696_p5 = scmp.ne.s32.totalorder %s708_s25, %s6695_s7  ;;  %p6704_p11 = scmp.lt.s32.totalorder %s6695_s7, %s6695_s7 }
  0xec   : > { %p6698_p7 = pnand %p6696_p5, %p7256_p8  ;;  %p6705_p12 = por %p6704_p11, %p6703_p10 }
  0xee   : > { %p6699_p9 = pneg %p6698_p7 }
  0xf0   : > { %p6706_p4 = pnand %p6705_p12, %p6699_p9 }
  0xf2   : > { %6709 = shalt.err (!%p6706_p4)
}
  0xf3   : > { %5839 = dma.hbm_to_vmem [thread:$0]  (!%p7240_p6), %s9929_s10, 512, %s708_s25, [#allocation12], %s7050_s21, %s7050_s21, %s7051_s24  }
  0xf4   : > { %s9930_s13 = sld [smem:[#allocation105_spill]] }
  0xfa   : > { %s6710_s17 = scalar_lea.hbm %s9930_s13, 16 }
  0xfb   : > { %p6711_p13 = scmp.ne.s32.totalorder %s9930_s13, %s6710_s17  ;;  %p6717_p3 = scmp.lt.u32.totalorder %s6710_s17, %s9930_s13 }
  0xfd   : > { %p6713_p0 = pnand %p6711_p13, %p7256_p8 }
  0xff   : > { %p6714_p1 = pneg %p6713_p0 }
 0x101   : > { %p6719_p2 = pnand %p6717_p3, %p6714_p1 }
 0x103   : > { %6722 = shalt.err (!%p6719_p2)
}
 0x104   : > { %s6723_s21 = scalar_lea.vmem %s7384_s27, 16  ;;  %s6730_s24 = scalar_lea.vmem %s7384_s27, 32 }
 0x105   : > { %p6724_p5 = scmp.ne.s32.totalorder %s7384_s27, %s6723_s21  ;;  %p6731_p10 = scmp.lt.s32.totalorder %s7384_s27, %s7384_s27 }
 0x106   : > { %p6732_p11 = scmp.lt.s32.totalorder %s6730_s24, %s6723_s21 }
 0x107   : > { %p6726_p7 = pnand %p6724_p5, %p7256_p8 }
 0x108   : > { %p6733_p12 = por %p6732_p11, %p6731_p10 }
 0x109   : > { %p6727_p9 = pneg %p6726_p7 }
 0x10b   : > { %p6734_p4 = pnand %p6733_p12, %p6727_p9 }
 0x10d   : > { %6737 = shalt.err (!%p6734_p4)
}
 0x10e   : > { %5845 = dma.hbm_to_vmem [thread:$0]  (!%p7240_p6), %s9930_s13, 16, %s7384_s27, [#allocation15]  }
 0x10f   : > { %s7054_s0 = smov [#allocation19]   ;;  %s7055_s5 = smov [#allocation20]  }
 0x110   : > { %s761_s19 = sshll.u32 %s7054_s0, 4  ;;  %s777_s3 = sshll.u32 %s7055_s5, 4  ;;  %s762_s19 = int_to_ptr.vmem [resolvable:$true] %s761_s19  ;;  %s7428_s3 = int_to_ptr.vmem [resolvable:$true] %s777_s3 }
 0x111   : > { %s9931_s16 = sld [smem:[#allocation108_spill]] }
 0x117   : > { %s6738_s8 = scalar_lea.hbm %s9931_s16, 2048 }
 0x118   : > { %p6739_p13 = scmp.ne.s32.totalorder %s9931_s16, %s6738_s8  ;;  %p6745_p3 = scmp.lt.u32.totalorder %s6738_s8, %s9931_s16 }
 0x11a   : > { %p6741_p0 = pnand %p6739_p13, %p7256_p8 }
 0x11c   : > { %p6742_p1 = pneg %p6741_p0 }
 0x11e   : > { %p6747_p2 = pnand %p6745_p3, %p6742_p1 }
 0x120   : > { %6750 = shalt.err (!%p6747_p2)
}
 0x121   : > { %s6751_s24 = scalar_lea.vmem %s762_s19, 2048  ;;  %p6759_p10 = scmp.lt.s32.totalorder %s762_s19, %s762_s19 }
 0x122   : > { %p6752_p5 = scmp.ne.s32.totalorder %s762_s19, %s6751_s24  ;;  %p6760_p11 = scmp.lt.s32.totalorder %s6751_s24, %s6751_s24 }
 0x124   : > { %p6754_p7 = pnand %p6752_p5, %p7256_p8  ;;  %p6761_p12 = por %p6760_p11, %p6759_p10 }
 0x126   : > { %p6755_p9 = pneg %p6754_p7 }
 0x128   : > { %p6762_p4 = pnand %p6761_p12, %p6755_p9 }
 0x12a   : > { %6765 = shalt.err (!%p6762_p4)
}
 0x12b   : > { %s9932_s25 = smov 8   ;;  %s9933_s7 = smov 128  }
 0x12c   : > { %5851 = dma.hbm_to_vmem [thread:$0]  (!%p7240_p6), %s9931_s16, 2048, %s762_s19, [#allocation18], %s9933_s7, %s9933_s7, %s9932_s25  }
 0x12d   : > { %s9934_s18 = sld [smem:[#allocation110_spill]] }
 0x133   : > { %s6766_s8 = scalar_lea.hbm %s9934_s18, 2048 }
 0x134   : > { %p6767_p13 = scmp.ne.s32.totalorder %s9934_s18, %s6766_s8  ;;  %p6773_p3 = scmp.lt.u32.totalorder %s6766_s8, %s9934_s18 }
 0x136   : > { %p6769_p0 = pnand %p6767_p13, %p7256_p8 }
 0x138   : > { %p6770_p1 = pneg %p6769_p0 }
 0x13a   : > { %p6775_p2 = pnand %p6773_p3, %p6770_p1 }
 0x13c   : > { %6778 = shalt.err (!%p6775_p2)
}
 0x13d   : > { %s6779_s19 = scalar_lea.vmem %s7428_s3, 2048  ;;  %p6787_p10 = scmp.lt.s32.totalorder %s7428_s3, %s7428_s3 }
 0x13e   : > { %p6780_p5 = scmp.ne.s32.totalorder %s7428_s3, %s6779_s19  ;;  %p6788_p11 = scmp.lt.s32.totalorder %s6779_s19, %s6779_s19 }
 0x140   : > { %p6782_p7 = pnand %p6780_p5, %p7256_p8  ;;  %p6789_p12 = por %p6788_p11, %p6787_p10 }
 0x142   : > { %p6783_p9 = pneg %p6782_p7 }
 0x144   : > { %p6790_p4 = pnand %p6789_p12, %p6783_p9 }
 0x146   : > { %6793 = shalt.err (!%p6790_p4)
}
 0x147   : > { %5854 = dma.hbm_to_vmem [thread:$0]  (!%p7240_p6), %s9934_s18, 2048, %s7428_s3, [#allocation21], %s9933_s7, %s9933_s7, %s9932_s25  }
 0x148   : > { %s9862_s9 = sadd.s32 4294967294, %s7040_s30   ;;  %s7479_s4 = sadd.s32 1, %s7040_s30  }
 0x149   : > { %s60_s5 = ssub.s32 %s7040_s30, %s7479_s4  ;;  %s63_s17 = sadd.s32 1, %s7036_s6 }
 0x14a   : > { %p61_p8 = scmp.eq.s32.totalorder %s60_s5, 0  ;;  %p70_p13 = scmp.ne.s32.totalorder %s7036_s6, %s7032_s2 }
 0x14b   : > { %p71_p0 = scmp.eq.s32.totalorder %s7040_s30, 0  ;;  %p76_p1 = scmp.ne.s32.totalorder %s7032_s2, %s7028_s29 }
 0x14c   : > { %s7490_s28 = scalar_select %p61_p8, %s7036_s6, %s63_s17  }
 0x14d   : > { %p7492_p3 = por %p71_p0, %p70_p13  ;;  %p9936_p2 = scmp.eq.s32.totalorder %s7222_s26, 0 }
 0x14e   : > { %p546_p5 = scmp.eq.s32.totalorder %s7222_s26, 1  ;;  %p552_p7 = scmp.eq.s32.totalorder %s9862_s9, 1 }
 0x14f   : > { %p7498_p6 = por %p9936_p2, %p76_p1  ;;  %p5885_p9 = scmp.lt.s32.totalorder %s7040_s30, 2 }
 0x150   : > { %s800_s25 = sand.u32 1, %s7036_s6   ;;  %p7507_p10 = por %p546_p5, %p70_p13 }
 0x151   : > { %p7511_p11 = por %p552_p7, %p76_p1  ;;  %s7515_s23 = sshll.u32 %s800_s25, 8 }
 0x152   : > { %s9938_s7 = scalar_select %p7507_p10, 1, 0 }
 0x153   : > { %s9939_s11 = scalar_select %p7511_p11, 1, 0 }
 0x154   : > { %s9863_s21 = sshll.u32 %s7040_s30, 12  ;;  %s9940_s24 = sld [smem:[#allocation92_spill]] }
 0x155   : > { %s804_s5 = scalar_lea.vmem [#allocation2], %s7515_s23  ;;  %p7530_p12 = pnand %p5885_p9, %p7492_p3 }
 0x156   : > { %s812_s17 = sshll.u32 %s804_s5, 4  ;;  %s7534_s10 = scalar_lea.sflag [#allocation3], %s800_s25  ;;  %s7526_s17 = int_to_ptr.vmem [resolvable:$true] %s812_s17 }
 0x157   : > { %p6796_p8 = pneg %p7530_p12 }
 0x15a   : > { %s7523_s0 = scalar_lea.hbm %s9940_s24, %s9863_s21  ;;  %s6799_s8 = scalar_lea.hbm %s9940_s24, 8192 }
 0x15b   : > { %s6794_s27 = scalar_lea.hbm %s7523_s0, 4096  ;;  %p6800_p1 = scmp.lt.u32.totalorder %s7523_s0, %s9940_s24 }
 0x15c   : > { %p6795_p4 = scmp.ne.s32.totalorder %s7523_s0, %s6794_s27  ;;  %p6801_p3 = scmp.lt.u32.totalorder %s6799_s8, %s6794_s27 }
 0x15d   : > { %p6803_p5 = scmp.lt.u32.totalorder %s6794_s27, %s7523_s0 }
 0x15e   : > { %p6797_p13 = pnand %p6796_p8, %p6795_p4  ;;  %p6802_p2 = por %p6801_p3, %p6800_p1 }
 0x160   : > { %p6798_p0 = pneg %p6797_p13  ;;  %p6804_p7 = por %p6803_p5, %p6802_p2 }
 0x162   : > { %p6805_p9 = pnand %p6804_p7, %p6798_p0 }
 0x164   : > { %6808 = shalt.err (!%p6805_p9)
}
 0x165   : > { %s6809_s25 = scalar_lea.vmem %s7526_s17, 4096  ;;  %s7056_s19 = smov [#allocation2]  }
 0x166   : > { %p6810_p4 = scmp.ne.s32.totalorder %s7526_s17, %s6809_s25  ;;  %s6814_s5 = sshll.u32 %s7056_s19, 4  ;;  %s6815_s5 = int_to_ptr.vmem [resolvable:$false] %s6814_s5 }
 0x167   : > { %s6816_s13 = scalar_lea.vmem %s6815_s5, 8192  ;;  %p6817_p10 = scmp.lt.s32.totalorder %s7526_s17, %s6815_s5 }
 0x168   : > { %p6812_p13 = pnand %p6810_p4, %p6796_p8  ;;  %p6818_p1 = scmp.lt.s32.totalorder %s6816_s13, %s6809_s25 }
 0x16a   : > { %p6813_p11 = pneg %p6812_p13  ;;  %p6819_p3 = por %p6818_p1, %p6817_p10 }
 0x16c   : > { %p6820_p2 = pnand %p6819_p3, %p6813_p11 }
 0x16e   : > { %6823 = shalt.err (!%p6820_p2)
}
 0x16f   : > { %s7057_s21 = smov 256   ;;  %s7058_s27 = smov 16  }
 0x170   : > { %5858 = dma.hbm_to_vmem [thread:$0]  (!%p7530_p12), %s7523_s0, 4096, %s7526_s17, %s7534_s10, %s7057_s21, %s7057_s21, %s7058_s27  }
 0x171   : > { %s9942_s8 = sshll.u32 %s7040_s30, 12  ;;  %s9943_s5 = sld [smem:[#allocation93_spill]] }
 0x172   : > { %s826_s14 = scalar_lea.vmem [#allocation5], %s7515_s23  ;;  %s822_s16 = sand.u32 1, %s7040_s30  }
 0x173   : > { %s834_s15 = sshll.u32 %s826_s14, 4  ;;  %s7576_s18 = scalar_lea.sflag [#allocation6], %s822_s16  ;;  %s7573_s15 = int_to_ptr.vmem [resolvable:$true] %s834_s15 }
 0x177   : > { %s7570_s13 = scalar_lea.hbm %s9943_s5, %s9942_s8  ;;  %s6829_s17 = scalar_lea.hbm %s9943_s5, 8192 }
 0x178   : > { %s6824_s22 = scalar_lea.hbm %s7570_s13, 4096  ;;  %p6830_p5 = scmp.lt.u32.totalorder %s7570_s13, %s9943_s5 }
 0x179   : > { %p6825_p10 = scmp.ne.s32.totalorder %s7570_s13, %s6824_s22  ;;  %p6831_p7 = scmp.lt.u32.totalorder %s6829_s17, %s6824_s22 }
 0x17a   : > { %p6833_p4 = scmp.lt.u32.totalorder %s6824_s22, %s7570_s13 }
 0x17b   : > { %p6827_p11 = pnand %p6825_p10, %p6796_p8  ;;  %p6832_p9 = por %p6831_p7, %p6830_p5 }
 0x17d   : > { %p6828_p0 = pneg %p6827_p11  ;;  %p6834_p13 = por %p6833_p4, %p6832_p9 }
 0x17f   : > { %p6835_p1 = pnand %p6834_p13, %p6828_p0 }
 0x181   : > { %6838 = shalt.err (!%p6835_p1)
}
 0x182   : > { %s6839_s14 = scalar_lea.vmem %s7573_s15, 4096  ;;  %s7059_s16 = smov [#allocation5]  }
 0x183   : > { %p6840_p3 = scmp.ne.s32.totalorder %s7573_s15, %s6839_s14  ;;  %s6844_s23 = sshll.u32 %s7059_s16, 4  ;;  %s6845_s23 = int_to_ptr.vmem [resolvable:$false] %s6844_s23 }
 0x184   : > { %s6846_s19 = scalar_lea.vmem %s6845_s23, 8192  ;;  %p6847_p11 = scmp.lt.s32.totalorder %s7573_s15, %s6845_s23 }
 0x185   : > { %p6842_p2 = pnand %p6840_p3, %p6796_p8  ;;  %p6848_p5 = scmp.lt.s32.totalorder %s6846_s19, %s6839_s14 }
 0x187   : > { %p6843_p10 = pneg %p6842_p2  ;;  %p6849_p7 = por %p6848_p5, %p6847_p11 }
 0x189   : > { %p6850_p9 = pnand %p6849_p7, %p6843_p10 }
 0x18b   : > { %6853 = shalt.err (!%p6850_p9)
}
 0x18c   : > { %5861 = dma.hbm_to_vmem [thread:$0]  (!%p7530_p12), %s7570_s13, 4096, %s7573_s15, %s7576_s18, %s7057_s21, %s7057_s21, %s7058_s27  }
 0x18d   : > { %p9944_p8 = scmp.ne.s32.totalorder %s9920_s1, 0 }
 0x18f   : > { %846 = sbr.rel (%p9944_p8) target bundleno = 2904 (0xb58), region = 108 }
 0x196   : > { %s7608_s22 = sand.u32 1, %s7032_s2  }
 0x197   : > { %s7611_s10 = sshll.u32 %s7608_s22, 8  ;;  %s849_s9 = scalar_lea.sflag [#allocation3], %s7608_s22 }
 0x198   : > { %s7615_s0 = scalar_lea.vmem [#allocation2], %s7611_s10 }
 0x199   : > { %6983 = dma.done.wait (%p7498_p6), %s849_s9, 4096  }
 0x19a   : > { %6985 = vsyncadd (%p7498_p6), %s849_s9, 4294963200  ;;  %s9889_s18 = sand.u32 1, %s7222_s26   ;;  %s7625_s15 = scalar_lea.vmem [#allocation5], %s7611_s10 }
 0x19b   : > { %s858_s1 = scalar_lea.sflag [#allocation6], %s9889_s18 }
 0x19c   : > { %6987 = dma.done.wait (%p7498_p6), %s858_s1, 4096  }
 0x19d   : > { %6989 = vsyncadd (%p7498_p6), %s858_s1, 4294963200  ;;  %p9945_p12 = scmp.eq.s32.totalorder %s7222_s26, 0 }
 0x19f   : > { %6991 = dma.done.wait (%p9945_p12), [#allocation6], 16   ;;  %p9946_p0 = pmov %p9945_p12 }
 0x1a1   : > { %6993 = vsyncadd (%p9946_p0), [#allocation6], 4294967280  ;;  %p9947_p4 = pmov %p9946_p0 }
 0x1a2   : > { %p9948_p13 = pmov %p9946_p0 }
 0x1a3   : > { %6995 = dma.done.wait (%p9947_p4), [#allocation9], 144  }
 0x1a4   : > { %6997 = vsyncadd (%p9948_p13), [#allocation9], 4294967152  ;;  %p9949_p1 = pmov %p9946_p0 }
 0x1a5   : > { %p9950_p3 = pmov %p9946_p0 }
 0x1a6   : > { %6999 = dma.done.wait (%p9949_p1), [#allocation12], 528  }
 0x1a7   : > { %7001 = vsyncadd (%p9950_p3), [#allocation12], 4294966768  ;;  %p9951_p6 = pmov %p9946_p0 }
 0x1a8   : > { %p9952_p2 = pmov %p9946_p0 }
 0x1a9   : > { %7003 = dma.done.wait (%p9951_p6), [#allocation15], 32  }
 0x1aa   : > { %7005 = vsyncadd (%p9952_p2), [#allocation15], 4294967264  ;;  %p9953_p10 = pmov %p9946_p0 }
 0x1ab   : > { %p9954_p11 = pmov %p9946_p0 }
 0x1ac   : > { %7007 = dma.done.wait (%p9953_p10), [#allocation18], 4096  }
 0x1ad   : > { %7009 = vsyncadd (%p9954_p11), [#allocation18], 4294963200  ;;  %p9955_p5 = pmov %p9946_p0 }
 0x1ae   : > { %p9956_p7 = pmov %p9946_p0 }
 0x1af   : > { %7011 = dma.done.wait (%p9955_p5), [#allocation21], 2048  }
 0x1b0   : > { %7013 = vsyncadd (%p9956_p7), [#allocation21], 4294965248  ;;  %s9957_s27 = sld [smem:[#allocation94_spill]]  ;;  %v996_v11 = vld [vmem:[%s7615_s0 + $0x8] sm:$0xff]  ;;  %v998_v12 = vld [vmem:[%s7615_s0 + $0x18] sm:$0xff]  ;;  %s9958_s9 = sld [smem:[#allocation96_spill]] }
 0x1b1   : > { %v1060_v13 = vpack.c.bf16 %v998_v12, %v996_v11  ;;  %v995_v19 = vld [vmem:[%s7615_s0] sm:$0xff]  ;;  %v997_v20 = vld [vmem:[%s7615_s0 + $0x10] sm:$0xff]  ;;  %v1000_v21 = vld [vmem:[%s7615_s0 + $0x28] sm:$0xff]  ;;  %s9960_s25 = sld [smem:[#allocation98_spill]]  ;;  %vm1754_vm0 = vcmask 523264   ;;  %vm1987_vm1 = vcmask 130048  }
 0x1b2   : > { %v1002_v22 = vld [vmem:[%s7615_s0 + $0x38] sm:$0xff]  ;;  %v1059_v23 = vpack.c.bf16 %v997_v20, %v995_v19  ;;  %v999_v25 = vld [vmem:[%s7615_s0 + $0x20] sm:$0xff]  ;;  %v1001_v26 = vld [vmem:[%s7615_s0 + $0x30] sm:$0xff]  ;;  %s5176_s3 = sshll.u32 %s7608_s22, 7  ;;  %s9977_s12 = sld [smem:[#allocation104_spill]] }
 0x1b3   : > { %1258 = vmatprep.mubr.bf16.mxu0 %v1060_v13  ;;  %v1062_v24 = vpack.c.bf16 %v1002_v22, %v1000_v21  ;;  %v1004_v27 = vld [vmem:[%s7615_s0 + $0x48] sm:$0xff]  ;;  %v1006_v28 = vld [vmem:[%s7615_s0 + $0x58] sm:$0xff]  ;;  %v1061_v29 = vpack.c.bf16 %v1001_v26, %v999_v25  ;;  %v1003_v34 = vld [vmem:[%s7615_s0 + $0x40] sm:$0xff]  ;;  %s7897_s21 = scalar_lea.vmem [#allocation26], %s5176_s3  ;;  %s9978_s20 = sld [smem:[#allocation112_spill]] }
 0x1b4   : > { %v1064_v31 = vpack.c.bf16 %v1006_v28, %v1004_v27  ;;  %v1005_v35 = vld [vmem:[%s7615_s0 + $0x50] sm:$0xff]  ;;  %v1008_v36 = vld [vmem:[%s7615_s0 + $0x68] sm:$0xff]  ;;  %v1010_v37 = vld [vmem:[%s7615_s0 + $0x78] sm:$0xff]  ;;  %s9980_s1 = sld [smem:[#allocation107_spill]]  ;;  %s8239_s17 = scalar_lea.vmem [#allocation22], %s7611_s10 }
 0x1b5   : > { %v1063_v38 = vpack.c.bf16 %v1005_v35, %v1003_v34  ;;  %v1066_v39 = vpack.c.bf16 %v1010_v37, %v1008_v36  ;;  %v1007_v40 = vld [vmem:[%s7615_s0 + $0x60] sm:$0xff]  ;;  %v1009_v41 = vld [vmem:[%s7615_s0 + $0x70] sm:$0xff]  ;;  %v1012_v42 = vld [vmem:[%s7615_s0 + $0x88] sm:$0xff]  ;;  %s8405_s8 = scalar_lea.vmem [#allocation23], %s7611_s10  ;;  %s10073_s16 = sld [smem:[#allocation111_spill]] }
 0x1b6   : > { %v5952_v0 = vld [vmem:[%s9957_s27 + $0x40] sm:$0xff]   ;;  %v5954_v2 = vld [vmem:[%s9957_s27 + $0x48] sm:$0xff]   ;;  %v5956_v4 = vld [vmem:[%s9957_s27 + $0x50] sm:$0xff]   ;;  %v1065_v44 = vpack.c.bf16 %v1009_v41, %v1007_v40  ;;  %s9317_s3 = scalar_lea.vmem [#allocation25], %s7611_s10  ;;  %s9887_s10 = smov 16  }
 0x1b7   : > { %v5953_v1 = vld [vmem:[%s9957_s27] sm:$0xff]   ;;  %5390 = vmatprep.subr.bf16.mxu0 %v5952_v0  ;;  %v5955_v3 = vld [vmem:[%s9957_s27 + $0x8] sm:$0xff]   ;;  %v5957_v5 = vld [vmem:[%s9957_s27 + $0x10] sm:$0xff]   ;;  %s9885_s13 = smov 32   ;;  %s4822_s19 = sshll.u32 %s8405_s8, 4  ;;  %s9619_s19 = int_to_ptr.vmem [resolvable:$true] %s4822_s19 }
 0x1b8   : > { %5391 = vmatpush3.bf16.msra.mxu0 %v5953_v1  ;;  %v5958_v6 = vld [vmem:[%s9957_s27 + $0x58] sm:$0xff]   ;;  %v5960_v8 = vld [vmem:[%s9957_s27 + $0x60] sm:$0xff]   ;;  %v5962_v10 = vld [vmem:[%s9957_s27 + $0x68] sm:$0xff]   ;;  %s10136_s5 = sand.u32 1, %s7222_s26   ;;  %p10137_p8 = scmp.ne.s32.totalorder %s9938_s7, 0 }
 0x1b9   : > { %5392 = vmatprep.subr.bf16.mxu0 %v5954_v2  ;;  %v5959_v7 = vld [vmem:[%s9957_s27 + $0x18] sm:$0xff]   ;;  %v5961_v9 = vld [vmem:[%s9957_s27 + $0x20] sm:$0xff]   ;;  %v5963_v14 = vld [vmem:[%s9957_s27 + $0x28] sm:$0xff]  }
 0x1ba   : > { %v5964_v15 = vld [vmem:[%s9957_s27 + $0x70] sm:$0xff]   ;;  %v5966_v17 = vld [vmem:[%s9957_s27 + $0x78] sm:$0xff]   ;;  %v5968_v30 = vld [vmem:[%s9958_s9] sm:$0xff]  }
 0x1bb   : > { %v5965_v16 = vld [vmem:[%s9957_s27 + $0x30] sm:$0xff]   ;;  %v5967_v18 = vld [vmem:[%s9957_s27 + $0x38] sm:$0xff]   ;;  %v5969_v32 = vld [vmem:[%s9958_s9 + $0x8] sm:$0xff]   ;;  %5592 = vmatprep.subr.bf16.mxu1 %v5968_v30 }
 0x1bc   : > { %5393 = vmatpush3.bf16.msra.mxu0 %v5955_v3  ;;  %v5970_v33 = vld [vmem:[%s9958_s9 + $0x10] sm:$0xff]   ;;  %5593 = vmatpush3.bf16.msra.mxu1 %v5968_v30  ;;  %v1014_v43 = vld [vmem:[%s7615_s0 + $0x98] sm:$0xff]  ;;  %v1011_v46 = vld [vmem:[%s7615_s0 + $0x80] sm:$0xff] }
 0x1bd   : > { %5394 = vmatprep.subr.bf16.mxu0 %v5956_v4  ;;  %5594 = vmatprep.subr.bf16.mxu1 %v5969_v32  ;;  %v1068_v45 = vpack.c.bf16 %v1014_v43, %v1012_v42  ;;  %v1013_v47 = vld [vmem:[%s7615_s0 + $0x90] sm:$0xff]  ;;  %v1016_v48 = vld [vmem:[%s7615_s0 + $0xa8] sm:$0xff]  ;;  %v1018_v49 = vld [vmem:[%s7615_s0 + $0xb8] sm:$0xff] }
 0x1be   : > { %v1067_v50 = vpack.c.bf16 %v1013_v47, %v1011_v46  ;;  %v1070_v51 = vpack.c.bf16 %v1018_v49, %v1016_v48  ;;  %v1015_v52 = vld [vmem:[%s7615_s0 + $0xa0] sm:$0xff]  ;;  %v1017_v53 = vld [vmem:[%s7615_s0 + $0xb0] sm:$0xff]  ;;  %v1020_v54 = vld [vmem:[%s7615_s0 + $0xc8] sm:$0xff] }
 0x1bf   : > { %v1022_v55 = vld [vmem:[%s7615_s0 + $0xd8] sm:$0xff]  ;;  %v1069_v56 = vpack.c.bf16 %v1017_v53, %v1015_v52  ;;  %v1019_v58 = vld [vmem:[%s7615_s0 + $0xc0] sm:$0xff]  ;;  %v1021_v59 = vld [vmem:[%s7615_s0 + $0xd0] sm:$0xff] }
 0x1c0   : > { %5395 = vmatpush3.bf16.msra.mxu0 %v5957_v5  ;;  %5595 = vmatpush3.bf16.msra.mxu1 %v5969_v32  ;;  %v1072_v57 = vpack.c.bf16 %v1022_v55, %v1020_v54  ;;  %v1024_v60 = vld [vmem:[%s7615_s0 + $0xe8] sm:$0xff]  ;;  %v1026_v61 = vld [vmem:[%s7615_s0 + $0xf8] sm:$0xff]  ;;  %v1071_v62 = vpack.c.bf16 %v1021_v59, %v1019_v58  ;;  %v1023_v0 = vld [vmem:[%s7615_s0 + $0xe0] sm:$0xff] }
 0x1c1   : > { %5396 = vmatprep.subr.bf16.mxu0 %v5958_v6  ;;  %5596 = vmatprep.subr.bf16.mxu1 %v5970_v33  ;;  %v1074_v63 = vpack.c.bf16 %v1026_v61, %v1024_v60  ;;  %v1025_v1 = vld [vmem:[%s7615_s0 + $0xf0] sm:$0xff]  ;;  %v1028_v2 = vld [vmem:[%s7625_s15 + $0x8] sm:$0xff]  ;;  %v1030_v3 = vld [vmem:[%s7625_s15 + $0x18] sm:$0xff]  ;;  %s9959_s0 = sld [smem:[#allocation95_spill]] }
 0x1c2   : > { %v1073_v4 = vpack.c.bf16 %v1025_v1, %v1023_v0  ;;  %v1076_v5 = vpack.c.bf16 %v1030_v3, %v1028_v2  ;;  %v1027_v6 = vld [vmem:[%s7625_s15] sm:$0xff]  ;;  %v1033_v13 = vld [vmem:[%s7625_s15 + $0x30] sm:$0xff]  ;;  %v1040_v20 = vld [vmem:[%s7625_s15 + $0x68] sm:$0xff] }
 0x1c3   : > { %v1031_v12 = vld [vmem:[%s7625_s15 + $0x20] sm:$0xff]  ;;  %v1037_v19 = vld [vmem:[%s7625_s15 + $0x50] sm:$0xff]  ;;  %v1042_v21 = vld [vmem:[%s7625_s15 + $0x78] sm:$0xff] }
 0x1c4   : > { %5397 = vmatpush3.bf16.msra.mxu0 %v5959_v7  ;;  %5597 = vmatpush3.bf16.msra.mxu1 %v5970_v33  ;;  %v1029_v7 = vld [vmem:[%s7625_s15 + $0x10] sm:$0xff]  ;;  %v5971_v26 = vld [vmem:[%s9958_s9 + $0x18] sm:$0xff]   ;;  %v1044_v27 = vld [vmem:[%s7625_s15 + $0x88] sm:$0xff] }
 0x1c5   : > { %5398 = vmatprep.subr.bf16.mxu0 %v5960_v8  ;;  %v1032_v8 = vld [vmem:[%s7625_s15 + $0x28] sm:$0xff]  ;;  %v1041_v25 = vld [vmem:[%s7625_s15 + $0x70] sm:$0xff]  ;;  %v1046_v28 = vld [vmem:[%s7625_s15 + $0x98] sm:$0xff]  ;;  %5598 = vmatprep.subr.bf16.mxu1 %v5971_v26 }
 0x1c6   : > { %v1084_v30 = vpack.c.bf16 %v1046_v28, %v1044_v27  ;;  %v1043_v32 = vld [vmem:[%s7625_s15 + $0x80] sm:$0xff]  ;;  %v1045_v33 = vld [vmem:[%s7625_s15 + $0x90] sm:$0xff]  ;;  %v5973_v34 = vld [vmem:[%s9958_s9 + $0x28] sm:$0xff]  }
 0x1c7   : > { %v1048_v35 = vld [vmem:[%s7625_s15 + $0xa8] sm:$0xff]  ;;  %v1050_v36 = vld [vmem:[%s7625_s15 + $0xb8] sm:$0xff]  ;;  %v1083_v37 = vpack.c.bf16 %v1045_v33, %v1043_v32  ;;  %v1047_v40 = vld [vmem:[%s7625_s15 + $0xa0] sm:$0xff] }
 0x1c8   : > { %5399 = vmatpush3.bf16.msra.mxu0 %v5961_v9  ;;  %v1034_v9 = vld [vmem:[%s7625_s15 + $0x38] sm:$0xff]  ;;  %5599 = vmatpush3.bf16.msra.mxu1 %v5971_v26  ;;  %v1049_v41 = vld [vmem:[%s7625_s15 + $0xb0] sm:$0xff]  ;;  %v1052_v43 = vld [vmem:[%s7625_s15 + $0xc8] sm:$0xff] }
 0x1c9   : > { %5400 = vmatprep.subr.bf16.mxu0 %v5962_v10  ;;  %v1075_v10 = vpack.c.bf16 %v1029_v7, %v1027_v6  ;;  %v1078_v11 = vpack.c.bf16 %v1034_v9, %v1032_v8  ;;  %v5975_v42 = vld [vmem:[%s9958_s9 + $0x38] sm:$0xff]   ;;  %v1051_v47 = vld [vmem:[%s7625_s15 + $0xc0] sm:$0xff]  ;;  %v1053_v48 = vld [vmem:[%s7625_s15 + $0xd0] sm:$0xff] }
 0x1ca   : > { %v1056_v49 = vld [vmem:[%s7625_s15 + $0xe8] sm:$0xff]  ;;  %v1055_v53 = vld [vmem:[%s7625_s15 + $0xe0] sm:$0xff]  ;;  %v1057_v54 = vld [vmem:[%s7625_s15 + $0xf0] sm:$0xff] }
 0x1cb   : > { %v1089_v55 = vpack.c.bf16 %v1057_v54, %v1055_v53  ;;  %v7794_v58 = vld [vmem:[%s9959_s0] ss:$0 sm:$0xff]  ;;  %s9981_s0 = sld [smem:[#allocation109_spill]] }
 0x1cc   : > { %5401 = vmatpush3.bf16.msra.mxu0 %v5963_v14  ;;  %v1036_v14 = vld [vmem:[%s7625_s15 + $0x48] sm:$0xff]  ;;  %v5976_v0 = vld [vmem:[%s9960_s25] sm:$0xff]  }
 0x1cd   : > { %5402 = vmatprep.subr.bf16.mxu0 %v5964_v15  ;;  %v1038_v15 = vld [vmem:[%s7625_s15 + $0x58] sm:$0xff] }
 0x1d0   : > { %5403 = vmatpush3.bf16.msra.mxu0 %v5965_v16  ;;  %v1077_v16 = vpack.c.bf16 %v1033_v13, %v1031_v12 }
 0x1d1   : > { %5404 = vmatprep.subr.bf16.mxu0 %v5966_v17  ;;  %v1080_v17 = vpack.c.bf16 %v1038_v15, %v1036_v14 }
 0x1d4   : > { %5405 = vmatpush3.bf16.msra.mxu0 %v5967_v18  ;;  %v1035_v18 = vld [vmem:[%s7625_s15 + $0x40] sm:$0xff] }
 0x1d5   : > { %v1079_v22 = vpack.c.bf16 %v1037_v19, %v1035_v18 }
 0x1d7   : > { %1259 = vmatmul.mubr.bf16.vlgmr.msra.gmra.mrb[0].mxu0 %v1059_v23  ;;  %v1082_v23 = vpack.c.bf16 %v1042_v21, %v1040_v20  ;;  %v5977_v20 = vld [vmem:[%s9960_s25 + $0x8] sm:$0xff]  }
 0x1d8   : > { %1266 = vmatprep.mubr.bf16.mxu0 %v1062_v24  ;;  %v1039_v24 = vld [vmem:[%s7625_s15 + $0x60] sm:$0xff] }
 0x1df   : > { %1267 = vmatmul.mubr.bf16.gmra.mrb[4].mxu0 %v1061_v29  ;;  %v1081_v29 = vpack.c.bf16 %v1041_v25, %v1039_v24 }
 0x1e0   : > { %1274 = vmatprep.mubr.bf16.mxu0 %v1064_v31  ;;  %v5972_v31 = vld [vmem:[%s9958_s9 + $0x20] sm:$0xff]  }
 0x1e1   : > { %5600 = vmatprep.subr.bf16.mxu1 %v5972_v31 }
 0x1e2   : > { %5601 = vmatpush3.bf16.msra.mxu1 %v5972_v31 }
 0x1e3   : > { %5602 = vmatprep.subr.bf16.mxu1 %v5973_v34 }
 0x1e6   : > { %5603 = vmatpush3.bf16.msra.mxu1 %v5973_v34 }
 0x1e7   : > { %1275 = vmatmul.mubr.bf16.gmra.mrb[8].mxu0 %v1063_v38  ;;  %v1086_v38 = vpack.c.bf16 %v1050_v36, %v1048_v35 }
 0x1e8   : > { %1282 = vmatprep.mubr.bf16.mxu0 %v1066_v39  ;;  %v5974_v39 = vld [vmem:[%s9958_s9 + $0x30] sm:$0xff]   ;;  %s9625_s9 = scalar_lea.sflag [#allocation24], %s10136_s5 }
 0x1e9   : > { %5604 = vmatprep.subr.bf16.mxu1 %v5974_v39 }
 0x1ea   : > { %5605 = vmatpush3.bf16.msra.mxu1 %v5974_v39 }
 0x1eb   : > { %5606 = vmatprep.subr.bf16.mxu1 %v5975_v42 }
 0x1ee   : > { %5607 = vmatpush3.bf16.msra.mxu1 %v5975_v42 }
 0x1ef   : > { %1283 = vmatmul.mubr.bf16.gmra.mrb[12].mxu0 %v1065_v44  ;;  %v1054_v44 = vld [vmem:[%s7625_s15 + $0xd8] sm:$0xff]  ;;  %5640 = vmatprep.subr.bf16.mxu1 %v5976_v0 }
 0x1f0   : > { %1290 = vmatprep.mubr.bf16.mxu0 %v1068_v45  ;;  %v1085_v45 = vpack.c.bf16 %v1049_v41, %v1047_v40  ;;  %v1088_v46 = vpack.c.bf16 %v1054_v44, %v1052_v43 }
 0x1f7   : > { %1291 = vmatmul.mubr.bf16.gmra.mrb[16].mxu0 %v1067_v50  ;;  %v1058_v50 = vld [vmem:[%s7625_s15 + $0xf8] sm:$0xff]  ;;  %s6854_s15 = scalar_lea.vmem %s9619_s19, 4096 }
 0x1f8   : > { %1298 = vmatprep.mubr.bf16.mxu0 %v1070_v51  ;;  %v1087_v51 = vpack.c.bf16 %v1053_v48, %v1051_v47  ;;  %v1090_v52 = vpack.c.bf16 %v1058_v50, %v1056_v49  ;;  %p6855_p9 = scmp.ne.s32.totalorder %s9619_s19, %s6854_s15 }
 0x1fa   : > { %p6856_p12 = pnand %p6855_p9, %p10137_p8 }
 0x1fc   : > { %p6857_p0 = pneg %p6856_p12 }
 0x1ff   : > { %1299 = vmatmul.mubr.bf16.gmra.mrb[20].mxu0 %v1069_v56 }
 0x200   : > { %1306 = vmatprep.mubr.bf16.mxu0 %v1072_v57 }
 0x207   : > { %1307 = vmatmul.mubr.bf16.gmra.mrb[24].mxu0 %v1071_v62 }
 0x208   : > { %1314 = vmatprep.mubr.bf16.mxu0 %v1074_v63 }
 0x20f   : > { %1315 = vmatmul.mubr.bf16.gmra.mrb[28].mxu0 %v1073_v4 }
 0x210   : > { %1322 = vmatprep.mubr.bf16.mxu0 %v1076_v5 }
 0x217   : > { %1323 = vmatmul.mubr.bf16.gmra.mrb[32].mxu0 %v1075_v10 }
 0x218   : > { %1330 = vmatprep.mubr.bf16.mxu0 %v1078_v11 }
 0x21f   : > { %1331 = vmatmul.mubr.bf16.gmra.mrb[36].mxu0 %v1077_v16 }
 0x220   : > { %1338 = vmatprep.mubr.bf16.mxu0 %v1080_v17 }
 0x227   : > { %1339 = vmatmul.mubr.bf16.gmra.mrb[40].mxu0 %v1079_v22 }
 0x228   : > { %1346 = vmatprep.mubr.bf16.mxu0 %v1082_v23 }
 0x22f   : > { %1347 = vmatmul.mubr.bf16.gmra.mrb[44].mxu0 %v1081_v29 }
 0x230   : > { %1354 = vmatprep.mubr.bf16.mxu0 %v1084_v30 }
 0x237   : > { %1355 = vmatmul.mubr.bf16.gmra.mrb[48].mxu0 %v1083_v37 }
 0x238   : > { %1362 = vmatprep.mubr.bf16.mxu0 %v1086_v38 }
 0x23f   : > { %1363 = vmatmul.mubr.bf16.gmra.mrb[52].mxu0 %v1085_v45 }
 0x240   : > { %1370 = vmatprep.mubr.bf16.mxu0 %v1088_v46 }
 0x247   : > { %1371 = vmatmul.mubr.bf16.gmra.mrb[56].mxu0 %v1087_v51 }
 0x248   : > { %1378 = vmatprep.mubr.bf16.mxu0 %v1090_v52 }
 0x24f   : > { %1379 = vmatmul.mubr.bf16.gmra.mrb[60].mxu0 %v1089_v55 }
 0x2aa   : > { %v5406_v56 = vpop.f32.mrb[0].mxu0 }
 0x2ab   : > { %v5407_v57 = vpop.f32.mrb[1].mxu0 }
 0x2ac   : > { %v5408_v59 = vadd.f32 %v5407_v57, %v5406_v56  ;;  %v5409_v60 = vpop.f32.mrb[2].mxu0 }
 0x2ad   : > { %v5410_v61 = vpop.f32.mrb[3].mxu0 }
 0x2ae   : > { %v5411_v62 = vadd.f32 %v5410_v61, %v5409_v60  ;;  %v1261_v63 = vadd.f32 %v5408_v59, %v7794_v58 }
 0x2b0   : > { %v1264_v1 = vadd.f32 %v5411_v62, %v7794_v58  ;;  %v1387_v3 = vmax.f32 %v1261_v63, 0.0 }
 0x2b2   : > { %v5412_v2 = vpop.f32.mrb[4].mxu0  ;;  %v1388_v4 = vmax.f32 %v1264_v1, 0.0 }
 0x2b3   : > { %v5413_v5 = vpop.f32.mrb[5].mxu0 }
 0x2b4   : > { %v5414_v6 = vadd.f32 %v5413_v5, %v5412_v2  ;;  %v5415_v7 = vpop.f32.mrb[6].mxu0  ;;  %v1419_v8 = vpack.c.bf16 %v1388_v4, %v1387_v3 }
 0x2b5   : > { %v5416_v9 = vpop.f32.mrb[7].mxu0 }
 0x2b6   : > { %v1269_v10 = vadd.f32 %v5414_v6, %v7794_v58  ;;  %v5417_v11 = vadd.f32 %v5416_v9, %v5415_v7  ;;  %5608 = vmatprep.mubr.bf16.mxu1 %v1419_v8 }
 0x2b8   : > { %v1272_v12 = vadd.f32 %v5417_v11, %v7794_v58  ;;  %v1389_v13 = vmax.f32 %v1269_v10, 0.0 }
 0x2ba   : > { %v1390_v14 = vmax.f32 %v1272_v12, 0.0  ;;  %v5418_v15 = vpop.f32.mrb[8].mxu0 }
 0x2bb   : > { %v5419_v16 = vpop.f32.mrb[9].mxu0 }
 0x2bc   : > { %v5420_v17 = vadd.f32 %v5419_v16, %v5418_v15  ;;  %v5421_v18 = vpop.f32.mrb[10].mxu0  ;;  %v1420_v19 = vpack.c.bf16 %v1390_v14, %v1389_v13 }
 0x2bd   : > { %v5422_v21 = vpop.f32.mrb[11].mxu0 }
 0x2be   : > { %v1277_v22 = vadd.f32 %v5420_v17, %v7794_v58  ;;  %v5423_v23 = vadd.f32 %v5422_v21, %v5421_v18  ;;  %5609 = vmatmul.mubr.bf16.vlgmr.msra.gmra.mrb[0].mxu1 %v1420_v19 }
 0x2bf   : > { %5641 = vmatpush3.bf16.msra.mxu1 %v5976_v0 }
 0x2c0   : > { %v1280_v24 = vadd.f32 %v5423_v23, %v7794_v58  ;;  %5642 = vmatprep.subr.bf16.mxu1 %v5977_v20  ;;  %v1391_v25 = vmax.f32 %v1277_v22, 0.0 }
 0x2c2   : > { %v1392_v26 = vmax.f32 %v1280_v24, 0.0  ;;  %v5424_v27 = vpop.f32.mrb[12].mxu0 }
 0x2c3   : > { %v5425_v28 = vpop.f32.mrb[13].mxu0  ;;  %5643 = vmatpush3.bf16.msra.mxu1 %v5977_v20 }
 0x2c4   : > { %v5426_v29 = vadd.f32 %v5425_v28, %v5424_v27  ;;  %v5427_v30 = vpop.f32.mrb[14].mxu0  ;;  %v1421_v31 = vpack.c.bf16 %v1392_v26, %v1391_v25 }
 0x2c5   : > { %v5428_v32 = vpop.f32.mrb[15].mxu0 }
 0x2c6   : > { %v1285_v33 = vadd.f32 %v5426_v29, %v7794_v58  ;;  %v5429_v34 = vadd.f32 %v5428_v32, %v5427_v30  ;;  %5612 = vmatprep.mubr.bf16.mxu1 %v1421_v31 }
 0x2c8   : > { %v1288_v35 = vadd.f32 %v5429_v34, %v7794_v58  ;;  %v1393_v36 = vmax.f32 %v1285_v33, 0.0 }
 0x2ca   : > { %v1394_v37 = vmax.f32 %v1288_v35, 0.0  ;;  %v5430_v38 = vpop.f32.mrb[16].mxu0 }
 0x2cb   : > { %v5431_v39 = vpop.f32.mrb[17].mxu0 }
 0x2cc   : > { %v5432_v40 = vadd.f32 %v5431_v39, %v5430_v38  ;;  %v5433_v41 = vpop.f32.mrb[18].mxu0  ;;  %v1422_v42 = vpack.c.bf16 %v1394_v37, %v1393_v36 }
 0x2cd   : > { %v5434_v43 = vpop.f32.mrb[19].mxu0 }
 0x2ce   : > { %v1293_v44 = vadd.f32 %v5432_v40, %v7794_v58  ;;  %v5435_v45 = vadd.f32 %v5434_v43, %v5433_v41  ;;  %5613 = vmatmul.mubr.bf16.gmra.mrb[4].mxu1 %v1422_v42 }
 0x2d0   : > { %v1296_v46 = vadd.f32 %v5435_v45, %v7794_v58  ;;  %v1395_v47 = vmax.f32 %v1293_v44, 0.0 }
 0x2d2   : > { %v1396_v48 = vmax.f32 %v1296_v46, 0.0  ;;  %v5436_v49 = vpop.f32.mrb[20].mxu0 }
 0x2d3   : > { %v5437_v50 = vpop.f32.mrb[21].mxu0 }
 0x2d4   : > { %v5438_v51 = vadd.f32 %v5437_v50, %v5436_v49  ;;  %v5439_v52 = vpop.f32.mrb[22].mxu0  ;;  %v1423_v53 = vpack.c.bf16 %v1396_v48, %v1395_v47 }
 0x2d5   : > { %v5440_v54 = vpop.f32.mrb[23].mxu0 }
 0x2d6   : > { %v1301_v55 = vadd.f32 %v5438_v51, %v7794_v58  ;;  %v5441_v56 = vadd.f32 %v5440_v54, %v5439_v52  ;;  %5616 = vmatprep.mubr.bf16.mxu1 %v1423_v53 }
 0x2d8   : > { %v1304_v57 = vadd.f32 %v5441_v56, %v7794_v58  ;;  %v1397_v59 = vmax.f32 %v1301_v55, 0.0 }
 0x2da   : > { %v1398_v60 = vmax.f32 %v1304_v57, 0.0  ;;  %v5442_v61 = vpop.f32.mrb[24].mxu0 }
 0x2db   : > { %v5443_v62 = vpop.f32.mrb[25].mxu0 }
 0x2dc   : > { %v5444_v63 = vadd.f32 %v5443_v62, %v5442_v61  ;;  %v5445_v0 = vpop.f32.mrb[26].mxu0  ;;  %v1424_v1 = vpack.c.bf16 %v1398_v60, %v1397_v59 }
 0x2dd   : > { %v5446_v2 = vpop.f32.mrb[27].mxu0 }
 0x2de   : > { %v1309_v3 = vadd.f32 %v5444_v63, %v7794_v58  ;;  %v5447_v4 = vadd.f32 %v5446_v2, %v5445_v0  ;;  %5617 = vmatmul.mubr.bf16.gmra.mrb[8].mxu1 %v1424_v1 }
 0x2e0   : > { %v1312_v5 = vadd.f32 %v5447_v4, %v7794_v58  ;;  %v1399_v6 = vmax.f32 %v1309_v3, 0.0 }
 0x2e2   : > { %v1400_v7 = vmax.f32 %v1312_v5, 0.0  ;;  %v5448_v8 = vpop.f32.mrb[28].mxu0 }
 0x2e3   : > { %v5449_v9 = vpop.f32.mrb[29].mxu0 }
 0x2e4   : > { %v5450_v10 = vadd.f32 %v5449_v9, %v5448_v8  ;;  %v5451_v11 = vpop.f32.mrb[30].mxu0  ;;  %v1425_v12 = vpack.c.bf16 %v1400_v7, %v1399_v6 }
 0x2e5   : > { %v5452_v13 = vpop.f32.mrb[31].mxu0 }
 0x2e6   : > { %v1317_v14 = vadd.f32 %v5450_v10, %v7794_v58  ;;  %v5453_v15 = vadd.f32 %v5452_v13, %v5451_v11  ;;  %5620 = vmatprep.mubr.bf16.mxu1 %v1425_v12  ;;  %v5978_v12 = vld [vmem:[%s9960_s25 + $0x10] sm:$0xff]  }
 0x2e7   : > { %5644 = vmatprep.subr.bf16.mxu1 %v5978_v12 }
 0x2e8   : > { %v1320_v16 = vadd.f32 %v5453_v15, %v7794_v58  ;;  %v1401_v17 = vmax.f32 %v1317_v14, 0.0  ;;  %5645 = vmatpush3.bf16.msra.mxu1 %v5978_v12 }
 0x2ea   : > { %v1402_v18 = vmax.f32 %v1320_v16, 0.0  ;;  %v5454_v19 = vpop.f32.mrb[32].mxu0 }
 0x2eb   : > { %v5455_v20 = vpop.f32.mrb[33].mxu0 }
 0x2ec   : > { %v5456_v21 = vadd.f32 %v5455_v20, %v5454_v19  ;;  %v5457_v22 = vpop.f32.mrb[34].mxu0  ;;  %v1426_v23 = vpack.c.bf16 %v1402_v18, %v1401_v17  ;;  %v5979_v20 = vld [vmem:[%s9960_s25 + $0x18] sm:$0xff]  }
 0x2ed   : > { %v5458_v24 = vpop.f32.mrb[35].mxu0  ;;  %5646 = vmatprep.subr.bf16.mxu1 %v5979_v20 }
 0x2ee   : > { %v1325_v25 = vadd.f32 %v5456_v21, %v7794_v58  ;;  %v5459_v26 = vadd.f32 %v5458_v24, %v5457_v22  ;;  %5621 = vmatmul.mubr.bf16.gmra.mrb[12].mxu1 %v1426_v23 }
 0x2ef   : > { %5647 = vmatpush3.bf16.msra.mxu1 %v5979_v20 }
 0x2f0   : > { %v1328_v27 = vadd.f32 %v5459_v26, %v7794_v58  ;;  %v1403_v28 = vmax.f32 %v1325_v25, 0.0 }
 0x2f2   : > { %v1404_v29 = vmax.f32 %v1328_v27, 0.0  ;;  %v5460_v30 = vpop.f32.mrb[36].mxu0 }
 0x2f3   : > { %v5461_v31 = vpop.f32.mrb[37].mxu0 }
 0x2f4   : > { %v5462_v32 = vadd.f32 %v5461_v31, %v5460_v30  ;;  %v5463_v33 = vpop.f32.mrb[38].mxu0  ;;  %v1427_v34 = vpack.c.bf16 %v1404_v29, %v1403_v28 }
 0x2f5   : > { %v5464_v35 = vpop.f32.mrb[39].mxu0 }
 0x2f6   : > { %v1333_v36 = vadd.f32 %v5462_v32, %v7794_v58  ;;  %v5465_v37 = vadd.f32 %v5464_v35, %v5463_v33  ;;  %5624 = vmatprep.mubr.bf16.mxu1 %v1427_v34 }
 0x2f8   : > { %v1336_v38 = vadd.f32 %v5465_v37, %v7794_v58  ;;  %v1405_v39 = vmax.f32 %v1333_v36, 0.0 }
 0x2fa   : > { %v1406_v40 = vmax.f32 %v1336_v38, 0.0  ;;  %v5466_v41 = vpop.f32.mrb[40].mxu0 }
 0x2fb   : > { %v5467_v42 = vpop.f32.mrb[41].mxu0 }
 0x2fc   : > { %v5468_v43 = vadd.f32 %v5467_v42, %v5466_v41  ;;  %v5469_v44 = vpop.f32.mrb[42].mxu0  ;;  %v1428_v45 = vpack.c.bf16 %v1406_v40, %v1405_v39 }
 0x2fd   : > { %v5470_v46 = vpop.f32.mrb[43].mxu0 }
 0x2fe   : > { %v1341_v47 = vadd.f32 %v5468_v43, %v7794_v58  ;;  %v5471_v48 = vadd.f32 %v5470_v46, %v5469_v44  ;;  %5625 = vmatmul.mubr.bf16.gmra.mrb[16].mxu1 %v1428_v45 }
 0x300   : > { %v1344_v49 = vadd.f32 %v5471_v48, %v7794_v58  ;;  %v1407_v50 = vmax.f32 %v1341_v47, 0.0  ;;  %v5980_v47 = vld [vmem:[#allocation10] sm:$0xff]   ;;  %v7840_v48 = vld [vmem:[#allocation7] ss:$0 sm:$0xff] }
 0x301   : > { %5680 = vmatprep.subr.bf16.mxu0 %v5980_v47 }
 0x302   : > { %v1408_v51 = vmax.f32 %v1344_v49, 0.0  ;;  %v5472_v52 = vpop.f32.mrb[44].mxu0  ;;  %5681 = vmatpush3.bf16.msra.mxu0 %v5980_v47 }
 0x303   : > { %v5473_v53 = vpop.f32.mrb[45].mxu0 }
 0x304   : > { %v5474_v54 = vadd.f32 %v5473_v53, %v5472_v52  ;;  %v5475_v55 = vpop.f32.mrb[46].mxu0  ;;  %v1429_v56 = vpack.c.bf16 %v1408_v51, %v1407_v50 }
 0x305   : > { %v5476_v57 = vpop.f32.mrb[47].mxu0 }
 0x306   : > { %v1349_v59 = vadd.f32 %v5474_v54, %v7794_v58  ;;  %v5477_v60 = vadd.f32 %v5476_v57, %v5475_v55  ;;  %5628 = vmatprep.mubr.bf16.mxu1 %v1429_v56 }
 0x308   : > { %v1352_v61 = vadd.f32 %v5477_v60, %v7794_v58  ;;  %v1409_v62 = vmax.f32 %v1349_v59, 0.0 }
 0x30a   : > { %v1410_v63 = vmax.f32 %v1352_v61, 0.0  ;;  %v5478_v0 = vpop.f32.mrb[48].mxu0 }
 0x30b   : > { %v5479_v1 = vpop.f32.mrb[49].mxu0 }
 0x30c   : > { %v5480_v2 = vadd.f32 %v5479_v1, %v5478_v0  ;;  %v5481_v3 = vpop.f32.mrb[50].mxu0  ;;  %v1430_v4 = vpack.c.bf16 %v1410_v63, %v1409_v62 }
 0x30d   : > { %v5482_v5 = vpop.f32.mrb[51].mxu0 }
 0x30e   : > { %v1357_v6 = vadd.f32 %v5480_v2, %v7794_v58  ;;  %v5483_v7 = vadd.f32 %v5482_v5, %v5481_v3  ;;  %5629 = vmatmul.mubr.bf16.gmra.mrb[20].mxu1 %v1430_v4 }
 0x310   : > { %v1360_v8 = vadd.f32 %v5483_v7, %v7794_v58  ;;  %v1411_v9 = vmax.f32 %v1357_v6, 0.0 }
 0x312   : > { %v1412_v10 = vmax.f32 %v1360_v8, 0.0  ;;  %v5484_v11 = vpop.f32.mrb[52].mxu0 }
 0x313   : > { %v5485_v13 = vpop.f32.mrb[53].mxu0 }
 0x314   : > { %v5486_v14 = vadd.f32 %v5485_v13, %v5484_v11  ;;  %v5487_v15 = vpop.f32.mrb[54].mxu0  ;;  %v1431_v16 = vpack.c.bf16 %v1412_v10, %v1411_v9 }
 0x315   : > { %v5488_v17 = vpop.f32.mrb[55].mxu0 }
 0x316   : > { %v1365_v18 = vadd.f32 %v5486_v14, %v7794_v58  ;;  %v5489_v19 = vadd.f32 %v5488_v17, %v5487_v15  ;;  %5632 = vmatprep.mubr.bf16.mxu1 %v1431_v16 }
 0x318   : > { %v1368_v21 = vadd.f32 %v5489_v19, %v7794_v58  ;;  %v1413_v22 = vmax.f32 %v1365_v18, 0.0 }
 0x31a   : > { %v1414_v23 = vmax.f32 %v1368_v21, 0.0  ;;  %v5490_v24 = vpop.f32.mrb[56].mxu0 }
 0x31b   : > { %v5491_v25 = vpop.f32.mrb[57].mxu0 }
 0x31c   : > { %v5492_v26 = vadd.f32 %v5491_v25, %v5490_v24  ;;  %v5493_v27 = vpop.f32.mrb[58].mxu0  ;;  %v1432_v28 = vpack.c.bf16 %v1414_v23, %v1413_v22 }
 0x31d   : > { %v5494_v29 = vpop.f32.mrb[59].mxu0 }
 0x31e   : > { %v1373_v30 = vadd.f32 %v5492_v26, %v7794_v58  ;;  %v5495_v31 = vadd.f32 %v5494_v29, %v5493_v27  ;;  %5633 = vmatmul.mubr.bf16.gmra.mrb[24].mxu1 %v1432_v28 }
 0x320   : > { %v1376_v32 = vadd.f32 %v5495_v31, %v7794_v58  ;;  %v1415_v33 = vmax.f32 %v1373_v30, 0.0 }
 0x322   : > { %v1416_v34 = vmax.f32 %v1376_v32, 0.0  ;;  %v5496_v35 = vpop.f32.mrb[60].mxu0 }
 0x323   : > { %v5497_v36 = vpop.f32.mrb[61].mxu0 }
 0x324   : > { %v5498_v37 = vadd.f32 %v5497_v36, %v5496_v35  ;;  %v5499_v38 = vpop.f32.mrb[62].mxu0  ;;  %v1433_v39 = vpack.c.bf16 %v1416_v34, %v1415_v33 }
 0x325   : > { %v5500_v40 = vpop.f32.mrb[63].mxu0 }
 0x326   : > { %v1381_v41 = vadd.f32 %v5498_v37, %v7794_v58  ;;  %v5501_v42 = vadd.f32 %v5500_v40, %v5499_v38  ;;  %5636 = vmatprep.mubr.bf16.mxu1 %v1433_v39 }
 0x328   : > { %v1384_v43 = vadd.f32 %v5501_v42, %v7794_v58  ;;  %v1417_v44 = vmax.f32 %v1381_v41, 0.0 }
 0x32a   : > { %v1418_v45 = vmax.f32 %v1384_v43, 0.0 }
 0x32c   : > { %v1434_v46 = vpack.c.bf16 %v1418_v45, %v1417_v44 }
 0x32e   : > { %5637 = vmatmul.mubr.bf16.gmra.mrb[28].mxu1 %v1434_v46 }
 0x391   : > { %v5610_v49 = vpop.f32.mrb[0].mxu1 }
 0x392   : > { %v1549_v50 = vadd.f32 %v5610_v49, %v7840_v48  ;;  %v1540_v51 = vpop.f32.mrb[1].mxu1 }
 0x393   : > { %v1541_v52 = vadd.f32 %v7840_v48, %v1540_v51  ;;  %v5611_v53 = vpop.f32.mrb[2].mxu1 }
 0x394   : > { %v1552_v54 = vadd.f32 %v5611_v53, %v7840_v48  ;;  %v1543_v55 = vpop.f32.mrb[3].mxu1  ;;  %v1669_v56 = vmax.f32 %v1549_v50, 0.0 }
 0x395   : > { %v1544_v58 = vadd.f32 %v7840_v48, %v1543_v55  ;;  %v1667_v59 = vmax.f32 %v1541_v52, 0.0 }
 0x396   : > { %v1670_v57 = vmax.f32 %v1552_v54, 0.0 }
 0x397   : > { %v1668_v60 = vmax.f32 %v1544_v58, 0.0 }
 0x398   : > { %v1700_v61 = vpack.c.bf16 %v1670_v57, %v1669_v56 }
 0x399   : > { %v1699_v62 = vpack.c.bf16 %v1668_v60, %v1667_v59 }
 0x39b   : > { %5648 = vmatprep.mubr.msk.bf16.mxu1 %vm1754_vm0, %v1699_v62 }
 0x39c   : > { %5649 = vmatmul.mubr.msk.bf16.vlgmr.msra.gmra.mrb[32].mxu1 %vm1754_vm0, %v1700_v61 }
 0x3a1   : > { %v5614_v63 = vpop.f32.mrb[4].mxu1 }
 0x3a2   : > { %v1565_v0 = vadd.f32 %v5614_v63, %v7840_v48  ;;  %v1556_v1 = vpop.f32.mrb[5].mxu1 }
 0x3a3   : > { %v1557_v2 = vadd.f32 %v7840_v48, %v1556_v1  ;;  %v5615_v3 = vpop.f32.mrb[6].mxu1 }
 0x3a4   : > { %v1568_v4 = vadd.f32 %v5615_v3, %v7840_v48  ;;  %v1559_v5 = vpop.f32.mrb[7].mxu1  ;;  %v1673_v7 = vmax.f32 %v1565_v0, 0.0 }
 0x3a5   : > { %v1560_v6 = vadd.f32 %v7840_v48, %v1559_v5  ;;  %v1671_v9 = vmax.f32 %v1557_v2, 0.0 }
 0x3a6   : > { %v1674_v8 = vmax.f32 %v1568_v4, 0.0 }
 0x3a7   : > { %v1672_v10 = vmax.f32 %v1560_v6, 0.0 }
 0x3a8   : > { %v1702_v11 = vpack.c.bf16 %v1674_v8, %v1673_v7 }
 0x3a9   : > { %v1701_v12 = vpack.c.bf16 %v1672_v10, %v1671_v9 }
 0x3ab   : > { %5652 = vmatprep.mubr.msk.bf16.mxu1 %vm1754_vm0, %v1701_v12 }
 0x3ac   : > { %5653 = vmatmul.mubr.msk.bf16.gmra.mrb[36].mxu1 %vm1754_vm0, %v1702_v11 }
 0x3b1   : > { %v5618_v13 = vpop.f32.mrb[8].mxu1 }
 0x3b2   : > { %v1581_v14 = vadd.f32 %v5618_v13, %v7840_v48  ;;  %v1572_v15 = vpop.f32.mrb[9].mxu1 }
 0x3b3   : > { %v1573_v16 = vadd.f32 %v7840_v48, %v1572_v15  ;;  %v5619_v17 = vpop.f32.mrb[10].mxu1 }
 0x3b4   : > { %v1584_v18 = vadd.f32 %v5619_v17, %v7840_v48  ;;  %v1575_v19 = vpop.f32.mrb[11].mxu1  ;;  %v1677_v21 = vmax.f32 %v1581_v14, 0.0 }
 0x3b5   : > { %v1576_v20 = vadd.f32 %v7840_v48, %v1575_v19  ;;  %v1675_v23 = vmax.f32 %v1573_v16, 0.0 }
 0x3b6   : > { %v1678_v22 = vmax.f32 %v1584_v18, 0.0 }
 0x3b7   : > { %v1676_v24 = vmax.f32 %v1576_v20, 0.0 }
 0x3b8   : > { %v1704_v25 = vpack.c.bf16 %v1678_v22, %v1677_v21 }
 0x3b9   : > { %v1703_v26 = vpack.c.bf16 %v1676_v24, %v1675_v23 }
 0x3bb   : > { %5656 = vmatprep.mubr.msk.bf16.mxu1 %vm1754_vm0, %v1703_v26 }
 0x3bc   : > { %5657 = vmatmul.mubr.msk.bf16.gmra.mrb[40].mxu1 %vm1754_vm0, %v1704_v25 }
 0x3c1   : > { %v5622_v27 = vpop.f32.mrb[12].mxu1 }
 0x3c2   : > { %v1597_v28 = vadd.f32 %v5622_v27, %v7840_v48  ;;  %v1588_v29 = vpop.f32.mrb[13].mxu1 }
 0x3c3   : > { %v1589_v30 = vadd.f32 %v7840_v48, %v1588_v29  ;;  %v5623_v31 = vpop.f32.mrb[14].mxu1 }
 0x3c4   : > { %v1600_v32 = vadd.f32 %v5623_v31, %v7840_v48  ;;  %v1591_v33 = vpop.f32.mrb[15].mxu1  ;;  %v1681_v35 = vmax.f32 %v1597_v28, 0.0 }
 0x3c5   : > { %v1592_v34 = vadd.f32 %v7840_v48, %v1591_v33  ;;  %v1679_v37 = vmax.f32 %v1589_v30, 0.0 }
 0x3c6   : > { %v1682_v36 = vmax.f32 %v1600_v32, 0.0 }
 0x3c7   : > { %v1680_v38 = vmax.f32 %v1592_v34, 0.0  ;;  %v5981_v34 = vld [vmem:[#allocation13] sm:$0xff]  }
 0x3c8   : > { %v1706_v39 = vpack.c.bf16 %v1682_v36, %v1681_v35  ;;  %v5982_v35 = vld [vmem:[#allocation13 + $0x8] sm:$0xff]   ;;  %5698 = vmatprep.subr.bf16.mxu1 %v5981_v34  ;;  %v5983_v36 = vld [vmem:[#allocation13 + $0x10] sm:$0xff]  }
 0x3c9   : > { %v1705_v40 = vpack.c.bf16 %v1680_v38, %v1679_v37  ;;  %5699 = vmatpush3.bf16.msra.mxu1 %v5981_v34  ;;  %v5984_v38 = vld [vmem:[#allocation13 + $0x18] sm:$0xff]  }
 0x3ca   : > { %5700 = vmatprep.subr.bf16.mxu1 %v5982_v35 }
 0x3cb   : > { %5660 = vmatprep.mubr.msk.bf16.mxu1 %vm1754_vm0, %v1705_v40 }
 0x3cc   : > { %5661 = vmatmul.mubr.msk.bf16.gmra.mrb[44].mxu1 %vm1754_vm0, %v1706_v39 }
 0x3cd   : > { %5701 = vmatpush3.bf16.msra.mxu1 %v5982_v35 }
 0x3ce   : > { %5702 = vmatprep.subr.bf16.mxu1 %v5983_v36 }
 0x3d1   : > { %v5626_v41 = vpop.f32.mrb[16].mxu1  ;;  %5703 = vmatpush3.bf16.msra.mxu1 %v5983_v36 }
 0x3d2   : > { %v1613_v42 = vadd.f32 %v5626_v41, %v7840_v48  ;;  %v1604_v43 = vpop.f32.mrb[17].mxu1  ;;  %v7890_v41 = vld [vmem:[#allocation8] ss:$0 sm:$0xff]  ;;  %5704 = vmatprep.subr.bf16.mxu1 %v5984_v38 }
 0x3d3   : > { %v1605_v44 = vadd.f32 %v7840_v48, %v1604_v43  ;;  %v5627_v45 = vpop.f32.mrb[18].mxu1 }
 0x3d4   : > { %v1616_v46 = vadd.f32 %v5627_v45, %v7840_v48  ;;  %v1607_v47 = vpop.f32.mrb[19].mxu1  ;;  %v1685_v50 = vmax.f32 %v1613_v42, 0.0 }
 0x3d5   : > { %v1608_v49 = vadd.f32 %v7840_v48, %v1607_v47  ;;  %v1683_v52 = vmax.f32 %v1605_v44, 0.0  ;;  %5705 = vmatpush3.bf16.msra.mxu1 %v5984_v38 }
 0x3d6   : > { %v1686_v51 = vmax.f32 %v1616_v46, 0.0  ;;  %v7060_v46 = vmov 0.0  }
 0x3d7   : > { %v1684_v53 = vmax.f32 %v1608_v49, 0.0  ;;  %4582 = vst [vmem:[%s7897_s21 + $0x8] sm:$0xff] %v7060_v46  ;;  %4581 = vst [vmem:[%s7897_s21] sm:$0xff] %v7060_v46 }
 0x3d8   : > { %v1708_v54 = vpack.c.bf16 %v1686_v51, %v1685_v50  ;;  %4583 = vst [vmem:[%s7897_s21 + $0x10] sm:$0xff] %v7060_v46  ;;  %4584 = vst [vmem:[%s7897_s21 + $0x18] sm:$0xff] %v7060_v46 }
 0x3d9   : > { %v1707_v55 = vpack.c.bf16 %v1684_v53, %v1683_v52  ;;  %4585 = vst [vmem:[%s7897_s21 + $0x20] sm:$0xff] %v7060_v46  ;;  %4586 = vst [vmem:[%s7897_s21 + $0x28] sm:$0xff] %v7060_v46 }
 0x3da   : > { %4587 = vst [vmem:[%s7897_s21 + $0x30] sm:$0xff] %v7060_v46  ;;  %4588 = vst [vmem:[%s7897_s21 + $0x38] sm:$0xff] %v7060_v46 }
 0x3db   : > { %5664 = vmatprep.mubr.msk.bf16.mxu1 %vm1754_vm0, %v1707_v55  ;;  %4589 = vst [vmem:[%s7897_s21 + $0x40] sm:$0xff] %v7060_v46  ;;  %4590 = vst [vmem:[%s7897_s21 + $0x48] sm:$0xff] %v7060_v46 }
 0x3dc   : > { %5665 = vmatmul.mubr.msk.bf16.gmra.mrb[48].mxu1 %vm1754_vm0, %v1708_v54  ;;  %4591 = vst [vmem:[%s7897_s21 + $0x50] sm:$0xff] %v7060_v46  ;;  %4592 = vst [vmem:[%s7897_s21 + $0x58] sm:$0xff] %v7060_v46 }
 0x3dd   : > { %4593 = vst [vmem:[%s7897_s21 + $0x60] sm:$0xff] %v7060_v46  ;;  %4594 = vst [vmem:[%s7897_s21 + $0x68] sm:$0xff] %v7060_v46 }
 0x3de   : > { %4595 = vst [vmem:[%s7897_s21 + $0x70] sm:$0xff] %v7060_v46  ;;  %4596 = vst [vmem:[%s7897_s21 + $0x78] sm:$0xff] %v7060_v46 }
 0x3e1   : > { %v5630_v58 = vpop.f32.mrb[20].mxu1 }
 0x3e2   : > { %v1629_v56 = vadd.f32 %v5630_v58, %v7840_v48  ;;  %v1620_v57 = vpop.f32.mrb[21].mxu1 }
 0x3e3   : > { %v1621_v59 = vadd.f32 %v7840_v48, %v1620_v57  ;;  %v5631_v60 = vpop.f32.mrb[22].mxu1 }
 0x3e4   : > { %v1632_v61 = vadd.f32 %v5631_v60, %v7840_v48  ;;  %v1623_v62 = vpop.f32.mrb[23].mxu1  ;;  %v1689_v0 = vmax.f32 %v1629_v56, 0.0 }
 0x3e5   : > { %v1624_v63 = vadd.f32 %v7840_v48, %v1623_v62  ;;  %v1687_v2 = vmax.f32 %v1621_v59, 0.0 }
 0x3e6   : > { %v1690_v1 = vmax.f32 %v1632_v61, 0.0 }
 0x3e7   : > { %v1688_v3 = vmax.f32 %v1624_v63, 0.0 }
 0x3e8   : > { %v1710_v4 = vpack.c.bf16 %v1690_v1, %v1689_v0 }
 0x3e9   : > { %v1709_v5 = vpack.c.bf16 %v1688_v3, %v1687_v2 }
 0x3eb   : > { %5668 = vmatprep.mubr.msk.bf16.mxu1 %vm1754_vm0, %v1709_v5 }
 0x3ec   : > { %5669 = vmatmul.mubr.msk.bf16.gmra.mrb[52].mxu1 %vm1754_vm0, %v1710_v4 }
 0x3f1   : > { %v5634_v6 = vpop.f32.mrb[24].mxu1 }
 0x3f2   : > { %v1645_v7 = vadd.f32 %v5634_v6, %v7840_v48  ;;  %v1636_v8 = vpop.f32.mrb[25].mxu1 }
 0x3f3   : > { %v1637_v9 = vadd.f32 %v7840_v48, %v1636_v8  ;;  %v5635_v10 = vpop.f32.mrb[26].mxu1 }
 0x3f4   : > { %v1648_v11 = vadd.f32 %v5635_v10, %v7840_v48  ;;  %v1639_v12 = vpop.f32.mrb[27].mxu1  ;;  %v1693_v14 = vmax.f32 %v1645_v7, 0.0 }
 0x3f5   : > { %v1640_v13 = vadd.f32 %v7840_v48, %v1639_v12  ;;  %v1691_v16 = vmax.f32 %v1637_v9, 0.0 }
 0x3f6   : > { %v1694_v15 = vmax.f32 %v1648_v11, 0.0 }
 0x3f7   : > { %v1692_v17 = vmax.f32 %v1640_v13, 0.0 }
 0x3f8   : > { %v1712_v18 = vpack.c.bf16 %v1694_v15, %v1693_v14 }
 0x3f9   : > { %v1711_v19 = vpack.c.bf16 %v1692_v17, %v1691_v16 }
 0x3fb   : > { %5672 = vmatprep.mubr.msk.bf16.mxu1 %vm1754_vm0, %v1711_v19 }
 0x3fc   : > { %5673 = vmatmul.mubr.msk.bf16.gmra.mrb[56].mxu1 %vm1754_vm0, %v1712_v18 }
 0x401   : > { %v5638_v20 = vpop.f32.mrb[28].mxu1 }
 0x402   : > { %v1661_v21 = vadd.f32 %v5638_v20, %v7840_v48  ;;  %v1652_v22 = vpop.f32.mrb[29].mxu1 }
 0x403   : > { %v1653_v23 = vadd.f32 %v7840_v48, %v1652_v22  ;;  %v5639_v24 = vpop.f32.mrb[30].mxu1 }
 0x404   : > { %v1664_v25 = vadd.f32 %v5639_v24, %v7840_v48  ;;  %v1655_v26 = vpop.f32.mrb[31].mxu1  ;;  %v1697_v28 = vmax.f32 %v1661_v21, 0.0 }
 0x405   : > { %v1656_v27 = vadd.f32 %v7840_v48, %v1655_v26  ;;  %v1695_v30 = vmax.f32 %v1653_v23, 0.0 }
 0x406   : > { %v1698_v29 = vmax.f32 %v1664_v25, 0.0 }
 0x407   : > { %v1696_v31 = vmax.f32 %v1656_v27, 0.0 }
 0x408   : > { %v1714_v32 = vpack.c.bf16 %v1698_v29, %v1697_v28 }
 0x409   : > { %v1713_v33 = vpack.c.bf16 %v1696_v31, %v1695_v30 }
 0x40b   : > { %5676 = vmatprep.mubr.msk.bf16.mxu1 %vm1754_vm0, %v1713_v33 }
 0x40c   : > { %5677 = vmatmul.mubr.msk.bf16.gmra.mrb[60].mxu1 %vm1754_vm0, %v1714_v32 }
 0x46f   : > { %v5650_v37 = vpop.f32.mrb[32].mxu1 }
 0x470   : > { %v1837_v48 = vpop.f32.mrb[33].mxu1  ;;  %v1846_v42 = vadd.f32 %v5650_v37, %v7890_v41 }
 0x471   : > { %v5651_v39 = vpop.f32.mrb[34].mxu1  ;;  %v1838_v43 = vadd.f32 %v7890_v41, %v1837_v48 }
 0x472   : > { %v1840_v40 = vpop.f32.mrb[35].mxu1  ;;  %v1849_v44 = vadd.f32 %v5651_v39, %v7890_v41  ;;  %4599 = vst.msk [vmem:[%s7897_s21 + $0x10] sm:$0xff] %vm1987_vm1, %v1846_v42 }
 0x473   : > { %v1841_v45 = vadd.f32 %v7890_v41, %v1840_v40  ;;  %4597 = vst.msk [vmem:[%s7897_s21] sm:$0xff] %vm1987_vm1, %v1838_v43 }
 0x474   : > { %4600 = vst.msk [vmem:[%s7897_s21 + $0x18] sm:$0xff] %vm1987_vm1, %v1849_v44 }
 0x475   : > { %4598 = vst.msk [vmem:[%s7897_s21 + $0x8] sm:$0xff] %vm1987_vm1, %v1841_v45 }
 0x47f   : > { %v5654_v47 = vpop.f32.mrb[36].mxu1 }
 0x480   : > { %v1862_v49 = vadd.f32 %v5654_v47, %v7890_v41  ;;  %v1853_v50 = vpop.f32.mrb[37].mxu1 }
 0x481   : > { %v1854_v51 = vadd.f32 %v7890_v41, %v1853_v50  ;;  %v5655_v52 = vpop.f32.mrb[38].mxu1  ;;  %v5987_v50 = vld [vmem:[%s9977_s12 + $0x10] sm:$0xff]  }
 0x482   : > { %v1865_v53 = vadd.f32 %v5655_v52, %v7890_v41  ;;  %v1856_v54 = vpop.f32.mrb[39].mxu1  ;;  %4603 = vst.msk [vmem:[%s7897_s21 + $0x30] sm:$0xff] %vm1987_vm1, %v1862_v49  ;;  %v5985_v49 = vld [vmem:[%s9977_s12] sm:$0xff]  }
 0x483   : > { %v1857_v55 = vadd.f32 %v7890_v41, %v1856_v54  ;;  %4601 = vst.msk [vmem:[%s7897_s21 + $0x20] sm:$0xff] %vm1987_vm1, %v1854_v51  ;;  %5722 = vmatprep.subr.bf16.mxu0 %v5985_v49  ;;  %v5988_v51 = vld [vmem:[%s9977_s12 + $0x18] sm:$0xff]   ;;  %v5989_v52 = vld [vmem:[%s9977_s12 + $0x20] sm:$0xff]   ;;  %v5224_v54 = vld [vmem:[#allocation11] ss:$0 sm:$0xff] }
 0x484   : > { %4604 = vst.msk [vmem:[%s7897_s21 + $0x38] sm:$0xff] %vm1987_vm1, %v1865_v53  ;;  %v5990_v53 = vld [vmem:[%s9977_s12 + $0x28] sm:$0xff]  }
 0x485   : > { %4602 = vst.msk [vmem:[%s7897_s21 + $0x28] sm:$0xff] %vm1987_vm1, %v1857_v55 }
 0x48f   : > { %v5658_v58 = vpop.f32.mrb[40].mxu1 }
 0x490   : > { %v1878_v56 = vadd.f32 %v5658_v58, %v7890_v41  ;;  %v1869_v57 = vpop.f32.mrb[41].mxu1 }
 0x491   : > { %v1870_v59 = vadd.f32 %v7890_v41, %v1869_v57  ;;  %v5659_v60 = vpop.f32.mrb[42].mxu1 }
 0x492   : > { %v1881_v61 = vadd.f32 %v5659_v60, %v7890_v41  ;;  %v1872_v62 = vpop.f32.mrb[43].mxu1  ;;  %4607 = vst.msk [vmem:[%s7897_s21 + $0x50] sm:$0xff] %vm1987_vm1, %v1878_v56 }
 0x493   : > { %v1873_v63 = vadd.f32 %v7890_v41, %v1872_v62  ;;  %4605 = vst.msk [vmem:[%s7897_s21 + $0x40] sm:$0xff] %vm1987_vm1, %v1870_v59 }
 0x494   : > { %4608 = vst.msk [vmem:[%s7897_s21 + $0x58] sm:$0xff] %vm1987_vm1, %v1881_v61 }
 0x495   : > { %4606 = vst.msk [vmem:[%s7897_s21 + $0x48] sm:$0xff] %vm1987_vm1, %v1873_v63 }
 0x49f   : > { %v5662_v0 = vpop.f32.mrb[44].mxu1 }
 0x4a0   : > { %v1894_v1 = vadd.f32 %v5662_v0, %v7890_v41  ;;  %v1885_v2 = vpop.f32.mrb[45].mxu1 }
 0x4a1   : > { %v1886_v3 = vadd.f32 %v7890_v41, %v1885_v2  ;;  %v5663_v4 = vpop.f32.mrb[46].mxu1 }
 0x4a2   : > { %v1897_v5 = vadd.f32 %v5663_v4, %v7890_v41  ;;  %v1888_v6 = vpop.f32.mrb[47].mxu1  ;;  %4611 = vst.msk [vmem:[%s7897_s21 + $0x70] sm:$0xff] %vm1987_vm1, %v1894_v1 }
 0x4a3   : > { %v1889_v7 = vadd.f32 %v7890_v41, %v1888_v6  ;;  %4609 = vst.msk [vmem:[%s7897_s21 + $0x60] sm:$0xff] %vm1987_vm1, %v1886_v3 }
 0x4a4   : > { %4612 = vst.msk [vmem:[%s7897_s21 + $0x78] sm:$0xff] %vm1987_vm1, %v1897_v5 }
 0x4a5   : > { %4610 = vst.msk [vmem:[%s7897_s21 + $0x68] sm:$0xff] %vm1987_vm1, %v1889_v7 }
 0x4af   : > { %v5666_v8 = vpop.f32.mrb[48].mxu1 }
 0x4b0   : > { %v1901_v9 = vpop.f32.mrb[49].mxu1  ;;  %v7969_v15 = vadd.f32 %v5666_v8, %v7890_v41 }
 0x4b1   : > { %v5667_v10 = vpop.f32.mrb[50].mxu1  ;;  %v7963_v13 = vadd.f32 %v7890_v41, %v1901_v9 }
 0x4b2   : > { %v7960_v11 = vadd.f32 %v5667_v10, %v7890_v41  ;;  %v1904_v12 = vpop.f32.mrb[51].mxu1  ;;  %9964 = vst [vmem:[#allocation42_spill] sm:$0xff] %v7969_v15 }
 0x4b3   : > { %9962 = vst [vmem:[#allocation40_spill] sm:$0xff] %v7963_v13  ;;  %v7966_v14 = vadd.f32 %v7890_v41, %v1904_v12 }
 0x4b4   : > { %9961 = vst [vmem:[#allocation39_spill] sm:$0xff] %v7960_v11  ;;  %v7977_v17 = vpack.c.bf16 %v7960_v11, %v7969_v15 }
 0x4b5   : > { %9963 = vst [vmem:[#allocation41_spill] sm:$0xff] %v7966_v14  ;;  %v7973_v16 = vpack.c.bf16 %v7966_v14, %v7963_v13 }
 0x4b7   : > { %5682 = vmatprep.mubr.msk.bf16.mxu0 %vm1987_vm1, %v7973_v16 }
 0x4b8   : > { %5683 = vmatmul.mubr.msk.bf16.vlgmr.msra.gmra.mrb[64].mxu0 %vm1987_vm1, %v7977_v17 }
 0x4b9   : > { %5723 = vmatpush3.bf16.msra.mxu0 %v5985_v49 }
 0x4bf   : > { %v5670_v18 = vpop.f32.mrb[52].mxu1 }
 0x4c0   : > { %v1917_v19 = vpop.f32.mrb[53].mxu1  ;;  %v7993_v25 = vadd.f32 %v5670_v18, %v7890_v41 }
 0x4c1   : > { %v5671_v20 = vpop.f32.mrb[54].mxu1  ;;  %v7987_v23 = vadd.f32 %v7890_v41, %v1917_v19 }
 0x4c2   : > { %v7984_v21 = vadd.f32 %v5671_v20, %v7890_v41  ;;  %v1920_v22 = vpop.f32.mrb[55].mxu1  ;;  %9968 = vst [vmem:[#allocation46_spill] sm:$0xff] %v7993_v25 }
 0x4c3   : > { %9966 = vst [vmem:[#allocation44_spill] sm:$0xff] %v7987_v23  ;;  %v7990_v24 = vadd.f32 %v7890_v41, %v1920_v22 }
 0x4c4   : > { %9965 = vst [vmem:[#allocation43_spill] sm:$0xff] %v7984_v21  ;;  %v8001_v27 = vpack.c.bf16 %v7984_v21, %v7993_v25 }
 0x4c5   : > { %9967 = vst [vmem:[#allocation45_spill] sm:$0xff] %v7990_v24  ;;  %v7997_v26 = vpack.c.bf16 %v7990_v24, %v7987_v23 }
 0x4c7   : > { %5686 = vmatprep.mubr.msk.bf16.mxu0 %vm1987_vm1, %v7997_v26 }
 0x4c8   : > { %5687 = vmatmul.mubr.msk.bf16.gmra.mrb[68].mxu0 %vm1987_vm1, %v8001_v27 }
 0x4cf   : > { %v5674_v28 = vpop.f32.mrb[56].mxu1 }
 0x4d0   : > { %v1933_v29 = vpop.f32.mrb[57].mxu1  ;;  %v8017_v35 = vadd.f32 %v5674_v28, %v7890_v41 }
 0x4d1   : > { %v5675_v30 = vpop.f32.mrb[58].mxu1  ;;  %v8011_v33 = vadd.f32 %v7890_v41, %v1933_v29 }
 0x4d2   : > { %v8008_v31 = vadd.f32 %v5675_v30, %v7890_v41  ;;  %v1936_v32 = vpop.f32.mrb[59].mxu1  ;;  %9972 = vst [vmem:[#allocation50_spill] sm:$0xff] %v8017_v35 }
 0x4d3   : > { %9970 = vst [vmem:[#allocation48_spill] sm:$0xff] %v8011_v33  ;;  %v8014_v34 = vadd.f32 %v7890_v41, %v1936_v32 }
 0x4d4   : > { %9969 = vst [vmem:[#allocation47_spill] sm:$0xff] %v8008_v31  ;;  %v8025_v37 = vpack.c.bf16 %v8008_v31, %v8017_v35 }
 0x4d5   : > { %9971 = vst [vmem:[#allocation49_spill] sm:$0xff] %v8014_v34  ;;  %v8021_v36 = vpack.c.bf16 %v8014_v34, %v8011_v33 }
 0x4d7   : > { %5690 = vmatprep.mubr.msk.bf16.mxu0 %vm1987_vm1, %v8021_v36 }
 0x4d8   : > { %5691 = vmatmul.mubr.msk.bf16.gmra.mrb[72].mxu0 %vm1987_vm1, %v8025_v37 }
 0x4df   : > { %v5678_v48 = vpop.f32.mrb[60].mxu1 }
 0x4e0   : > { %v1949_v38 = vpop.f32.mrb[61].mxu1  ;;  %v8041_v45 = vadd.f32 %v5678_v48, %v7890_v41 }
 0x4e1   : > { %v5679_v39 = vpop.f32.mrb[62].mxu1  ;;  %v8035_v43 = vadd.f32 %v7890_v41, %v1949_v38 }
 0x4e2   : > { %v8032_v40 = vadd.f32 %v5679_v39, %v7890_v41  ;;  %v1952_v42 = vpop.f32.mrb[63].mxu1  ;;  %9976 = vst [vmem:[#allocation54_spill] sm:$0xff] %v8041_v45 }
 0x4e3   : > { %9974 = vst [vmem:[#allocation52_spill] sm:$0xff] %v8035_v43  ;;  %v8038_v44 = vadd.f32 %v7890_v41, %v1952_v42  ;;  %v5986_v41 = vld [vmem:[%s9977_s12 + $0x8] sm:$0xff]  }
 0x4e4   : > { %9973 = vst [vmem:[#allocation51_spill] sm:$0xff] %v8032_v40  ;;  %v8049_v47 = vpack.c.bf16 %v8032_v40, %v8041_v45  ;;  %5724 = vmatprep.subr.bf16.mxu0 %v5986_v41 }
 0x4e5   : > { %9975 = vst [vmem:[#allocation53_spill] sm:$0xff] %v8038_v44  ;;  %v8045_v46 = vpack.c.bf16 %v8038_v44, %v8035_v43  ;;  %5725 = vmatpush3.bf16.msra.mxu0 %v5986_v41 }
 0x4e6   : > { %5726 = vmatprep.subr.bf16.mxu0 %v5987_v50 }
 0x4e7   : > { %5694 = vmatprep.mubr.msk.bf16.mxu0 %vm1987_vm1, %v8045_v46 }
 0x4e8   : > { %5695 = vmatmul.mubr.msk.bf16.gmra.mrb[76].mxu0 %vm1987_vm1, %v8049_v47 }
 0x4e9   : > { %5727 = vmatpush3.bf16.msra.mxu0 %v5987_v50 }
 0x4ea   : > { %5728 = vmatprep.subr.bf16.mxu0 %v5988_v51 }
 0x4ed   : > { %5729 = vmatpush3.bf16.msra.mxu0 %v5988_v51 }
 0x4ee   : > { %5730 = vmatprep.subr.bf16.mxu0 %v5989_v52 }
 0x4f1   : > { %5731 = vmatpush3.bf16.msra.mxu0 %v5989_v52 }
 0x4f2   : > { %5732 = vmatprep.subr.bf16.mxu0 %v5990_v53 }
 0x4f5   : > { %5733 = vmatpush3.bf16.msra.mxu0 %v5990_v53 }
 0x58b   : > { %v5684_v55 = vpop.f32.mrb[64].mxu0 }
 0x58c   : > { %v2055_v58 = vadd.f32 %v5684_v55, %v5224_v54  ;;  %v2046_v56 = vpop.f32.mrb[65].mxu0 }
 0x58d   : > { %v2047_v57 = vadd.f32 %v5224_v54, %v2046_v56  ;;  %v5685_v59 = vpop.f32.mrb[66].mxu0 }
 0x58e   : > { %v2058_v60 = vadd.f32 %v5685_v59, %v5224_v54  ;;  %v2049_v61 = vpop.f32.mrb[67].mxu0  ;;  %v2111_v63 = vmax.f32 %v2055_v58, 0.0 }
 0x58f   : > { %v2050_v62 = vadd.f32 %v5224_v54, %v2049_v61  ;;  %v2109_v1 = vmax.f32 %v2047_v57, 0.0 }
 0x590   : > { %v2112_v0 = vmax.f32 %v2058_v60, 0.0 }
 0x591   : > { %v2110_v2 = vmax.f32 %v2050_v62, 0.0 }
 0x592   : > { %v2126_v3 = vpack.c.bf16 %v2112_v0, %v2111_v63 }
 0x593   : > { %v2125_v4 = vpack.c.bf16 %v2110_v2, %v2109_v1 }
 0x595   : > { %5706 = vmatprep.mubr.msk.bf16.mxu1 %vm1754_vm0, %v2125_v4 }
 0x596   : > { %5707 = vmatmul.mubr.msk.bf16.vlgmr.msra.gmra.mrb[64].mxu1 %vm1754_vm0, %v2126_v3 }
 0x59b   : > { %v5688_v5 = vpop.f32.mrb[68].mxu0 }
 0x59c   : > { %v2071_v6 = vadd.f32 %v5688_v5, %v5224_v54  ;;  %v2062_v7 = vpop.f32.mrb[69].mxu0 }
 0x59d   : > { %v2063_v8 = vadd.f32 %v5224_v54, %v2062_v7  ;;  %v5689_v9 = vpop.f32.mrb[70].mxu0 }
 0x59e   : > { %v2074_v10 = vadd.f32 %v5689_v9, %v5224_v54  ;;  %v2065_v12 = vpop.f32.mrb[71].mxu0  ;;  %v2115_v19 = vmax.f32 %v2071_v6, 0.0 }
 0x59f   : > { %v2066_v18 = vadd.f32 %v5224_v54, %v2065_v12  ;;  %v2113_v22 = vmax.f32 %v2063_v8, 0.0  ;;  %v5991_v8 = vld [vmem:[%s9977_s12 + $0x30] sm:$0xff]  }
 0x5a0   : > { %v2116_v20 = vmax.f32 %v2074_v10, 0.0  ;;  %5734 = vmatprep.subr.bf16.mxu0 %v5991_v8  ;;  %v5234_v10 = vld [vmem:[#allocation14] ss:$0 sm:$0xff] }
 0x5a1   : > { %v2114_v28 = vmax.f32 %v2066_v18, 0.0  ;;  %5735 = vmatpush3.bf16.msra.mxu0 %v5991_v8 }
 0x5a2   : > { %v2128_v29 = vpack.c.bf16 %v2116_v20, %v2115_v19 }
 0x5a3   : > { %v2127_v30 = vpack.c.bf16 %v2114_v28, %v2113_v22 }
 0x5a5   : > { %5710 = vmatprep.mubr.msk.bf16.mxu1 %vm1754_vm0, %v2127_v30 }
 0x5a6   : > { %5711 = vmatmul.mubr.msk.bf16.gmra.mrb[68].mxu1 %vm1754_vm0, %v2128_v29 }
 0x5ab   : > { %v5692_v32 = vpop.f32.mrb[72].mxu0 }
 0x5ac   : > { %v2087_v48 = vadd.f32 %v5692_v32, %v5224_v54  ;;  %v2078_v38 = vpop.f32.mrb[73].mxu0 }
 0x5ad   : > { %v2079_v39 = vadd.f32 %v5224_v54, %v2078_v38  ;;  %v5693_v42 = vpop.f32.mrb[74].mxu0 }
 0x5ae   : > { %v2090_v49 = vadd.f32 %v5693_v42, %v5224_v54  ;;  %v2081_v41 = vpop.f32.mrb[75].mxu0  ;;  %v2119_v51 = vmax.f32 %v2087_v48, 0.0 }
 0x5af   : > { %v2082_v50 = vadd.f32 %v5224_v54, %v2081_v41  ;;  %v2117_v53 = vmax.f32 %v2079_v39, 0.0 }
 0x5b0   : > { %v2120_v52 = vmax.f32 %v2090_v49, 0.0 }
 0x5b1   : > { %v2118_v55 = vmax.f32 %v2082_v50, 0.0 }
 0x5b2   : > { %v2130_v58 = vpack.c.bf16 %v2120_v52, %v2119_v51 }
 0x5b3   : > { %v2129_v56 = vpack.c.bf16 %v2118_v55, %v2117_v53 }
 0x5b5   : > { %5714 = vmatprep.mubr.msk.bf16.mxu1 %vm1754_vm0, %v2129_v56 }
 0x5b6   : > { %5715 = vmatmul.mubr.msk.bf16.gmra.mrb[72].mxu1 %vm1754_vm0, %v2130_v58 }
 0x5bb   : > { %v5696_v57 = vpop.f32.mrb[76].mxu0 }
 0x5bc   : > { %v2103_v59 = vadd.f32 %v5696_v57, %v5224_v54  ;;  %v2094_v60 = vpop.f32.mrb[77].mxu0 }
 0x5bd   : > { %v2095_v61 = vadd.f32 %v5224_v54, %v2094_v60  ;;  %v5697_v62 = vpop.f32.mrb[78].mxu0 }
 0x5be   : > { %v2106_v63 = vadd.f32 %v5697_v62, %v5224_v54  ;;  %v2097_v0 = vpop.f32.mrb[79].mxu0  ;;  %v2123_v2 = vmax.f32 %v2103_v59, 0.0 }
 0x5bf   : > { %v2098_v1 = vadd.f32 %v5224_v54, %v2097_v0  ;;  %v2121_v4 = vmax.f32 %v2095_v61, 0.0  ;;  %v5992_v54 = vld [vmem:[%s9977_s12 + $0x38] sm:$0xff]  }
 0x5c0   : > { %v2124_v3 = vmax.f32 %v2106_v63, 0.0  ;;  %5736 = vmatprep.subr.bf16.mxu0 %v5992_v54 }
 0x5c1   : > { %v2122_v5 = vmax.f32 %v2098_v1, 0.0  ;;  %5737 = vmatpush3.bf16.msra.mxu0 %v5992_v54 }
 0x5c2   : > { %v2132_v6 = vpack.c.bf16 %v2124_v3, %v2123_v2 }
 0x5c3   : > { %v2131_v7 = vpack.c.bf16 %v2122_v5, %v2121_v4 }
 0x5c5   : > { %5718 = vmatprep.mubr.msk.bf16.mxu1 %vm1754_vm0, %v2131_v7 }
 0x5c6   : > { %5719 = vmatmul.mubr.msk.bf16.gmra.mrb[76].mxu1 %vm1754_vm0, %v2132_v6 }
 0x669   : > { %v5708_v9 = vpop.f32.mrb[64].mxu1 }
 0x66a   : > { %v2230_v12 = vpop.f32.mrb[65].mxu1  ;;  %v2239_v19 = vadd.f32 %v5708_v9, %v5234_v10 }
 0x66b   : > { %v5709_v18 = vpop.f32.mrb[66].mxu1  ;;  %v2231_v28 = vadd.f32 %v5234_v10, %v2230_v12  ;;  %v5995_v12 = vld [vmem:[#allocation19 + $0x4] ss:$8 sps:$4 sm:$0xff]  }
 0x66c   : > { %v2242_v20 = vadd.f32 %v5709_v18, %v5234_v10  ;;  %v2233_v22 = vpop.f32.mrb[67].mxu1  ;;  %v5998_v18 = vld [vmem:[#allocation17 + $0x4] ss:$8 sps:$4 sm:$0xff]   ;;  %3062 = vmatprep.subr.bf16.mxu0 %v5995_v12 }
 0x66d   : > { %v2234_v29 = vadd.f32 %v5234_v10, %v2233_v22  ;;  %2681 = vmatprep.subr.bf16.mxu1 %v5998_v18  ;;  %v6001_v22 = vld [vmem:[#allocation19 + $0x14] ss:$8 sps:$4 sm:$0xff]  }
 0x66e   : > { %v2294_v30 = vpack.c.bf16 %v2242_v20, %v2239_v19  ;;  %v5993_v19 = vld [vmem:[#allocation19] ss:$8 sps:$4 sm:$0xff]  }
 0x66f   : > { %v2293_v32 = vpack.c.bf16 %v2234_v29, %v2231_v28  ;;  %v5996_v20 = vld [vmem:[#allocation17] ss:$8 sps:$4 sm:$0xff]   ;;  %v6004_v28 = vld [vmem:[#allocation17 + $0x14] ss:$8 sps:$4 sm:$0xff]   ;;  %v5999_v29 = vld [vmem:[#allocation19 + $0x10] ss:$8 sps:$4 sm:$0xff]  }
 0x670   : > { %2682 = vmatpush1.bf16.msra.mxu1 %v5996_v20 }
 0x671   : > { %5738 = vmatprep.mubr.bf16.mxu0 %v2293_v32  ;;  %2683 = vmatprep.subr.bf16.mxu1 %v6004_v28  ;;  %v6010_v32 = vld [vmem:[#allocation17 + $0x24] ss:$8 sps:$4 sm:$0xff]  }
 0x672   : > { %5739 = vmatmul.mubr.bf16.vlgmr.msra.gmra.mrb[80].mxu0 %v2294_v30  ;;  %v6002_v30 = vld [vmem:[#allocation17 + $0x10] ss:$8 sps:$4 sm:$0xff]  }
 0x673   : > { %3063 = vmatpush1.bf16.msra.mxu0 %v5993_v19 }
 0x674   : > { %3064 = vmatprep.subr.bf16.mxu0 %v6001_v22  ;;  %2684 = vmatpush1.bf16.msra.mxu1 %v6002_v30 }
 0x675   : > { %2685 = vmatprep.subr.bf16.mxu1 %v6010_v32 }
 0x677   : > { %3065 = vmatpush1.bf16.msra.mxu0 %v5999_v29 }
 0x679   : > { %v5712_v48 = vpop.f32.mrb[68].mxu1 }
 0x67a   : > { %v2246_v38 = vpop.f32.mrb[69].mxu1  ;;  %v2255_v42 = vadd.f32 %v5712_v48, %v5234_v10  ;;  %v6005_v48 = vld [vmem:[#allocation19 + $0x20] ss:$8 sps:$4 sm:$0xff]  }
 0x67b   : > { %v5713_v39 = vpop.f32.mrb[70].mxu1  ;;  %v2247_v50 = vadd.f32 %v5234_v10, %v2246_v38  ;;  %v6008_v38 = vld [vmem:[#allocation17 + $0x20] ss:$8 sps:$4 sm:$0xff]  }
 0x67c   : > { %v2258_v49 = vadd.f32 %v5713_v39, %v5234_v10  ;;  %v2249_v41 = vpop.f32.mrb[71].mxu1  ;;  %2686 = vmatpush1.bf16.msra.mxu1 %v6008_v38  ;;  %v6013_v39 = vld [vmem:[#allocation19 + $0x34] ss:$8 sps:$4 sm:$0xff]  }
 0x67d   : > { %v2250_v51 = vadd.f32 %v5234_v10, %v2249_v41  ;;  %v6014_v41 = vld [vmem:[#allocation17 + $0x30] ss:$8 sps:$4 sm:$0xff]  }
 0x67e   : > { %v2296_v52 = vpack.c.bf16 %v2258_v49, %v2255_v42  ;;  %v6016_v42 = vld [vmem:[#allocation17 + $0x34] ss:$8 sps:$4 sm:$0xff]   ;;  %v6011_v49 = vld [vmem:[#allocation19 + $0x30] ss:$8 sps:$4 sm:$0xff]  }
 0x67f   : > { %v2295_v53 = vpack.c.bf16 %v2250_v51, %v2247_v50  ;;  %2687 = vmatprep.subr.bf16.mxu1 %v6016_v42  ;;  %v6019_v50 = vld [vmem:[#allocation19 + $0x44] ss:$8 sps:$4 sm:$0xff]  }
 0x680   : > { %2688 = vmatpush1.bf16.msra.mxu1 %v6014_v41  ;;  %v6022_v51 = vld [vmem:[#allocation17 + $0x44] ss:$8 sps:$4 sm:$0xff]  }
 0x681   : > { %5742 = vmatprep.mubr.bf16.mxu0 %v2295_v53  ;;  %v6020_v53 = vld [vmem:[#allocation17 + $0x40] ss:$8 sps:$4 sm:$0xff]   ;;  %2689 = vmatprep.subr.bf16.mxu1 %v6022_v51 }
 0x682   : > { %5743 = vmatmul.mubr.bf16.gmra.mrb[84].mxu0 %v2296_v52  ;;  %v6017_v52 = vld [vmem:[#allocation19 + $0x40] ss:$8 sps:$4 sm:$0xff]  }
 0x684   : > { %2690 = vmatpush1.bf16.msra.mxu1 %v6020_v53 }
 0x689   : > { %v5716_v55 = vpop.f32.mrb[72].mxu1 }
 0x68a   : > { %v2262_v58 = vpop.f32.mrb[73].mxu1  ;;  %v2271_v57 = vadd.f32 %v5716_v55, %v5234_v10  ;;  %v6025_v55 = vld [vmem:[#allocation19 + $0x54] ss:$8 sps:$4 sm:$0xff]  }
 0x68b   : > { %v5717_v56 = vpop.f32.mrb[74].mxu1  ;;  %v2263_v61 = vadd.f32 %v5234_v10, %v2262_v58  ;;  %v6028_v58 = vld [vmem:[#allocation17 + $0x54] ss:$8 sps:$4 sm:$0xff]  }
 0x68c   : > { %v2274_v59 = vadd.f32 %v5717_v56, %v5234_v10  ;;  %v2265_v60 = vpop.f32.mrb[75].mxu1  ;;  %v6023_v56 = vld [vmem:[#allocation19 + $0x50] ss:$8 sps:$4 sm:$0xff]   ;;  %2691 = vmatprep.subr.bf16.mxu1 %v6028_v58 }
 0x68d   : > { %v2266_v62 = vadd.f32 %v5234_v10, %v2265_v60  ;;  %v6034_v60 = vld [vmem:[#allocation17 + $0x64] ss:$8 sps:$4 sm:$0xff]  }
 0x68e   : > { %v2298_v63 = vpack.c.bf16 %v2274_v59, %v2271_v57  ;;  %v6026_v57 = vld [vmem:[#allocation17 + $0x50] ss:$8 sps:$4 sm:$0xff]   ;;  %v6031_v59 = vld [vmem:[#allocation19 + $0x64] ss:$8 sps:$4 sm:$0xff]  }
 0x68f   : > { %v2297_v0 = vpack.c.bf16 %v2266_v62, %v2263_v61  ;;  %2692 = vmatpush1.bf16.msra.mxu1 %v6026_v57  ;;  %v6029_v61 = vld [vmem:[#allocation19 + $0x60] ss:$8 sps:$4 sm:$0xff]  }
 0x690   : > { %v6032_v62 = vld [vmem:[#allocation17 + $0x60] ss:$8 sps:$4 sm:$0xff]   ;;  %2693 = vmatprep.subr.bf16.mxu1 %v6034_v60 }
 0x691   : > { %5746 = vmatprep.mubr.bf16.mxu0 %v2297_v0  ;;  %v6040_v0 = vld [vmem:[#allocation17 + $0x74] ss:$8 sps:$4 sm:$0xff]  }
 0x692   : > { %5747 = vmatmul.mubr.bf16.gmra.mrb[88].mxu0 %v2298_v63  ;;  %v6037_v63 = vld [vmem:[#allocation19 + $0x74] ss:$8 sps:$4 sm:$0xff]  }
 0x693   : > { %2694 = vmatpush1.bf16.msra.mxu1 %v6032_v62 }
 0x694   : > { %2695 = vmatprep.subr.bf16.mxu1 %v6040_v0 }
 0x699   : > { %v5720_v1 = vpop.f32.mrb[76].mxu1 }
 0x69a   : > { %v2278_v2 = vpop.f32.mrb[77].mxu1  ;;  %v2287_v4 = vadd.f32 %v5720_v1, %v5234_v10  ;;  %v6035_v1 = vld [vmem:[#allocation19 + $0x70] ss:$8 sps:$4 sm:$0xff]  }
 0x69b   : > { %v5721_v3 = vpop.f32.mrb[78].mxu1  ;;  %v2279_v7 = vadd.f32 %v5234_v10, %v2278_v2  ;;  %v6038_v2 = vld [vmem:[#allocation17 + $0x70] ss:$8 sps:$4 sm:$0xff]  }
 0x69c   : > { %v2290_v5 = vadd.f32 %v5721_v3, %v5234_v10  ;;  %v2281_v6 = vpop.f32.mrb[79].mxu1  ;;  %2696 = vmatpush1.bf16.msra.mxu1 %v6038_v2  ;;  %v7061_v3 = vmov 0  }
 0x69d   : > { %v2282_v8 = vadd.f32 %v5234_v10, %v2281_v6  ;;  %v6007_v10 = vld [vmem:[#allocation19 + $0x24] ss:$8 sps:$4 sm:$0xff]   ;;  %2713 = vmatprep.mubr.bf16.mxu1 %v7061_v3  ;;  %v8095_v6 = vld [vmem:[#allocation16] ss:$0 sm:$0xff] }
 0x69e   : > { %v2300_v54 = vpack.c.bf16 %v2290_v5, %v2287_v4  ;;  %3066 = vmatprep.subr.bf16.mxu0 %v6007_v10  ;;  %v8092_v4 = vld [vmem:[%s9978_s20] sm:$0xff]  }
 0x69f   : > { %v2299_v9 = vpack.c.bf16 %v2282_v8, %v2279_v7  ;;  %3067 = vmatpush1.bf16.msra.mxu0 %v6005_v48  ;;  %v6044_v5 = vld [vmem:[#allocation20 + $0x4] ss:$8 sps:$4 sm:$0xff]  }
 0x6a0   : > { %3068 = vmatprep.subr.bf16.mxu0 %v6013_v39  ;;  %3955 = vmatprep.subr.bf16.mxu1 %v6044_v5 }
 0x6a1   : > { %5750 = vmatprep.mubr.bf16.mxu0 %v2299_v9 }
 0x6a2   : > { %5751 = vmatmul.mubr.bf16.gmra.mrb[92].mxu0 %v2300_v54 }
 0x6a3   : > { %3069 = vmatpush1.bf16.msra.mxu0 %v6011_v49  ;;  %3094 = vmatprep.mubr.bf16.mxu0 %v7061_v3 }
 0x6a4   : > { %3070 = vmatprep.subr.bf16.mxu0 %v6019_v50 }
 0x6a7   : > { %3071 = vmatpush1.bf16.msra.mxu0 %v6017_v52 }
 0x6a8   : > { %3072 = vmatprep.subr.bf16.mxu0 %v6025_v55 }
 0x6ab   : > { %3073 = vmatpush1.bf16.msra.mxu0 %v6023_v56 }
 0x6ac   : > { %3074 = vmatprep.subr.bf16.mxu0 %v6031_v59 }
 0x6af   : > { %3075 = vmatpush1.bf16.msra.mxu0 %v6029_v61 }
 0x6b0   : > { %3076 = vmatprep.subr.bf16.mxu0 %v6037_v63 }
 0x6b3   : > { %3077 = vmatpush1.bf16.msra.mxu0 %v6035_v1 }
 0x6b4   : > { %5754 = vmatprep.subr.bf16.mxu0 %v8092_v4 }
 0x745   : > { %v5740_v7 = vpop.f32.mrb[80].mxu0 }
 0x746   : > { %v2415_v8 = vadd.f32 %v5740_v7, %v8095_v6  ;;  %v2406_v54 = vpop.f32.mrb[81].mxu0 }
 0x747   : > { %v2407_v9 = vadd.f32 %v8095_v6, %v2406_v54  ;;  %v5741_v12 = vpop.f32.mrb[82].mxu0 }
 0x748   : > { %v5258_v18 = vmul.f32 -1.442695, %v2415_v8  ;;  %v2418_v19 = vadd.f32 %v5741_v12, %v8095_v6  ;;  %v2409_v20 = vpop.f32.mrb[83].mxu0 }
 0x749   : > { %v5256_v22 = vmul.f32 -1.442695, %v2407_v9  ;;  %v2410_v28 = vadd.f32 %v8095_v6, %v2409_v20  ;;  %v6042_v9 = vld [vmem:[#allocation20] ss:$8 sps:$4 sm:$0xff]  }
 0x74a   : > { %6066 = vpow2.f32 %v5258_v18  ;;  %v5259_v29 = vmul.f32 -1.442695, %v2418_v19 }
 0x74b   : > { %6068 = vpow2.f32 %v5256_v22  ;;  %v5257_v30 = vmul.f32 -1.442695, %v2410_v28  ;;  %v6047_v22 = vld [vmem:[#allocation20 + $0x14] ss:$8 sps:$4 sm:$0xff]  }
 0x74c   : > { %6070 = vpow2.f32 %v5259_v29 }
 0x74d   : > { %6072 = vpow2.f32 %v5257_v30 }
 0x754   : > { %v6067_v10 = vpop.eup %6066 }
 0x755   : > { %v6069_v32 = vpop.eup %6068  ;;  %v2519_v48 = vadd.f32 1.0, %v6067_v10  ;;  %v5744_v38 = vpop.f32.mrb[84].mxu0 }
 0x756   : > { %v6071_v39 = vpop.eup %6070  ;;  %v2517_v42 = vadd.f32 1.0, %v6069_v32  ;;  %v2431_v49 = vadd.f32 %v5744_v38, %v8095_v6  ;;  %v2422_v41 = vpop.f32.mrb[85].mxu0 }
 0x757   : > { %v6073_v50 = vpop.eup %6072  ;;  %6074 = vrcp.f32 %v2519_v48  ;;  %v2520_v51 = vadd.f32 1.0, %v6071_v39  ;;  %v2423_v52 = vadd.f32 %v8095_v6, %v2422_v41  ;;  %v5745_v53 = vpop.f32.mrb[86].mxu0 }
 0x758   : > { %6076 = vrcp.f32 %v2517_v42  ;;  %v2518_v55 = vadd.f32 1.0, %v6073_v50  ;;  %v5262_v58 = vmul.f32 -1.442695, %v2431_v49  ;;  %v2434_v56 = vadd.f32 %v5745_v53, %v8095_v6  ;;  %v2425_v57 = vpop.f32.mrb[87].mxu0  ;;  %v6050_v53 = vld [vmem:[#allocation20 + $0x24] ss:$8 sps:$4 sm:$0xff]  }
 0x759   : > { %6078 = vrcp.f32 %v2520_v51  ;;  %v5260_v59 = vmul.f32 -1.442695, %v2423_v52  ;;  %v2426_v60 = vadd.f32 %v8095_v6, %v2425_v57  ;;  %v6045_v51 = vld [vmem:[#allocation20 + $0x10] ss:$8 sps:$4 sm:$0xff]  }
 0x75a   : > { %6080 = vrcp.f32 %v2518_v55  ;;  %v5263_v61 = vmul.f32 -1.442695, %v2434_v56  ;;  %v6051_v56 = vld [vmem:[#allocation20 + $0x30] ss:$8 sps:$4 sm:$0xff]  }
 0x75b   : > { %6082 = vpow2.f32 %v5262_v58  ;;  %v5261_v62 = vmul.f32 -1.442695, %v2426_v60  ;;  %v6053_v58 = vld [vmem:[#allocation20 + $0x34] ss:$8 sps:$4 sm:$0xff]  }
 0x75c   : > { %6084 = vpow2.f32 %v5260_v59  ;;  %v6056_v59 = vld [vmem:[#allocation20 + $0x44] ss:$8 sps:$4 sm:$0xff]  }
 0x75d   : > { %6086 = vpow2.f32 %v5263_v61 }
 0x75e   : > { %6088 = vpow2.f32 %v5261_v62 }
 0x761   : > { %v6075_v63 = vpop.eup %6074 }
 0x762   : > { %v6077_v0 = vpop.eup %6076 }
 0x763   : > { %v6079_v1 = vpop.eup %6078 }
 0x764   : > { %v6081_v2 = vpop.eup %6080  ;;  %v8105_v5 = vpack.c.bf16 %v6079_v1, %v6075_v63 }
 0x765   : > { %v6083_v7 = vpop.eup %6082  ;;  %v5748_v8 = vpop.f32.mrb[88].mxu0  ;;  %v8107_v54 = vpack.c.bf16 %v6081_v2, %v6077_v0 }
 0x766   : > { %v6085_v12 = vpop.eup %6084  ;;  %v2523_v18 = vadd.f32 1.0, %v6083_v7  ;;  %v2447_v19 = vadd.f32 %v5748_v8, %v8095_v6  ;;  %v2438_v20 = vpop.f32.mrb[89].mxu0 }
 0x767   : > { %v6087_v28 = vpop.eup %6086  ;;  %v2521_v29 = vadd.f32 1.0, %v6085_v12  ;;  %v2439_v30 = vadd.f32 %v8095_v6, %v2438_v20  ;;  %v5749_v10 = vpop.f32.mrb[90].mxu0  ;;  %2714 = vmatmul.mubr.bf16.vlgmr.msra.gmra.mrb[80].mxu1 %v8107_v54  ;;  %3095 = vmatmul.mubr.bf16.vlgmr.msra.gmra.mrb[96].mxu0 %v8107_v54 }
 0x768   : > { %v6089_v32 = vpop.eup %6088  ;;  %6090 = vrcp.f32 %v2523_v18  ;;  %v2524_v48 = vadd.f32 1.0, %v6087_v28  ;;  %v5266_v38 = vmul.f32 -1.442695, %v2447_v19  ;;  %v2450_v39 = vadd.f32 %v5749_v10, %v8095_v6  ;;  %5755 = vmatpush3.bf16.msra.mxu0 %v8092_v4  ;;  %v2441_v42 = vpop.f32.mrb[91].mxu0  ;;  %2723 = vmatprep.mubr.bf16.mxu1 %v7061_v3  ;;  %v6048_v4 = vld [vmem:[#allocation20 + $0x20] ss:$8 sps:$4 sm:$0xff]  }
 0x769   : > { %6092 = vrcp.f32 %v2521_v29  ;;  %v2522_v49 = vadd.f32 1.0, %v6089_v32  ;;  %v5264_v41 = vmul.f32 -1.442695, %v2439_v30  ;;  %v2442_v50 = vadd.f32 %v8095_v6, %v2441_v42  ;;  %3104 = vmatprep.mubr.bf16.mxu0 %v7061_v3  ;;  %3956 = vmatpush1.bf16.msra.mxu1 %v6042_v9  ;;  %v6054_v9 = vld [vmem:[#allocation20 + $0x40] ss:$8 sps:$4 sm:$0xff]  }
 0x76a   : > { %6094 = vrcp.f32 %v2524_v48  ;;  %v5267_v52 = vmul.f32 -1.442695, %v2450_v39  ;;  %3957 = vmatprep.subr.bf16.mxu1 %v6047_v22  ;;  %v6059_v22 = vld [vmem:[#allocation20 + $0x54] ss:$8 sps:$4 sm:$0xff]  }
 0x76b   : > { %6096 = vrcp.f32 %v2522_v49  ;;  %v5265_v55 = vmul.f32 -1.442695, %v2442_v50 }
 0x76c   : > { %6098 = vpow2.f32 %v5266_v38 }
 0x76d   : > { %6100 = vpow2.f32 %v5264_v41  ;;  %3958 = vmatpush1.bf16.msra.mxu1 %v6045_v51  ;;  %v6057_v41 = vld [vmem:[#allocation20 + $0x50] ss:$8 sps:$4 sm:$0xff]   ;;  %v6062_v51 = vld [vmem:[#allocation20 + $0x64] ss:$8 sps:$4 sm:$0xff]  }
 0x76e   : > { %6102 = vpow2.f32 %v5267_v52  ;;  %3959 = vmatprep.subr.bf16.mxu1 %v6050_v53  ;;  %v6060_v53 = vld [vmem:[#allocation20 + $0x60] ss:$8 sps:$4 sm:$0xff]  }
 0x76f   : > { %6104 = vpow2.f32 %v5265_v55  ;;  %2724 = vmatmul.mubr.bf16.gmra.mrb[84].mxu1 %v8105_v5  ;;  %3105 = vmatmul.mubr.bf16.gmra.mrb[100].mxu0 %v8105_v5  ;;  %v6063_v55 = vld [vmem:[#allocation20 + $0x70] ss:$8 sps:$4 sm:$0xff]  }
 0x770   : > { %2733 = vmatprep.mubr.bf16.mxu1 %v7061_v3  ;;  %3114 = vmatprep.mubr.bf16.mxu0 %v7061_v3 }
 0x771   : > { %3960 = vmatpush1.bf16.msra.mxu1 %v6048_v4 }
 0x772   : > { %v6091_v57 = vpop.eup %6090  ;;  %3961 = vmatprep.subr.bf16.mxu1 %v6053_v58 }
 0x773   : > { %v6093_v60 = vpop.eup %6092 }
 0x774   : > { %v6095_v61 = vpop.eup %6094 }
 0x775   : > { %v6097_v62 = vpop.eup %6096  ;;  %v5752_v63 = vpop.f32.mrb[92].mxu0  ;;  %v8122_v0 = vpack.c.bf16 %v6095_v61, %v6091_v57  ;;  %3962 = vmatpush1.bf16.msra.mxu1 %v6051_v56 }
 0x776   : > { %v6099_v1 = vpop.eup %6098  ;;  %v2463_v2 = vadd.f32 %v5752_v63, %v8095_v6  ;;  %v2454_v7 = vpop.f32.mrb[93].mxu0  ;;  %v8125_v8 = vpack.c.bf16 %v6097_v62, %v6093_v60  ;;  %3963 = vmatprep.subr.bf16.mxu1 %v6056_v59 }
 0x777   : > { %v6101_v12 = vpop.eup %6100  ;;  %v2527_v18 = vadd.f32 1.0, %v6099_v1  ;;  %v2455_v19 = vadd.f32 %v8095_v6, %v2454_v7  ;;  %v5753_v20 = vpop.f32.mrb[94].mxu0 }
 0x778   : > { %v6103_v28 = vpop.eup %6102  ;;  %v2525_v29 = vadd.f32 1.0, %v6101_v12  ;;  %v2466_v30 = vadd.f32 %v5753_v20, %v8095_v6  ;;  %2734 = vmatmul.mubr.bf16.gmra.mrb[88].mxu1 %v8125_v8  ;;  %3115 = vmatmul.mubr.bf16.gmra.mrb[104].mxu0 %v8125_v8  ;;  %v2457_v10 = vpop.f32.mrb[95].mxu0  ;;  %v5270_v38 = vmul.f32 -1.442695, %v2463_v2 }
 0x779   : > { %v6105_v32 = vpop.eup %6104  ;;  %6106 = vrcp.f32 %v2527_v18  ;;  %v2528_v48 = vadd.f32 1.0, %v6103_v28  ;;  %v2458_v39 = vadd.f32 %v8095_v6, %v2457_v10  ;;  %2743 = vmatprep.mubr.bf16.mxu1 %v7061_v3  ;;  %3124 = vmatprep.mubr.bf16.mxu0 %v7061_v3  ;;  %v5268_v49 = vmul.f32 -1.442695, %v2455_v19  ;;  %v6065_v6 = vld [vmem:[#allocation20 + $0x74] ss:$8 sps:$4 sm:$0xff]  }
 0x77a   : > { %6108 = vrcp.f32 %v2525_v29  ;;  %v2526_v42 = vadd.f32 1.0, %v6105_v32  ;;  %3964 = vmatpush1.bf16.msra.mxu1 %v6054_v9  ;;  %v5271_v50 = vmul.f32 -1.442695, %v2466_v30 }
 0x77b   : > { %6110 = vrcp.f32 %v2528_v48  ;;  %3965 = vmatprep.subr.bf16.mxu1 %v6059_v22  ;;  %v5269_v52 = vmul.f32 -1.442695, %v2458_v39 }
 0x77c   : > { %6112 = vrcp.f32 %v2526_v42 }
 0x77d   : > { %6114 = vpow2.f32 %v5270_v38 }
 0x77e   : > { %6116 = vpow2.f32 %v5268_v49  ;;  %3966 = vmatpush1.bf16.msra.mxu1 %v6057_v41 }
 0x77f   : > { %6118 = vpow2.f32 %v5271_v50  ;;  %3967 = vmatprep.subr.bf16.mxu1 %v6062_v51 }
 0x780   : > { %6120 = vpow2.f32 %v5269_v52  ;;  %2744 = vmatmul.mubr.bf16.gmra.mrb[92].mxu1 %v8122_v0  ;;  %3125 = vmatmul.mubr.bf16.gmra.mrb[108].mxu0 %v8122_v0 }
 0x781   : > { %2753 = vmatprep.mubr.bf16.mxu1 %v7061_v3  ;;  %3134 = vmatprep.mubr.bf16.mxu0 %v7061_v3 }
 0x782   : > { %3968 = vmatpush1.bf16.msra.mxu1 %v6060_v53 }
 0x783   : > { %v6107_v4 = vpop.eup %6106  ;;  %3969 = vmatprep.subr.bf16.mxu1 %v6065_v6 }
 0x784   : > { %v6109_v58 = vpop.eup %6108 }
 0x785   : > { %v6111_v56 = vpop.eup %6110 }
 0x786   : > { %v6113_v57 = vpop.eup %6112  ;;  %v2570_v59 = vpack.c.bf16 %v6111_v56, %v6107_v4  ;;  %3970 = vmatpush1.bf16.msra.mxu1 %v6063_v55 }
 0x787   : > { %v6115_v60 = vpop.eup %6114  ;;  %v2569_v61 = vpack.c.bf16 %v6113_v57, %v6109_v58 }
 0x788   : > { %v6117_v62 = vpop.eup %6116  ;;  %v2531_v63 = vadd.f32 1.0, %v6115_v60 }
 0x789   : > { %v6119_v1 = vpop.eup %6118  ;;  %v2529_v2 = vadd.f32 1.0, %v6117_v62  ;;  %2754 = vmatmul.mubr.bf16.gmra.mrb[96].mxu1 %v2569_v61  ;;  %3135 = vmatmul.mubr.bf16.gmra.mrb[112].mxu0 %v2569_v61 }
 0x78a   : > { %v6121_v7 = vpop.eup %6120  ;;  %6122 = vrcp.f32 %v2531_v63  ;;  %v2532_v9 = vadd.f32 1.0, %v6119_v1  ;;  %2763 = vmatprep.mubr.bf16.mxu1 %v7061_v3  ;;  %3144 = vmatprep.mubr.bf16.mxu0 %v7061_v3 }
 0x78b   : > { %6124 = vrcp.f32 %v2529_v2  ;;  %v2530_v12 = vadd.f32 1.0, %v6121_v7 }
 0x78c   : > { %6126 = vrcp.f32 %v2532_v9 }
 0x78d   : > { %6128 = vrcp.f32 %v2530_v12 }
 0x791   : > { %2764 = vmatmul.mubr.bf16.gmra.mrb[100].mxu1 %v2570_v59  ;;  %3145 = vmatmul.mubr.bf16.gmra.mrb[116].mxu0 %v2570_v59 }
 0x792   : > { %2773 = vmatprep.mubr.bf16.mxu1 %v7061_v3  ;;  %3154 = vmatprep.mubr.bf16.mxu0 %v7061_v3 }
 0x794   : > { %v6123_v18 = vpop.eup %6122 }
 0x795   : > { %v6125_v19 = vpop.eup %6124 }
 0x796   : > { %v6127_v20 = vpop.eup %6126 }
 0x797   : > { %v6129_v22 = vpop.eup %6128  ;;  %v2572_v28 = vpack.c.bf16 %v6127_v20, %v6123_v18 }
 0x798   : > { %v2571_v29 = vpack.c.bf16 %v6129_v22, %v6125_v19 }
 0x79a   : > { %2774 = vmatmul.mubr.bf16.gmra.mrb[104].mxu1 %v2571_v29  ;;  %3155 = vmatmul.mubr.bf16.gmra.mrb[120].mxu0 %v2571_v29 }
 0x79b   : > { %2783 = vmatprep.mubr.bf16.mxu1 %v7061_v3  ;;  %3164 = vmatprep.mubr.bf16.mxu0 %v7061_v3 }
 0x7a2   : > { %2784 = vmatmul.mubr.bf16.gmra.mrb[108].mxu1 %v2572_v28  ;;  %3165 = vmatmul.mubr.bf16.gmra.mrb[124].mxu0 %v2572_v28 }
 0x7a3   : > { %5756 = vmatprep.mubr.msk.bf16.mxu0 %vm1987_vm1, %v7973_v16  ;;  %3987 = vmatprep.mubr.bf16.mxu1 %v7061_v3  ;;  %v2591_v16 = vlaneseq }
 0x7aa   : > { %3988 = vmatmul.mubr.bf16.vlgmr.msra.gmra.mrb[112].mxu1 %v8107_v54  ;;  %5757 = vmatmul.mubr.msk.bf16.vlgmr.msra.gmra.mrb[128].mxu0 %vm1987_vm1, %v7977_v17  ;;  %v2592_v17 = vshrl.u32 %v2591_v16, 7 }
 0x7ab   : > { %5760 = vmatprep.mubr.msk.bf16.mxu0 %vm1987_vm1, %v7997_v26  ;;  %3997 = vmatprep.mubr.bf16.mxu1 %v7061_v3 }
 0x7ac   : > { %v8172_v26 = vsub.s32 0, %v2592_v17 }
 0x7ae   : > { %9979 = vst [vmem:[#allocation55_spill] sm:$0xff] %v8172_v26 }
 0x7b2   : > { %3998 = vmatmul.mubr.bf16.gmra.mrb[116].mxu1 %v8105_v5  ;;  %5761 = vmatmul.mubr.msk.bf16.gmra.mrb[132].mxu0 %vm1987_vm1, %v8001_v27  ;;  %v2589_v27 = vld [vmem:[%s9980_s1] sm:$0x3]  ;;  %s10079_s1 = sld [smem:[#allocation113_spill]] }
 0x7b3   : > { %5764 = vmatprep.mubr.msk.bf16.mxu0 %vm1987_vm1, %v8021_v36  ;;  %4007 = vmatprep.mubr.bf16.mxu1 %v7061_v3  ;;  %v2970_v36 = vld [vmem:[%s9981_s0] sm:$0x3]  ;;  %s9604_s0 = sshll.u32 %s7222_s26, 12 }
 0x7ba   : > { %4008 = vmatmul.mubr.bf16.gmra.mrb[120].mxu1 %v8125_v8  ;;  %5765 = vmatmul.mubr.msk.bf16.gmra.mrb[136].mxu0 %vm1987_vm1, %v8025_v37  ;;  %v8180_v37 = vsub.s32 1, %v2592_v17 }
 0x7bb   : > { %5768 = vmatprep.mubr.msk.bf16.mxu0 %vm1987_vm1, %v8045_v46  ;;  %4017 = vmatprep.mubr.bf16.mxu1 %v7061_v3  ;;  %v8183_v46 = vrot.slane %v2589_v27, %v8172_v26 }
 0x7bc   : > { %9982 = vst [vmem:[#allocation56_spill] sm:$0xff] %v8180_v37  ;;  %v8192_v5 = vrot.slane %v2970_v36, %v8180_v37 }
 0x7c2   : > { %4018 = vmatmul.mubr.bf16.gmra.mrb[124].mxu1 %v8122_v0  ;;  %5769 = vmatmul.mubr.msk.bf16.gmra.mrb[140].mxu0 %vm1987_vm1, %v8049_v47  ;;  %v8186_v47 = vrot.slane %v2970_v36, %v8172_v26 }
 0x7c3   : > { %4027 = vmatprep.mubr.bf16.mxu1 %v7061_v3 }
 0x7ca   : > { %4028 = vmatmul.mubr.bf16.gmra.mrb[128].mxu1 %v2569_v61 }
 0x7cb   : > { %4037 = vmatprep.mubr.bf16.mxu1 %v7061_v3 }
 0x7d2   : > { %4038 = vmatmul.mubr.bf16.gmra.mrb[132].mxu1 %v2570_v59 }
 0x7d3   : > { %4047 = vmatprep.mubr.bf16.mxu1 %v7061_v3 }
 0x7da   : > { %4048 = vmatmul.mubr.bf16.gmra.mrb[136].mxu1 %v2571_v29 }
 0x7db   : > { %4057 = vmatprep.mubr.bf16.mxu1 %v7061_v3  ;;  %v8189_v3 = vrot.slane %v2589_v27, %v8180_v37 }
 0x7e2   : > { %4058 = vmatmul.mubr.bf16.gmra.mrb[140].mxu1 %v2572_v28 }
 0x83a   : > { %v2715_v54 = vpop.f32.mrb[80].mxu1  ;;  %v3096_v0 = vpop.f32.mrb[96].mxu0 }
 0x83b   : > { %v2716_v8 = vadd.f32 %v2715_v54, %v8183_v46  ;;  %v8196_v30 = vadd.f32 %v3096_v0, %v8186_v47  ;;  %v2717_v10 = vpop.f32.mrb[81].mxu1  ;;  %v3098_v32 = vpop.f32.mrb[97].mxu0 }
 0x83c   : > { %v2718_v48 = vadd.f32 %v2717_v10, %v8189_v3  ;;  %v8200_v38 = vadd.f32 %v3098_v32, %v8192_v5  ;;  %v2719_v39 = vpop.f32.mrb[82].mxu1  ;;  %v3100_v42 = vpop.f32.mrb[98].mxu0 }
 0x83d   : > { %v2794_v49 = vmul.f32 1.442695, %v2716_v8  ;;  %v3271_v41 = vand.u32 2147483647, %v8196_v30  ;;  %v2721_v50 = vpop.f32.mrb[83].mxu1  ;;  %v3102_v53 = vpop.f32.mrb[99].mxu0  ;;  %v2720_v55 = vadd.f32 %v2719_v39, %v8183_v46  ;;  %v8206_v4 = vadd.f32 %v3100_v42, %v8186_v47 }
 0x83e   : > { %v2796_v51 = vmul.f32 1.442695, %v2718_v48  ;;  %v3272_v52 = vand.u32 2147483647, %v8200_v38  ;;  %v2722_v56 = vadd.f32 %v2721_v50, %v8189_v3  ;;  %v8210_v57 = vadd.f32 %v3102_v53, %v8192_v5 }
 0x83f   : > { %6130 = vpow2.f32 %v2794_v49  ;;  %v3303_v6 = vsub.f32 0.0, %v3271_v41  ;;  %v2798_v60 = vmul.f32 1.442695, %v2720_v55  ;;  %v3273_v62 = vand.u32 2147483647, %v8206_v4 }
 0x840   : > { %6132 = vpow2.f32 %v2796_v51  ;;  %v3304_v58 = vsub.f32 0.0, %v3272_v52  ;;  %v2800_v63 = vmul.f32 1.442695, %v2722_v56  ;;  %v3274_v1 = vand.u32 2147483647, %v8210_v57 }
 0x841   : > { %v3335_v59 = vmul.f32 1.442695, %v3303_v6  ;;  %v3305_v9 = vsub.f32 0.0, %v3273_v62  ;;  %vm3207_vm4 = vcmp.ne.f32.partialorder %v8196_v30, %v8196_v30  ;;  %vm3208_vm5 = vcmp.ne.f32.partialorder %v8200_v38, %v8200_v38 }
 0x842   : > { %v3337_v61 = vmul.f32 1.442695, %v3304_v58  ;;  %v2725_v2 = vpop.f32.mrb[84].mxu1  ;;  %v3106_v7 = vpop.f32.mrb[100].mxu0  ;;  %v3306_v22 = vsub.f32 0.0, %v3274_v1  ;;  %vm3209_vm8 = vcmp.ne.f32.partialorder %v8206_v4, %v8206_v4  ;;  %vm3210_vm9 = vcmp.ne.f32.partialorder %v8210_v57, %v8210_v57 }
 0x843   : > { %6134 = vpow2.f32 %v3335_v59  ;;  %v2726_v12 = vadd.f32 %v2725_v2, %v8183_v46  ;;  %v8216_v18 = vadd.f32 %v3106_v7, %v8186_v47  ;;  %v2727_v19 = vpop.f32.mrb[85].mxu1  ;;  %v3108_v20 = vpop.f32.mrb[101].mxu0  ;;  %v3339_v27 = vmul.f32 1.442695, %v3305_v9 }
 0x844   : > { %6136 = vpow2.f32 %v3337_v61  ;;  %v2728_v28 = vadd.f32 %v2727_v19, %v8189_v3  ;;  %v8220_v29 = vadd.f32 %v3108_v20, %v8192_v5  ;;  %v2729_v16 = vpop.f32.mrb[86].mxu1  ;;  %v3110_v17 = vpop.f32.mrb[102].mxu0  ;;  %v3341_v0 = vmul.f32 1.442695, %v3306_v22 }
 0x845   : > { %6138 = vpow2.f32 %v2798_v60  ;;  %v2802_v36 = vmul.f32 1.442695, %v2726_v12  ;;  %v2731_v54 = vpop.f32.mrb[87].mxu1  ;;  %v3275_v8 = vand.u32 2147483647, %v8216_v18  ;;  %v8224_v48 = vpop.f32.mrb[103].mxu0  ;;  %v2730_v49 = vadd.f32 %v2729_v16, %v8183_v46 }
 0x846   : > { %6140 = vpow2.f32 %v2800_v63  ;;  %v2804_v10 = vmul.f32 1.442695, %v2728_v28  ;;  %v3276_v32 = vand.u32 2147483647, %v8220_v29  ;;  %v8228_v41 = vadd.f32 %v3110_v17, %v8186_v47 }
 0x847   : > { %6142 = vpow2.f32 %v3339_v27  ;;  %v3307_v42 = vsub.f32 0.0, %v3275_v8  ;;  %v2732_v53 = vadd.f32 %v2731_v54, %v8189_v3  ;;  %v2806_v58 = vmul.f32 1.442695, %v2730_v49 }
 0x848   : > { %6144 = vpow2.f32 %v3341_v0  ;;  %v3308_v52 = vsub.f32 0.0, %v3276_v32  ;;  %v3277_v63 = vand.u32 2147483647, %v8228_v41  ;;  %vm3211_vm12 = vcmp.ne.f32.partialorder %v8216_v18, %v8216_v18 }
 0x849   : > { %v6131_v39 = vpop.eup %6130  ;;  %6146 = vpow2.f32 %v2802_v36  ;;  %v3343_v55 = vmul.f32 1.442695, %v3307_v42  ;;  %v2808_v7 = vmul.f32 1.442695, %v2732_v53  ;;  %vm3212_vm13 = vcmp.ne.f32.partialorder %v8220_v29, %v8220_v29 }
 0x84a   : > { %v6133_v50 = vpop.eup %6132  ;;  %v2858_v51 = vmax.f32 %v6131_v39, 1e-05  ;;  %6148 = vpow2.f32 %v2804_v10  ;;  %v3345_v59 = vmul.f32 1.442695, %v3308_v52  ;;  %vm3213_vm15 = vcmp.ne.f32.partialorder %v8228_v41, %v8228_v41 }
 0x84b   : > { %v2859_v6 = vmax.f32 %v6133_v50, 1e-05  ;;  %v8231_v60 = vpop.f32.mrb[88].mxu1  ;;  %6150 = vpow2.f32 %v3343_v55  ;;  %v8243_v9 = vpop.f32.mrb[104].mxu0 }
 0x84c   : > { %v2890_v56 = vmin.f32 %v2858_v51, 1000000.0  ;;  %6152 = vpow2.f32 %v3345_v59  ;;  %v8245_v12 = vpop.f32.mrb[89].mxu1  ;;  %v8251_v16 = vpop.f32.mrb[105].mxu0 }
 0x84d   : > { %v8233_v61 = vpop.eup %6134  ;;  %v2891_v62 = vmin.f32 %v2859_v6, 1000000.0  ;;  %6154 = vpow2.f32 %v2806_v58  ;;  %v8253_v17 = vpop.f32.mrb[90].mxu1 }
 0x84e   : > { %v8236_v1 = vpop.eup %6136  ;;  %2922 = vst [vmem:[%s8239_s17] sm:$0xff] %v2890_v56  ;;  %v3399_v2 = vadd.f32 1.0, %v8233_v61  ;;  %v3402_v20 = vmul.f32 -0.5, %v8233_v61  ;;  %v3405_v36 = vand.u32 2147483647, %v8233_v61  ;;  %v8256_v0 = vpop.f32.mrb[106].mxu0 }
 0x84f   : > { %v6139_v19 = vpop.eup %6138  ;;  %2923 = vst [vmem:[%s8239_s17 + $0x8] sm:$0xff] %v2891_v62  ;;  %v3408_v22 = vadd.f32 1.0, %v8236_v1  ;;  %v3411_v28 = vmul.f32 -0.5, %v8236_v1  ;;  %v3414_v8 = vand.u32 2147483647, %v8236_v1  ;;  %v8259_v32 = vpop.f32.mrb[91].mxu1 }
 0x850   : > { %v6141_v27 = vpop.eup %6140  ;;  %6156 = vlog2.f32 %v3399_v2  ;;  %v2860_v54 = vmax.f32 %v6139_v19, 1e-05  ;;  %v8265_v51 = vpop.f32.mrb[107].mxu0  ;;  %v3403_v53 = vadd.f32 1.0, %v3402_v20  ;;  %vm8275_vm2 = vcmp.lt.f32.partialorder %v3405_v36, 0.0004427343 }
 0x851   : > { %6158 = vlog2.f32 %v3408_v22  ;;  %v2861_v10 = vmax.f32 %v6141_v27, 1e-05  ;;  %v8261_v39 = vpop.eup %6142  ;;  %v3412_v6 = vadd.f32 1.0, %v3411_v28  ;;  %v3309_v22 = vsub.f32 0.0, %v3277_v63 }
 0x852   : > { %v2892_v50 = vmin.f32 %v2860_v54, 1000000.0  ;;  %6160 = vpow2.f32 %v2808_v7  ;;  %v8267_v52 = vpop.eup %6144  ;;  %v3417_v55 = vadd.f32 1.0, %v8261_v39  ;;  %v3420_v58 = vmul.f32 -0.5, %v8261_v39 }
 0x853   : > { %v8271_v56 = vpop.f32.mrb[92].mxu1  ;;  %v8273_v59 = vpop.f32.mrb[108].mxu0  ;;  %v2893_v7 = vmin.f32 %v2861_v10, 1000000.0  ;;  %v3426_v19 = vadd.f32 1.0, %v8267_v52  ;;  %v3429_v20 = vmul.f32 -0.5, %v8267_v52  ;;  %v2736_v27 = vadd.f32 %v8231_v60, %v8183_v46 }
 0x854   : > { %v6147_v62 = vpop.eup %6146  ;;  %2924 = vst [vmem:[%s8239_s17 + $0x10] sm:$0xff] %v2892_v50  ;;  %vm8282_vm3 = vcmp.lt.f32.partialorder %v3414_v8, 0.0004427343  ;;  %6162 = vlog2.f32 %v3417_v55  ;;  %v3423_v36 = vand.u32 2147483647, %v8261_v39  ;;  %v8288_v42 = vpop.f32.mrb[93].mxu1  ;;  %v3404_v55 = vmul.f32 %v8233_v61, %v3403_v53 }
 0x855   : > { %v6149_v28 = vpop.eup %6148  ;;  %v2862_v49 = vmax.f32 %v6147_v62, 1e-05  ;;  %2925 = vst [vmem:[%s8239_s17 + $0x18] sm:$0xff] %v2893_v7  ;;  %6164 = vlog2.f32 %v3426_v19  ;;  %v3432_v50 = vand.u32 2147483647, %v8267_v52  ;;  %v8293_v40 = vpop.f32.mrb[109].mxu0  ;;  %v8439_v2 = vadd.f32 %v8251_v16, %v8192_v5 }
 0x856   : > { %v2863_v63 = vmax.f32 %v6149_v28, 1e-05  ;;  %v8295_v8 = vpop.eup %6150  ;;  %v3421_v62 = vadd.f32 1.0, %v3420_v58  ;;  %v8301_v44 = vpop.f32.mrb[94].mxu1  ;;  %v3413_v28 = vmul.f32 %v8236_v1, %v3412_v6  ;;  %v3430_v31 = vadd.f32 1.0, %v3429_v20 }
 0x857   : > { %v2894_v54 = vmin.f32 %v2862_v49, 1000000.0  ;;  %v8303_v19 = vpop.f32.mrb[110].mxu0  ;;  %v8305_v10 = vpop.eup %6152  ;;  %v3435_v34 = vadd.f32 1.0, %v8295_v8  ;;  %v3347_v61 = vmul.f32 1.442695, %v3309_v22  ;;  %v8324_v6 = vadd.f32 %v8224_v48, %v8192_v5 }
 0x858   : > { %v8311_v53 = vpop.f32.mrb[95].mxu1  ;;  %v8313_v49 = vpop.f32.mrb[111].mxu0  ;;  %vm8315_vm6 = vcmp.lt.f32.partialorder %v3423_v36, 0.0004427343  ;;  %v3438_v21 = vmul.f32 -0.5, %v8295_v8  ;;  %v3444_v1 = vadd.f32 1.0, %v8305_v10 }
 0x859   : > { %v6155_v58 = vpop.eup %6154  ;;  %2926 = vst [vmem:[%s8239_s17 + $0x20] sm:$0xff] %v2894_v54  ;;  %v2895_v24 = vmin.f32 %v2863_v63, 1000000.0  ;;  %6166 = vlog2.f32 %v3435_v34  ;;  %v3441_v22 = vand.u32 2147483647, %v8295_v8  ;;  %v3447_v45 = vmul.f32 -0.5, %v8305_v10 }
 0x85a   : > { %v6157_v20 = vpop.eup %6156  ;;  %v2864_v36 = vmax.f32 %v6155_v58, 1e-05  ;;  %vm8328_vm7 = vcmp.lt.f32.partialorder %v3432_v50, 0.0004427343  ;;  %6168 = vlog2.f32 %v3444_v1  ;;  %v3450_v63 = vand.u32 2147483647, %v8305_v10 }
 0x85b   : > { %v6159_v43 = vpop.eup %6158  ;;  %v3401_v35 = vmul.f32 0.6931472, %v6157_v20  ;;  %2927 = vst [vmem:[%s8239_s17 + $0x28] sm:$0xff] %v2895_v24  ;;  %v3422_v34 = vmul.f32 %v8261_v39, %v3421_v62  ;;  %6170 = vpow2.f32 %v3347_v61  ;;  %v3439_v1 = vadd.f32 1.0, %v3438_v21 }
 0x85c   : > { %v6161_v33 = vpop.eup %6160  ;;  %v3410_v48 = vmul.f32 0.6931472, %v6159_v43  ;;  %v2896_v25 = vmin.f32 %v2864_v36, 1000000.0  ;;  %v8337_v58 = vpop.f32.mrb[96].mxu1  ;;  %v3431_v43 = vmul.f32 %v8267_v52, %v3430_v31  ;;  %v9991_v62 = vmax.f32 %v8196_v30, 0.0 }
 0x85d   : > { %v8339_v50 = vpop.f32.mrb[112].mxu0  ;;  %v3407_v24 = vsel %vm8275_vm2, %v3404_v55, %v3401_v35  ;;  %v2865_v20 = vmax.f32 %v6161_v33, 1e-05  ;;  %v8346_v23 = vpop.f32.mrb[97].mxu1  ;;  %vm8354_vm10 = vcmp.lt.f32.partialorder %v3441_v22, 0.0004427343  ;;  %vm3214_vm0 = vcmp.ne.f32.partialorder %v8324_v6, %v8324_v6 }
 0x85e   : > { %v8348_v39 = vpop.f32.mrb[113].mxu0  ;;  %v3687_v61 = vadd.f32 %v3407_v24, %v9991_v62  ;;  %v3416_v36 = vsel %vm8282_vm3, %v3413_v28, %v3410_v48  ;;  %v3448_v35 = vadd.f32 1.0, %v3447_v45  ;;  %2928 = vst [vmem:[%s8239_s17 + $0x30] sm:$0xff] %v2896_v25  ;;  %v3278_v31 = vand.u32 2147483647, %v8324_v6  ;;  %v8360_v21 = vpop.f32.mrb[98].mxu1 }
 0x85f   : > { %v8362_v33 = vpop.f32.mrb[114].mxu0  ;;  %v6163_v52 = vpop.eup %6162  ;;  %v9994_v55 = vmax.f32 %v8200_v38, 0.0  ;;  %v2897_v62 = vmin.f32 %v2865_v20, 1000000.0  ;;  %v8370_v28 = vadd.f32 %v8243_v9, %v8186_v47  ;;  %v2738_v20 = vadd.f32 %v8245_v12, %v8189_v3 }
 0x860   : > { %v8372_v25 = vpop.f32.mrb[99].mxu1  ;;  %v8374_v45 = vpop.f32.mrb[115].mxu0  ;;  %v3719_v48 = vsel %vm3207_vm4, %v8196_v30, %v3687_v61  ;;  %v3419_v13 = vmul.f32 0.6931472, %v6163_v52  ;;  %v2810_v11 = vmul.f32 1.442695, %v2736_v27  ;;  %vm3216_vm3 = vcmp.ne.f32.partialorder %v8439_v2, %v8439_v2 }
 0x861   : > { %v3688_v24 = vadd.f32 %v3416_v36, %v9994_v55  ;;  %v6165_v22 = vpop.eup %6164  ;;  %v3310_v36 = vsub.f32 0.0, %v3278_v31  ;;  %v3751_v60 = vmax.f32 %v3719_v48, 0.0001  ;;  %2929 = vst [vmem:[%s8239_s17 + $0x38] sm:$0xff] %v2897_v62  ;;  %vm8389_vm11 = vcmp.lt.f32.partialorder %v3450_v63, 0.0004427343 }
 0x862   : > { %v3428_v55 = vmul.f32 0.6931472, %v6165_v22  ;;  %v3425_v14 = vsel %vm8315_vm6, %v3422_v34, %v3419_v13  ;;  %v9997_v31 = vmax.f32 %v8206_v4, 0.0  ;;  %6172 = vpow2.f32 %v2810_v11 }
 0x863   : > { %v3720_v9 = vsel %vm3208_vm5, %v8200_v38, %v3688_v24  ;;  %v3349_v61 = vmul.f32 1.442695, %v3310_v36  ;;  %v3783_v12 = vmin.f32 %v3751_v60, 10000.0  ;;  %v6167_v24 = vpop.eup %6166  ;;  %v9998_v27 = vmax.f32 %v8210_v57, 0.0 }
 0x864   : > { %v3752_v15 = vmax.f32 %v3720_v9, 0.0001  ;;  %v3689_v52 = vadd.f32 %v3425_v14, %v9997_v31  ;;  %v3434_v38 = vsel %vm8328_vm7, %v3431_v43, %v3428_v55  ;;  %v3440_v13 = vmul.f32 %v8295_v8, %v3439_v1  ;;  %v8400_v63 = vpop.f32.mrb[100].mxu1  ;;  %v8402_v34 = vpop.f32.mrb[116].mxu0 }
 0x865   : > { %v3690_v7 = vadd.f32 %v3434_v38, %v9998_v27  ;;  %6174 = vpow2.f32 %v3349_v61  ;;  %v6169_v22 = vpop.eup %6168  ;;  %3815 = vst [vmem:[%s8405_s8] sm:$0xff] %v3783_v12  ;;  %v3437_v14 = vmul.f32 0.6931472, %v6167_v24  ;;  %v2812_v8 = vmul.f32 1.442695, %v2738_v20  ;;  %v8421_v60 = vpop.f32.mrb[101].mxu1 }
 0x866   : > { %v3784_v62 = vmin.f32 %v3752_v15, 10000.0  ;;  %v3721_v11 = vsel %vm3209_vm8, %v8206_v4, %v3689_v52  ;;  %v3279_v15 = vand.u32 2147483647, %v8370_v28  ;;  %v8413_v54 = vpop.eup %6170  ;;  %v3446_v48 = vmul.f32 0.6931472, %v6169_v22  ;;  %v8423_v9 = vpop.f32.mrb[117].mxu0 }
 0x867   : > { %v3753_v43 = vmax.f32 %v3721_v11, 0.0001  ;;  %v3722_v1 = vsel %vm3210_vm9, %v8210_v57, %v3690_v7  ;;  %v3449_v36 = vmul.f32 %v8305_v10, %v3448_v35  ;;  %v3443_v20 = vsel %vm8354_vm10, %v3440_v13, %v3437_v14  ;;  %v8429_v12 = vpop.f32.mrb[102].mxu1  ;;  %v8431_v31 = vpop.f32.mrb[118].mxu0 }
 0x868   : > { %3816 = vst [vmem:[%s8405_s8 + $0x8] sm:$0xff] %v3784_v62  ;;  %v3754_v4 = vmax.f32 %v3722_v1, 0.0001  ;;  %v3180_v55 = vmax.f32 %v8220_v29, 0.0  ;;  %v3453_v61 = vadd.f32 1.0, %v8413_v54  ;;  %v9999_v10 = vmax.f32 %v8216_v18, 0.0 }
 0x869   : > { %v3785_v57 = vmin.f32 %v3753_v43, 10000.0  ;;  %v3452_v52 = vsel %vm8389_vm11, %v3449_v36, %v3446_v48  ;;  %v8441_v38 = vpop.f32.mrb[103].mxu1  ;;  %v8443_v24 = vpop.f32.mrb[119].mxu0  ;;  %v3311_v30 = vsub.f32 0.0, %v3279_v15  ;;  %v3456_v22 = vmul.f32 -0.5, %v8413_v54 }
 0x86a   : > { %v3691_v35 = vadd.f32 %v3443_v20, %v9999_v10  ;;  %v3786_v62 = vmin.f32 %v3754_v4, 10000.0  ;;  %v3692_v27 = vadd.f32 %v3452_v52, %v3180_v55  ;;  %6176 = vlog2.f32 %v3453_v61 }
 0x86b   : > { %3817 = vst [vmem:[%s8405_s8 + $0x10] sm:$0xff] %v3785_v57  ;;  %6178 = vpow2.f32 %v2812_v8  ;;  %v3351_v14 = vmul.f32 1.442695, %v3311_v30  ;;  %v3280_v43 = vand.u32 2147483647, %v8439_v2  ;;  %v8459_v15 = vadd.f32 %v8256_v0, %v8186_v47 }
 0x86c   : > { %v3723_v7 = vsel %vm3211_vm12, %v8216_v18, %v3691_v35  ;;  %3818 = vst [vmem:[%s8405_s8 + $0x18] sm:$0xff] %v3786_v62  ;;  %v3724_v13 = vsel %vm3212_vm13, %v8220_v29, %v3692_v27  ;;  %v6173_v1 = vpop.eup %6172  ;;  %v2740_v18 = vadd.f32 %v8253_v17, %v8183_v46  ;;  %v2742_v29 = vadd.f32 %v8259_v32, %v8189_v3 }
 0x86d   : > { %v3755_v16 = vmax.f32 %v3723_v7, 0.0001  ;;  %v3756_v11 = vmax.f32 %v3724_v13, 0.0001  ;;  %v8463_v8 = vpop.f32.mrb[104].mxu1  ;;  %v8465_v36 = vpop.f32.mrb[120].mxu0  ;;  %6180 = vpow2.f32 %v3351_v14  ;;  %vm3215_vm2 = vcmp.ne.f32.partialorder %v8370_v28, %v8370_v28 }
 0x86e   : > { %v2866_v55 = vmax.f32 %v6173_v1, 1e-05  ;;  %v3312_v61 = vsub.f32 0.0, %v3280_v43  ;;  %v8469_v17 = vpop.f32.mrb[105].mxu1  ;;  %v8471_v57 = vpop.f32.mrb[121].mxu0  ;;  %v3457_v35 = vadd.f32 1.0, %v3456_v22  ;;  %v2746_v22 = vadd.f32 %v8271_v56, %v8183_v46 }
 0x86f   : > { %v3787_v48 = vmin.f32 %v3755_v16, 10000.0  ;;  %v8467_v4 = vpop.eup %6174  ;;  %v3788_v20 = vmin.f32 %v3756_v11, 10000.0  ;;  %v3459_v0 = vand.u32 2147483647, %v8413_v54  ;;  %v2814_v10 = vmul.f32 1.442695, %v2740_v18 }
 0x870   : > { %v3462_v32 = vadd.f32 1.0, %v8467_v4  ;;  %v2898_v52 = vmin.f32 %v2866_v55, 1000000.0  ;;  %v3353_v62 = vmul.f32 1.442695, %v3312_v61  ;;  %v8477_v27 = vpop.f32.mrb[106].mxu1  ;;  %v8486_v11 = vadd.f32 %v8265_v51, %v8192_v5 }
 0x871   : > { %3819 = vst [vmem:[%s8405_s8 + $0x20] sm:$0xff] %v3787_v48  ;;  %3820 = vst [vmem:[%s8405_s8 + $0x28] sm:$0xff] %v3788_v20  ;;  %v3465_v7 = vmul.f32 -0.5, %v8467_v4  ;;  %v3281_v30 = vand.u32 2147483647, %v8459_v15  ;;  %v8481_v16 = vpop.f32.mrb[122].mxu0  ;;  %v8497_v20 = vadd.f32 %v8273_v59, %v8186_v47  ;;  %v3458_v51 = vmul.f32 %v8413_v54, %v3457_v35 }
 0x872   : > { %6182 = vlog2.f32 %v3462_v32  ;;  %2930 = vst [vmem:[%s8239_s17 + $0x40] sm:$0xff] %v2898_v52  ;;  %v2816_v13 = vmul.f32 1.442695, %v2742_v29  ;;  %v8490_v14 = vpop.f32.mrb[107].mxu1  ;;  %v8492_v43 = vpop.f32.mrb[123].mxu0  ;;  %v3181_v48 = vmax.f32 %v8228_v41, 0.0  ;;  %vm3217_vm6 = vcmp.ne.f32.partialorder %v8459_v15, %v8459_v15 }
 0x873   : > { %6184 = vpow2.f32 %v3353_v62  ;;  %10000 = vst [vmem:[#allocation57_spill] sm:$0xff] %v8492_v43  ;;  %v3313_v18 = vsub.f32 0.0, %v3281_v30  ;;  %vm3460_vm14 = vcmp.lt.f32.partialorder %v3459_v0, 0.0004427343  ;;  %v3282_v32 = vand.u32 2147483647, %v8486_v11 }
 0x874   : > { %v6177_v1 = vpop.eup %6176  ;;  %6186 = vpow2.f32 %v2814_v10  ;;  %v3466_v62 = vadd.f32 1.0, %v3465_v7  ;;  %v2818_v37 = vmul.f32 1.442695, %v2746_v22  ;;  %v3283_v10 = vand.u32 2147483647, %v8497_v20 }
 0x875   : > { %v6179_v29 = vpop.eup %6178  ;;  %v3455_v55 = vmul.f32 0.6931472, %v6177_v1  ;;  %6188 = vpow2.f32 %v2816_v13  ;;  %v3355_v61 = vmul.f32 1.442695, %v3313_v18  ;;  %v8502_v30 = vpop.f32.mrb[108].mxu1  ;;  %v3314_v1 = vsub.f32 0.0, %v3282_v32 }
 0x876   : > { %v2867_v56 = vmax.f32 %v6179_v29, 1e-05  ;;  %v8504_v43 = vpop.f32.mrb[124].mxu0  ;;  %v8506_v54 = vpop.f32.mrb[109].mxu1  ;;  %v3315_v35 = vsub.f32 0.0, %v3283_v10  ;;  %v2748_v7 = vadd.f32 %v8288_v42, %v8189_v3  ;;  %v8528_v42 = vadd.f32 %v8293_v40, %v8192_v5 }
 0x877   : > { %v3461_v52 = vsel %vm3460_vm14, %v3458_v51, %v3455_v55  ;;  %6190 = vpow2.f32 %v3355_v61  ;;  %v8508_v0 = vpop.eup %6180  ;;  %v8514_v13 = vpop.f32.mrb[125].mxu0  ;;  %v3468_v18 = vand.u32 2147483647, %v8467_v4  ;;  %vm3218_vm8 = vcmp.ne.f32.partialorder %v8486_v11, %v8486_v11 }
 0x878   : > { %v3693_v26 = vadd.f32 %v3461_v52, %v3181_v48  ;;  %v2899_v59 = vmin.f32 %v2867_v56, 1000000.0  ;;  %6192 = vpow2.f32 %v2818_v37  ;;  %v8516_v22 = vpop.f32.mrb[110].mxu1  ;;  %v3471_v29 = vadd.f32 1.0, %v8508_v0  ;;  %v8522_v55 = vpop.f32.mrb[126].mxu0 }
 0x879   : > { %10001 = vst [vmem:[#allocation58_spill] sm:$0xff] %v8516_v22  ;;  %10002 = vst [vmem:[#allocation59_spill] sm:$0xff] %v8522_v55  ;;  %v8524_v51 = vpop.f32.mrb[111].mxu1  ;;  %v3357_v56 = vmul.f32 1.442695, %v3314_v1  ;;  %v3182_v52 = vmax.f32 %v8324_v6, 0.0  ;;  %v2750_v55 = vadd.f32 %v8301_v44, %v8183_v46  ;;  %vm3219_vm11 = vcmp.ne.f32.partialorder %v8497_v20, %v8497_v20 }
 0x87a   : > { %v3725_v48 = vsel %vm3213_vm15, %v8228_v41, %v3693_v26  ;;  %2931 = vst [vmem:[%s8239_s17 + $0x48] sm:$0xff] %v2899_v59  ;;  %10003 = vst [vmem:[#allocation60_spill] sm:$0xff] %v8524_v51  ;;  %v3359_v61 = vmul.f32 1.442695, %v3315_v35  ;;  %v3467_v26 = vmul.f32 %v8467_v4, %v3466_v62  ;;  %6194 = vlog2.f32 %v3471_v29  ;;  %v8533_v10 = vpop.f32.mrb[127].mxu0 }
 0x87b   : > { %v3757_v37 = vmax.f32 %v3725_v48, 0.0001  ;;  %10004 = vst [vmem:[#allocation61_spill] sm:$0xff] %v8533_v10  ;;  %6196 = vpow2.f32 %v3357_v56  ;;  %v2820_v35 = vmul.f32 1.442695, %v2748_v7  ;;  %v3474_v40 = vmul.f32 -0.5, %v8508_v0 }
 0x87c   : > { %v6183_v32 = vpop.eup %6182  ;;  %vm3469_vm1 = vcmp.lt.f32.partialorder %v3468_v18, 0.0004427343  ;;  %6198 = vpow2.f32 %v3359_v61  ;;  %v3284_v7 = vand.u32 2147483647, %v8528_v42  ;;  %vm3220_vm12 = vcmp.ne.f32.partialorder %v8528_v42, %v8528_v42 }
 0x87d   : > { %v8535_v59 = vpop.eup %6184  ;;  %v3789_v48 = vmin.f32 %v3757_v37, 10000.0  ;;  %v3464_v1 = vmul.f32 0.6931472, %v6183_v32  ;;  %v8541_v62 = vpop.f32.mrb[112].mxu1 }
 0x87e   : > { %v6187_v51 = vpop.eup %6186  ;;  %v3480_v4 = vadd.f32 1.0, %v8535_v59  ;;  %10005 = vst [vmem:[#allocation62_spill] sm:$0xff] %v8541_v62  ;;  %v8543_v29 = vpop.f32.mrb[128].mxu0  ;;  %v3483_v22 = vmul.f32 -0.5, %v8535_v59  ;;  %v3316_v61 = vsub.f32 0.0, %v3284_v7  ;;  %v3475_v7 = vadd.f32 1.0, %v3474_v40 }
 0x87f   : > { %10006 = vst [vmem:[#allocation63_spill] sm:$0xff] %v8543_v29  ;;  %v6189_v41 = vpop.eup %6188  ;;  %3821 = vst [vmem:[%s8405_s8 + $0x30] sm:$0xff] %v3789_v48  ;;  %v3470_v10 = vsel %vm3469_vm1, %v3467_v26, %v3464_v1  ;;  %v2868_v37 = vmax.f32 %v6187_v51, 1e-05  ;;  %v8547_v56 = vpop.f32.mrb[113].mxu1 }
 0x880   : > { %10007 = vst [vmem:[#allocation64_spill] sm:$0xff] %v8547_v56  ;;  %v8549_v32 = vpop.f32.mrb[129].mxu0  ;;  %v3694_v18 = vadd.f32 %v3470_v10, %v3182_v52  ;;  %6200 = vlog2.f32 %v3480_v4  ;;  %v8553_v62 = vpop.f32.mrb[114].mxu1  ;;  %v2869_v51 = vmax.f32 %v6189_v41, 1e-05 }
 0x881   : > { %10008 = vst [vmem:[#allocation65_spill] sm:$0xff] %v8549_v32  ;;  %10009 = vst [vmem:[#allocation66_spill] sm:$0xff] %v8553_v62  ;;  %v8555_v29 = vpop.f32.mrb[130].mxu0  ;;  %v2900_v26 = vmin.f32 %v2868_v37, 1000000.0  ;;  %6202 = vpow2.f32 %v2820_v35  ;;  %v8557_v48 = vpop.f32.mrb[115].mxu1 }
 0x882   : > { %10010 = vst [vmem:[#allocation67_spill] sm:$0xff] %v8555_v29  ;;  %10011 = vst [vmem:[#allocation68_spill] sm:$0xff] %v8557_v48  ;;  %v8559_v1 = vpop.eup %6190  ;;  %v3726_v52 = vsel %vm3214_vm0, %v8324_v6, %v3694_v18  ;;  %v3477_v10 = vand.u32 2147483647, %v8508_v0  ;;  %v8569_v37 = vpop.f32.mrb[131].mxu0  ;;  %v8575_v29 = vadd.f32 %v8303_v19, %v8186_v47 }
 0x883   : > { %10012 = vst [vmem:[#allocation69_spill] sm:$0xff] %v8569_v37  ;;  %v6193_v41 = vpop.eup %6192  ;;  %v3758_v35 = vmax.f32 %v3726_v52, 0.0001  ;;  %2932 = vst [vmem:[%s8239_s17 + $0x50] sm:$0xff] %v2900_v26  ;;  %v3489_v48 = vadd.f32 1.0, %v8559_v1  ;;  %v3484_v37 = vadd.f32 1.0, %v3483_v22 }
 0x884   : > { %v2901_v6 = vmin.f32 %v2869_v51, 1000000.0  ;;  %v2870_v18 = vmax.f32 %v6193_v41, 1e-05  ;;  %v3361_v44 = vmul.f32 1.442695, %v3316_v61  ;;  %v6195_v40 = vpop.eup %6194  ;;  %v3476_v61 = vmul.f32 %v8508_v0, %v3475_v7 }
 0x885   : > { %v3790_v4 = vmin.f32 %v3758_v35, 10000.0  ;;  %v3486_v62 = vand.u32 2147483647, %v8535_v59  ;;  %6204 = vlog2.f32 %v3489_v48  ;;  %v3492_v26 = vmul.f32 -0.5, %v8559_v1  ;;  %v8582_v32 = vpop.f32.mrb[116].mxu1  ;;  %v8584_v56 = vpop.eup %6196 }
 0x886   : > { %2933 = vst [vmem:[%s8239_s17 + $0x58] sm:$0xff] %v2901_v6  ;;  %v2902_v52 = vmin.f32 %v2870_v18, 1000000.0  ;;  %6206 = vpow2.f32 %v3361_v44  ;;  %v2822_v19 = vmul.f32 1.442695, %v2750_v55  ;;  %v2752_v48 = vadd.f32 %v8311_v53, %v8189_v3  ;;  %v8593_v41 = vpop.f32.mrb[132].mxu0  ;;  %v8600_v0 = vpop.eup %6198 }
 0x887   : > { %3822 = vst [vmem:[%s8405_s8 + $0x38] sm:$0xff] %v3790_v4  ;;  %v3473_v51 = vmul.f32 0.6931472, %v6195_v40  ;;  %v3285_v22 = vand.u32 2147483647, %v8575_v29  ;;  %10013 = vst [vmem:[#allocation70_spill] sm:$0xff] %v8593_v41  ;;  %v3485_v6 = vmul.f32 %v8535_v59, %v3484_v37  ;;  %vm3221_vm15 = vcmp.ne.f32.partialorder %v8575_v29, %v8575_v29 }
 0x888   : > { %vm3478_vm4 = vcmp.lt.f32.partialorder %v3477_v10, 0.0004427343  ;;  %v3498_v35 = vadd.f32 1.0, %v8584_v56  ;;  %2934 = vst [vmem:[%s8239_s17 + $0x60] sm:$0xff] %v2902_v52  ;;  %6208 = vpow2.f32 %v2822_v19  ;;  %v8598_v4 = vpop.f32.mrb[133].mxu0  ;;  %v10017_v10 = vmax.f32 %v8370_v28, 0.0 }
 0x889   : > { %10014 = vst [vmem:[#allocation71_spill] sm:$0xff] %v8598_v4  ;;  %v3479_v7 = vsel %vm3478_vm4, %v3476_v61, %v3473_v51  ;;  %vm8603_vm5 = vcmp.lt.f32.partialorder %v3486_v62, 0.0004427343  ;;  %v3317_v53 = vsub.f32 0.0, %v3285_v22  ;;  %v3493_v55 = vadd.f32 1.0, %v3492_v26  ;;  %v8610_v19 = vpop.f32.mrb[117].mxu1 }
 0x88a   : > { %v6201_v44 = vpop.eup %6200  ;;  %v3695_v40 = vadd.f32 %v3479_v7, %v10017_v10  ;;  %v3495_v52 = vand.u32 2147483647, %v8559_v1  ;;  %6210 = vlog2.f32 %v3498_v35  ;;  %v3501_v51 = vmul.f32 -0.5, %v8584_v56  ;;  %v8624_v35 = vpop.f32.mrb[118].mxu1 }
 0x88b   : > { %v6203_v4 = vpop.eup %6202  ;;  %v3482_v41 = vmul.f32 0.6931472, %v6201_v44  ;;  %v3507_v59 = vadd.f32 1.0, %v8600_v0  ;;  %v2824_v62 = vmul.f32 1.442695, %v2752_v48  ;;  %v8622_v22 = vadd.f32 %v8313_v49, %v8192_v5  ;;  %10018 = vst [vmem:[#allocation72_spill] sm:$0xff] %v8624_v35 }
 0x88c   : > { %v3727_v37 = vsel %vm3215_vm2, %v8370_v28, %v3695_v40  ;;  %v2871_v26 = vmax.f32 %v6203_v4, 1e-05  ;;  %v3363_v61 = vmul.f32 1.442695, %v3317_v53  ;;  %v8626_v7 = vpop.f32.mrb[134].mxu0  ;;  %v8631_v28 = vpop.f32.mrb[119].mxu1 }
 0x88d   : > { %10019 = vst [vmem:[#allocation73_spill] sm:$0xff] %v8626_v7  ;;  %v3759_v44 = vmax.f32 %v3727_v37, 0.0001  ;;  %v3488_v48 = vsel %vm8603_vm5, %v3485_v6, %v3482_v41  ;;  %v3504_v10 = vand.u32 2147483647, %v8584_v56  ;;  %6212 = vlog2.f32 %v3507_v59  ;;  %v8633_v4 = vpop.f32.mrb[135].mxu0 }
 0x88e   : > { %v10020_v53 = vmax.f32 %v8439_v2, 0.0  ;;  %v3513_v40 = vand.u32 2147483647, %v8600_v0  ;;  %v2903_v35 = vmin.f32 %v2871_v26, 1000000.0  ;;  %6214 = vpow2.f32 %v3363_v61 }
 0x88f   : > { %v6205_v37 = vpop.eup %6204  ;;  %v3791_v7 = vmin.f32 %v3759_v44, 10000.0  ;;  %v3494_v41 = vmul.f32 %v8559_v1, %v3493_v55  ;;  %vm8639_vm7 = vcmp.lt.f32.partialorder %v3495_v52, 0.0004427343  ;;  %6216 = vpow2.f32 %v2824_v62 }
 0x890   : > { %v3696_v49 = vadd.f32 %v3488_v48, %v10020_v53  ;;  %v8643_v18 = vpop.eup %6206  ;;  %v3491_v48 = vmul.f32 0.6931472, %v6205_v37  ;;  %v3510_v26 = vmul.f32 -0.5, %v8600_v0  ;;  %2935 = vst [vmem:[%s8239_s17 + $0x68] sm:$0xff] %v2903_v35  ;;  %v3286_v61 = vand.u32 2147483647, %v8622_v22 }
 0x891   : > { %3823 = vst [vmem:[%s8405_s8 + $0x40] sm:$0xff] %v3791_v7  ;;  %v3502_v55 = vadd.f32 1.0, %v3501_v51  ;;  %vm8655_vm9 = vcmp.lt.f32.partialorder %v3504_v10, 0.0004427343  ;;  %v3516_v62 = vadd.f32 1.0, %v8643_v18  ;;  %v2756_v53 = vadd.f32 %v8337_v58, %v8183_v46  ;;  %v8668_v51 = vpop.f32.mrb[120].mxu1 }
 0x892   : > { %v3728_v59 = vsel %vm3216_vm3, %v8439_v2, %v3696_v49  ;;  %v6209_v44 = vpop.eup %6208  ;;  %v3497_v2 = vsel %vm8639_vm7, %v3494_v41, %v3491_v48  ;;  %vm8662_vm10 = vcmp.lt.f32.partialorder %v3513_v40, 0.0004427343  ;;  %v3318_v7 = vsub.f32 0.0, %v3286_v61  ;;  %10027 = vst [vmem:[#allocation74_spill] sm:$0xff] %v8668_v51  ;;  %v8670_v10 = vpop.f32.mrb[136].mxu0 }
 0x893   : > { %v3760_v1 = vmax.f32 %v3728_v59, 0.0001  ;;  %10028 = vst [vmem:[#allocation75_spill] sm:$0xff] %v8670_v10  ;;  %v10029_v37 = vmax.f32 %v8459_v15, 0.0  ;;  %6218 = vlog2.f32 %v3516_v62  ;;  %v8676_v40 = vadd.f32 %v8339_v50, %v8186_v47  ;;  %v8678_v41 = vpop.f32.mrb[137].mxu0 }
 0x894   : > { %10030 = vst [vmem:[#allocation76_spill] sm:$0xff] %v8678_v41  ;;  %v6211_v6 = vpop.eup %6210  ;;  %v3511_v58 = vadd.f32 1.0, %v3510_v26  ;;  %v3519_v48 = vmul.f32 -0.5, %v8643_v18  ;;  %v2872_v61 = vmax.f32 %v6209_v44, 1e-05  ;;  %v3503_v50 = vmul.f32 %v8584_v56, %v3502_v55  ;;  %v8691_v41 = vpop.f32.mrb[138].mxu0 }
 0x895   : > { %v3792_v49 = vmin.f32 %v3760_v1, 10000.0  ;;  %v3697_v59 = vadd.f32 %v3497_v2, %v10029_v37  ;;  %v3365_v10 = vmul.f32 1.442695, %v3318_v7  ;;  %v3500_v62 = vmul.f32 0.6931472, %v6211_v6  ;;  %v8689_v37 = vpop.f32.mrb[121].mxu1 }
 0x896   : > { %v2826_v2 = vmul.f32 1.442695, %v2756_v53  ;;  %10031 = vst [vmem:[#allocation77_spill] sm:$0xff] %v8691_v41  ;;  %v3187_v26 = vmax.f32 %v8497_v20, 0.0  ;;  %v2904_v44 = vmin.f32 %v2872_v61, 1000000.0  ;;  %v2758_v55 = vadd.f32 %v8346_v23, %v8189_v3 }
 0x897   : > { %3824 = vst [vmem:[%s8405_s8 + $0x48] sm:$0xff] %v3792_v49  ;;  %v3729_v1 = vsel %vm3217_vm6, %v8459_v15, %v3697_v59  ;;  %6220 = vpow2.f32 %v3365_v10  ;;  %v8694_v7 = vpop.f32.mrb[122].mxu1  ;;  %v6213_v49 = vpop.eup %6212  ;;  %v3506_v15 = vsel %vm8655_vm9, %v3503_v50, %v3500_v62  ;;  %v3287_v56 = vand.u32 2147483647, %v8676_v40 }
 0x898   : > { %v3761_v51 = vmax.f32 %v3729_v1, 0.0001  ;;  %10032 = vst [vmem:[#allocation78_spill] sm:$0xff] %v8694_v7  ;;  %6222 = vpow2.f32 %v2826_v2  ;;  %v8701_v53 = vpop.f32.mrb[123].mxu1  ;;  %v8703_v59 = vpop.f32.mrb[139].mxu0  ;;  %v10033_v61 = vmax.f32 %v8486_v11, 0.0  ;;  %v3512_v52 = vmul.f32 %v8600_v0, %v3511_v58 }
 0x899   : > { %v8705_v6 = vpop.eup %6214  ;;  %v3509_v7 = vmul.f32 0.6931472, %v6213_v49  ;;  %2936 = vst [vmem:[%s8239_s17 + $0x70] sm:$0xff] %v2904_v44  ;;  %v3520_v50 = vadd.f32 1.0, %v3519_v48  ;;  %v3522_v2 = vand.u32 2147483647, %v8643_v18  ;;  %v8722_v48 = vadd.f32 %v8348_v39, %v8192_v5 }
 0x89a   : > { %v3793_v10 = vmin.f32 %v3761_v51, 10000.0  ;;  %v3698_v1 = vadd.f32 %v3506_v15, %v10033_v61  ;;  %v6217_v62 = vpop.eup %6216  ;;  %v3525_v23 = vadd.f32 1.0, %v8705_v6  ;;  %v3319_v41 = vsub.f32 0.0, %v3287_v56  ;;  %v8724_v44 = vpop.f32.mrb[124].mxu1 }
 0x89b   : > { %v3515_v15 = vsel %vm8662_vm10, %v3512_v52, %v3509_v7  ;;  %v2873_v49 = vmax.f32 %v6217_v62, 1e-05  ;;  %v2828_v61 = vmul.f32 1.442695, %v2758_v55  ;;  %v8726_v56 = vpop.f32.mrb[140].mxu0  ;;  %v3188_v39 = vmax.f32 %v8528_v42, 0.0 }
 0x89c   : > { %3825 = vst [vmem:[%s8405_s8 + $0x50] sm:$0xff] %v3793_v10  ;;  %v3730_v51 = vsel %vm3218_vm8, %v8486_v11, %v3698_v1  ;;  %v3699_v58 = vadd.f32 %v3515_v15, %v3187_v26  ;;  %6224 = vlog2.f32 %v3525_v23  ;;  %10034 = vst [vmem:[#allocation79_spill] sm:$0xff] %v8726_v56  ;;  %v3531_v10 = vand.u32 2147483647, %v8705_v6  ;;  %v8735_v52 = vpop.f32.mrb[141].mxu0  ;;  %v8737_v62 = vpop.f32.mrb[125].mxu1 }
 0x89d   : > { %v3762_v0 = vmax.f32 %v3730_v51, 0.0001  ;;  %v2905_v11 = vmin.f32 %v2873_v49, 1000000.0  ;;  %v3367_v1 = vmul.f32 1.442695, %v3319_v41  ;;  %6226 = vpow2.f32 %v2828_v61  ;;  %v6219_v35 = vpop.eup %6218 }
 0x89e   : > { %v3731_v26 = vsel %vm3219_vm11, %v8497_v20, %v3699_v58  ;;  %v3528_v55 = vmul.f32 -0.5, %v8705_v6  ;;  %v3518_v51 = vmul.f32 0.6931472, %v6219_v35  ;;  %v3521_v41 = vmul.f32 %v8643_v18, %v3520_v50  ;;  %v8741_v15 = vpop.f32.mrb[142].mxu0  ;;  %v8743_v49 = vpop.f32.mrb[126].mxu1 }
 0x89f   : > { %v3794_v7 = vmin.f32 %v3762_v0, 10000.0  ;;  %v3763_v23 = vmax.f32 %v3731_v26, 0.0001  ;;  %2937 = vst [vmem:[%s8239_s17 + $0x78] sm:$0xff] %v2905_v11  ;;  %6228 = vpow2.f32 %v3367_v1  ;;  %10035 = vst [vmem:[#allocation80_spill] sm:$0xff] %v8743_v49  ;;  %v2760_v61 = vadd.f32 %v8360_v21, %v8183_v46  ;;  %v8751_v0 = vpop.f32.mrb[127].mxu1 }
 0x8a0   : > { %vm3523_vm13 = vcmp.lt.f32.partialorder %v3522_v2, 0.0004427343  ;;  %v3288_v20 = vand.u32 2147483647, %v8722_v48  ;;  %10036 = vst [vmem:[#allocation81_spill] sm:$0xff] %v8751_v0  ;;  %v8753_v18 = vpop.f32.mrb[143].mxu0  ;;  %v8765_v21 = vadd.f32 %v8362_v33, %v8186_v47  ;;  %v2766_v33 = vadd.f32 %v8400_v63, %v8183_v46 }
 0x8a1   : > { %3826 = vst [vmem:[%s8405_s8 + $0x58] sm:$0xff] %v3794_v7  ;;  %10037 = vst [vmem:[#allocation82_spill] sm:$0xff] %v8753_v18  ;;  %v8755_v50 = vpop.eup %6220  ;;  %v3795_v58 = vmin.f32 %v3763_v23, 10000.0  ;;  %v3524_v11 = vsel %vm3523_vm13, %v3521_v41, %v3518_v51  ;;  %v3189_v1 = vmax.f32 %v8575_v29, 0.0  ;;  %vm8758_vm14 = vcmp.lt.f32.partialorder %v3531_v10, 0.0004427343 }
 0x8a2   : > { %v6223_v2 = vpop.eup %6222  ;;  %v3700_v7 = vadd.f32 %v3524_v11, %v3188_v39  ;;  %v3534_v26 = vadd.f32 1.0, %v8755_v50  ;;  %v2762_v18 = vadd.f32 %v8372_v25, %v8189_v3  ;;  %v3529_v23 = vadd.f32 1.0, %v3528_v55 }
 0x8a3   : > { %3827 = vst [vmem:[%s8405_s8 + $0x60] sm:$0xff] %v3795_v58  ;;  %v2874_v51 = vmax.f32 %v6223_v2, 1e-05  ;;  %v3320_v41 = vsub.f32 0.0, %v3288_v20  ;;  %v2830_v0 = vmul.f32 1.442695, %v2760_v61  ;;  %v8776_v39 = vadd.f32 %v8374_v45, %v8192_v5 }
 0x8a4   : > { %v3732_v10 = vsel %vm3220_vm12, %v8528_v42, %v3700_v7  ;;  %6230 = vlog2.f32 %v3534_v26  ;;  %v3537_v61 = vmul.f32 -0.5, %v8755_v50  ;;  %v3289_v11 = vand.u32 2147483647, %v8765_v21  ;;  %v8782_v2 = vpop.f32.mrb[128].mxu1 }
 0x8a5   : > { %v3764_v25 = vmax.f32 %v3732_v10, 0.0001  ;;  %v2906_v58 = vmin.f32 %v2874_v51, 1000000.0  ;;  %v3369_v55 = vmul.f32 1.442695, %v3320_v41  ;;  %6232 = vpow2.f32 %v2830_v0 }
 0x8a6   : > { %v6225_v20 = vpop.eup %6224  ;;  %v2832_v42 = vmul.f32 1.442695, %v2762_v18  ;;  %v3530_v56 = vmul.f32 %v8705_v6, %v3529_v23  ;;  %v8786_v63 = vpop.f32.mrb[129].mxu1  ;;  %v3540_v0 = vand.u32 2147483647, %v8755_v50  ;;  %v3321_v41 = vsub.f32 0.0, %v3289_v11 }
 0x8a7   : > { %v6227_v7 = vpop.eup %6226  ;;  %v3796_v26 = vmin.f32 %v3764_v25, 10000.0  ;;  %v3527_v45 = vmul.f32 0.6931472, %v6225_v20  ;;  %2938 = vst [vmem:[%s8239_s17 + $0x80] sm:$0xff] %v2906_v58  ;;  %6234 = vpow2.f32 %v3369_v55  ;;  %v8789_v10 = vpop.f32.mrb[130].mxu1  ;;  %v3538_v55 = vadd.f32 1.0, %v3537_v61 }
 0x8a8   : > { %v2875_v51 = vmax.f32 %v6227_v7, 1e-05  ;;  %6236 = vpow2.f32 %v2832_v42  ;;  %v3290_v18 = vand.u32 2147483647, %v8776_v39  ;;  %v2834_v23 = vmul.f32 1.442695, %v2766_v33 }
 0x8a9   : > { %v8791_v49 = vpop.eup %6228  ;;  %3828 = vst [vmem:[%s8405_s8 + $0x68] sm:$0xff] %v3796_v26  ;;  %v3533_v6 = vsel %vm8758_vm14, %v3530_v56, %v3527_v45  ;;  %v8799_v25 = vpop.f32.mrb[131].mxu1  ;;  %v8804_v11 = vadd.f32 %v8402_v34, %v8186_v47  ;;  %v3371_v7 = vmul.f32 1.442695, %v3321_v41  ;;  %v3190_v35 = vmax.f32 %v8622_v22, 0.0 }
 0x8aa   : > { %v3701_v58 = vadd.f32 %v3533_v6, %v3189_v1  ;;  %v3543_v20 = vadd.f32 1.0, %v8791_v49  ;;  %v2907_v42 = vmin.f32 %v2875_v51, 1000000.0  ;;  %v3322_v26 = vsub.f32 0.0, %v3290_v18  ;;  %v8814_v45 = vpop.f32.mrb[132].mxu1 }
 0x8ab   : > { %6238 = vpow2.f32 %v2834_v23  ;;  %vm8808_vm0 = vcmp.lt.f32.partialorder %v3540_v0, 0.0004427343  ;;  %v3546_v61 = vmul.f32 -0.5, %v8791_v49  ;;  %10042 = vst [vmem:[#allocation83_spill] sm:$0xff] %v8814_v45  ;;  %v3539_v41 = vmul.f32 %v8755_v50, %v3538_v55  ;;  %v8821_v18 = vpop.f32.mrb[133].mxu1 }
 0x8ac   : > { %v3733_v56 = vsel %vm3221_vm15, %v8575_v29, %v3701_v58  ;;  %6240 = vlog2.f32 %v3543_v20  ;;  %2939 = vst [vmem:[%s8239_s17 + $0x88] sm:$0xff] %v2907_v42  ;;  %v3373_v34 = vmul.f32 1.442695, %v3322_v26  ;;  %v3549_v29 = vand.u32 2147483647, %v8791_v49  ;;  %10043 = vst [vmem:[#allocation84_spill] sm:$0xff] %v8821_v18 }
 0x8ad   : > { %v3765_v1 = vmax.f32 %v3733_v56, 0.0001  ;;  %6242 = vpow2.f32 %v3371_v7  ;;  %v3291_v0 = vand.u32 2147483647, %v8804_v11  ;;  %v2768_v6 = vadd.f32 %v8421_v60, %v8189_v3  ;;  %v8827_v7 = vpop.f32.mrb[134].mxu1 }
 0x8ae   : > { %v6231_v51 = vpop.eup %6230  ;;  %6244 = vpow2.f32 %v3373_v34  ;;  %v8825_v42 = vadd.f32 %v8423_v9, %v8192_v5  ;;  %10044 = vst [vmem:[#allocation85_spill] sm:$0xff] %v8827_v7  ;;  %v8829_v56 = vpop.f32.mrb[135].mxu1  ;;  %vm3222_vm1 = vcmp.ne.f32.partialorder %v8622_v22, %v8622_v22  ;;  %vm8839_vm2 = vcmp.lt.f32.partialorder %v3549_v29, 0.0004427343 }
 0x8af   : > { %v6233_v23 = vpop.eup %6232  ;;  %v3797_v58 = vmin.f32 %v3765_v1, 10000.0  ;;  %v3536_v20 = vmul.f32 0.6931472, %v6231_v51  ;;  %v3323_v55 = vsub.f32 0.0, %v3291_v0  ;;  %v2836_v26 = vmul.f32 1.442695, %v2768_v6 }
 0x8b0   : > { %v2876_v50 = vmax.f32 %v6233_v23, 1e-05  ;;  %10045 = vst [vmem:[#allocation86_spill] sm:$0xff] %v8829_v56  ;;  %v3547_v1 = vadd.f32 1.0, %v3546_v61  ;;  %v3292_v9 = vand.u32 2147483647, %v8825_v42  ;;  %v2770_v23 = vadd.f32 %v8429_v12, %v8183_v46 }
 0x8b1   : > { %v8831_v45 = vpop.eup %6234  ;;  %3829 = vst [vmem:[%s8405_s8 + $0x70] sm:$0xff] %v3797_v58  ;;  %v3542_v60 = vsel %vm8808_vm0, %v3539_v41, %v3536_v20  ;;  %v3375_v7 = vmul.f32 1.442695, %v3323_v55  ;;  %6246 = vpow2.f32 %v2836_v26  ;;  %v8850_v18 = vpop.f32.mrb[136].mxu1  ;;  %vm3223_vm3 = vcmp.ne.f32.partialorder %v8676_v40, %v8676_v40 }
 0x8b2   : > { %v6237_v34 = vpop.eup %6236  ;;  %v3702_v51 = vadd.f32 %v3542_v60, %v3190_v35  ;;  %v3552_v6 = vadd.f32 1.0, %v8831_v45  ;;  %v2908_v58 = vmin.f32 %v2876_v50, 1000000.0  ;;  %v3555_v61 = vmul.f32 -0.5, %v8831_v45  ;;  %10048 = vst [vmem:[#allocation87_spill] sm:$0xff] %v8850_v18  ;;  %v8853_v26 = vpop.f32.mrb[137].mxu1 }
 0x8b3   : > { %v2877_v56 = vmax.f32 %v6237_v34, 1e-05  ;;  %v3558_v35 = vand.u32 2147483647, %v8831_v45  ;;  %v3324_v60 = vsub.f32 0.0, %v3292_v9  ;;  %v3191_v50 = vmax.f32 %v8676_v40, 0.0 }
 0x8b4   : > { %v3734_v33 = vsel %vm3222_vm1, %v8622_v22, %v3702_v51  ;;  %6248 = vlog2.f32 %v3552_v6  ;;  %2940 = vst [vmem:[%s8239_s17 + $0x90] sm:$0xff] %v2908_v58  ;;  %v2838_v22 = vmul.f32 1.442695, %v2770_v23  ;;  %10049 = vst [vmem:[#allocation88_spill] sm:$0xff] %v8853_v26  ;;  %v2772_v23 = vadd.f32 %v8441_v38, %v8189_v3 }
 0x8b5   : > { %v6239_v41 = vpop.eup %6238  ;;  %v3766_v29 = vmax.f32 %v3734_v33, 0.0001  ;;  %v2909_v20 = vmin.f32 %v2877_v56, 1000000.0  ;;  %6250 = vpow2.f32 %v3375_v7  ;;  %v3548_v33 = vmul.f32 %v8791_v49, %v3547_v1  ;;  %v8859_v7 = vpop.f32.mrb[138].mxu1 }
 0x8b6   : > { %v6241_v12 = vpop.eup %6240  ;;  %v2878_v55 = vmax.f32 %v6239_v41, 1e-05  ;;  %v3377_v56 = vmul.f32 1.442695, %v3324_v60  ;;  %10050 = vst [vmem:[#allocation89_spill] sm:$0xff] %v8859_v7  ;;  %v8864_v41 = vadd.f32 %v8431_v31, %v8186_v47  ;;  %v3556_v1 = vadd.f32 1.0, %v3555_v61 }
 0x8b7   : > { %v8855_v34 = vpop.eup %6242  ;;  %v3798_v51 = vmin.f32 %v3766_v29, 10000.0  ;;  %v3545_v6 = vmul.f32 0.6931472, %v6241_v12  ;;  %2941 = vst [vmem:[%s8239_s17 + $0x98] sm:$0xff] %v2909_v20  ;;  %v8873_v29 = vpop.f32.mrb[139].mxu1  ;;  %v3192_v31 = vmax.f32 %v8722_v48, 0.0  ;;  %vm3224_vm4 = vcmp.ne.f32.partialorder %v8722_v48, %v8722_v48 }
 0x8b8   : > { %v3561_v9 = vadd.f32 1.0, %v8855_v34  ;;  %v2910_v58 = vmin.f32 %v2878_v55, 1000000.0  ;;  %v8868_v26 = vpop.eup %6244  ;;  %6252 = vpow2.f32 %v3377_v56  ;;  %10051 = vst [vmem:[#allocation90_spill] sm:$0xff] %v8873_v29  ;;  %vm8881_vm5 = vcmp.lt.f32.partialorder %v3558_v35, 0.0004427343 }
 0x8b9   : > { %3830 = vst [vmem:[%s8405_s8 + $0x78] sm:$0xff] %v3798_v51  ;;  %v3551_v49 = vsel %vm8839_vm2, %v3548_v33, %v3545_v6  ;;  %v3570_v61 = vadd.f32 1.0, %v8868_v26  ;;  %v3564_v12 = vmul.f32 -0.5, %v8855_v34  ;;  %v2840_v55 = vmul.f32 1.442695, %v2772_v23  ;;  %v8892_v56 = vpop.f32.mrb[140].mxu1 }
 0x8ba   : > { %v3703_v20 = vadd.f32 %v3551_v49, %v3191_v50  ;;  %6254 = vlog2.f32 %v3561_v9  ;;  %2942 = vst [vmem:[%s8239_s17 + $0xa0] sm:$0xff] %v2910_v58  ;;  %v3293_v50 = vand.u32 2147483647, %v8864_v41  ;;  %v3557_v33 = vmul.f32 %v8831_v45, %v3556_v1  ;;  %v8895_v49 = vpop.f32.mrb[141].mxu1 }
 0x8bb   : > { %6256 = vpow2.f32 %v2838_v22  ;;  %v6247_v51 = vpop.eup %6246  ;;  %v3567_v35 = vand.u32 2147483647, %v8855_v34  ;;  %v3573_v22 = vmul.f32 -0.5, %v8868_v26  ;;  %v8901_v45 = vadd.f32 %v8443_v24, %v8192_v5 }
 0x8bc   : > { %v3735_v60 = vsel %vm3223_vm3, %v8676_v40, %v3703_v20  ;;  %6258 = vlog2.f32 %v3570_v61  ;;  %v2879_v58 = vmax.f32 %v6247_v51, 1e-05  ;;  %v3325_v40 = vsub.f32 0.0, %v3293_v50  ;;  %v8905_v61 = vpop.f32.mrb[142].mxu1 }
 0x8bd   : > { %v3767_v6 = vmax.f32 %v3735_v60, 0.0001  ;;  %6260 = vpow2.f32 %v2840_v55  ;;  %v2776_v1 = vadd.f32 %v8463_v8, %v8183_v46  ;;  %v3565_v0 = vadd.f32 1.0, %v3564_v12  ;;  %v8916_v29 = vpop.f32.mrb[143].mxu1 }
 0x8be   : > { %v6249_v9 = vpop.eup %6248  ;;  %v2911_v51 = vmin.f32 %v2879_v58, 1000000.0  ;;  %vm3225_vm6 = vcmp.ne.f32.partialorder %v8765_v21, %v8765_v21  ;;  %v3194_v24 = vmax.f32 %v8776_v39, 0.0  ;;  %10054 = vst [vmem:[#allocation91_spill] sm:$0xff] %v8916_v29  ;;  %vm8918_vm7 = vcmp.lt.f32.partialorder %v3567_v35, 0.0004427343 }
 0x8bf   : > { %v8897_v20 = vpop.eup %6250  ;;  %v3799_v23 = vmin.f32 %v3767_v6, 10000.0  ;;  %v3554_v60 = vmul.f32 0.6931472, %v6249_v9  ;;  %v3379_v9 = vmul.f32 1.442695, %v3325_v40  ;;  %v3566_v35 = vmul.f32 %v8855_v34, %v3565_v0 }
 0x8c0   : > { %v3579_v50 = vadd.f32 1.0, %v8897_v20  ;;  %v3582_v55 = vmul.f32 -0.5, %v8897_v20  ;;  %v3576_v58 = vand.u32 2147483647, %v8868_v26  ;;  %2943 = vst [vmem:[%s8239_s17 + $0xa8] sm:$0xff] %v2911_v51  ;;  %vm3226_vm8 = vcmp.ne.f32.partialorder %v8776_v39, %v8776_v39 }
 0x8c1   : > { %3831 = vst [vmem:[%s8405_s8 + $0x80] sm:$0xff] %v3799_v23  ;;  %v3560_v6 = vsel %vm8881_vm5, %v3557_v33, %v3554_v60  ;;  %v3574_v33 = vadd.f32 1.0, %v3573_v22  ;;  %v3294_v23 = vand.u32 2147483647, %v8901_v45  ;;  %v2842_v60 = vmul.f32 1.442695, %v2776_v1 }
 0x8c2   : > { %v3704_v12 = vadd.f32 %v3560_v6, %v3192_v31  ;;  %6262 = vlog2.f32 %v3579_v50  ;;  %v8924_v38 = vpop.eup %6252  ;;  %v3583_v40 = vadd.f32 1.0, %v3582_v55  ;;  %v8937_v1 = vadd.f32 %v8465_v36, %v8186_v47 }
 0x8c3   : > { %6264 = vpow2.f32 %v3379_v9  ;;  %v3588_v50 = vadd.f32 1.0, %v8924_v38  ;;  %vm8939_vm9 = vcmp.lt.f32.partialorder %v3576_v58, 0.0004427343  ;;  %v3326_v34 = vsub.f32 0.0, %v3294_v23 }
 0x8c4   : > { %v6255_v8 = vpop.eup %6254  ;;  %v3736_v31 = vsel %vm3224_vm4, %v8722_v48, %v3704_v12  ;;  %6266 = vpow2.f32 %v2842_v60  ;;  %v3585_v60 = vand.u32 2147483647, %v8897_v20  ;;  %v10059_v36 = vmax.f32 %v8765_v21, 0.0 }
 0x8c5   : > { %v6257_v51 = vpop.eup %6256  ;;  %v3768_v22 = vmax.f32 %v3736_v31, 0.0001  ;;  %v3563_v6 = vmul.f32 0.6931472, %v6255_v8  ;;  %6268 = vlog2.f32 %v3588_v50  ;;  %v3575_v8 = vmul.f32 %v8868_v26, %v3574_v33 }
 0x8c6   : > { %v2880_v48 = vmax.f32 %v6257_v51, 1e-05  ;;  %v6259_v0 = vpop.eup %6258  ;;  %v3591_v29 = vmul.f32 -0.5, %v8924_v38  ;;  %vm3227_vm10 = vcmp.ne.f32.partialorder %v8804_v11, %v8804_v11  ;;  %v3584_v7 = vmul.f32 %v8897_v20, %v3583_v40 }
 0x8c7   : > { %v3800_v55 = vmin.f32 %v3768_v22, 10000.0  ;;  %v3569_v12 = vsel %vm8918_vm7, %v3566_v35, %v3563_v6  ;;  %v6261_v31 = vpop.eup %6260  ;;  %v3572_v18 = vmul.f32 0.6931472, %v6259_v0  ;;  %v3381_v35 = vmul.f32 1.442695, %v3326_v34 }
 0x8c8   : > { %v3705_v58 = vadd.f32 %v3569_v12, %v10059_v36  ;;  %v2912_v50 = vmin.f32 %v2880_v48, 1000000.0  ;;  %v2881_v23 = vmax.f32 %v6261_v31, 1e-05  ;;  %v3295_v26 = vand.u32 2147483647, %v8937_v1 }
 0x8c9   : > { %3832 = vst [vmem:[%s8405_s8 + $0x88] sm:$0xff] %v3800_v55  ;;  %v3578_v51 = vsel %vm8939_vm9, %v3575_v8, %v3572_v18  ;;  %v2778_v22 = vadd.f32 %v8469_v17, %v8189_v3  ;;  %v8966_v20 = vadd.f32 %v8471_v57, %v8192_v5  ;;  %6270 = vpow2.f32 %v3381_v35 }
 0x8ca   : > { %v3737_v33 = vsel %vm3225_vm6, %v8765_v21, %v3705_v58  ;;  %2944 = vst [vmem:[%s8239_s17 + $0xb0] sm:$0xff] %v2912_v50  ;;  %v3706_v6 = vadd.f32 %v3578_v51, %v3194_v24  ;;  %v2913_v48 = vmin.f32 %v2881_v23, 1000000.0  ;;  %v3592_v0 = vadd.f32 1.0, %v3591_v29 }
 0x8cb   : > { %v3769_v40 = vmax.f32 %v3737_v33, 0.0001  ;;  %v3594_v21 = vand.u32 2147483647, %v8924_v38  ;;  %v3327_v9 = vsub.f32 0.0, %v3295_v26  ;;  %v3196_v29 = vmax.f32 %v8825_v42, 0.0 }
 0x8cc   : > { %v6263_v34 = vpop.eup %6262  ;;  %v2844_v18 = vmul.f32 1.442695, %v2778_v22  ;;  %v3738_v17 = vsel %vm3226_vm8, %v8776_v39, %v3706_v6  ;;  %2945 = vst [vmem:[%s8239_s17 + $0xb8] sm:$0xff] %v2913_v48  ;;  %v3296_v24 = vand.u32 2147483647, %v8966_v20  ;;  %v10060_v39 = vmax.f32 %v8804_v11, 0.0 }
 0x8cd   : > { %v8969_v55 = vpop.eup %6264  ;;  %v3801_v12 = vmin.f32 %v3769_v40, 10000.0  ;;  %v3581_v57 = vmul.f32 0.6931472, %v6263_v34  ;;  %v3770_v8 = vmax.f32 %v3738_v17, 0.0001  ;;  %v2780_v48 = vadd.f32 %v8477_v27, %v8183_v46 }
 0x8ce   : > { %vm3586_vm11 = vcmp.lt.f32.partialorder %v3585_v60, 0.0004427343  ;;  %v3597_v31 = vadd.f32 1.0, %v8969_v55  ;;  %v6267_v36 = vpop.eup %6266  ;;  %v3383_v50 = vmul.f32 1.442695, %v3327_v9  ;;  %6272 = vpow2.f32 %v2844_v18 }
 0x8cf   : > { %3833 = vst [vmem:[%s8405_s8 + $0x90] sm:$0xff] %v3801_v12  ;;  %v3587_v58 = vsel %vm3586_vm11, %v3584_v7, %v3581_v57  ;;  %v3328_v23 = vsub.f32 0.0, %v3296_v24  ;;  %v6269_v35 = vpop.eup %6268  ;;  %v3802_v26 = vmin.f32 %v3770_v8, 10000.0  ;;  %vm3595_vm12 = vcmp.lt.f32.partialorder %v3594_v21, 0.0004427343 }
 0x8d0   : > { %v3707_v33 = vadd.f32 %v3587_v58, %v10060_v39  ;;  %6274 = vlog2.f32 %v3597_v31  ;;  %v3590_v51 = vmul.f32 0.6931472, %v6269_v35  ;;  %v3593_v60 = vmul.f32 %v8924_v38, %v3592_v0 }
 0x8d1   : > { %v2882_v22 = vmax.f32 %v6267_v36, 1e-05  ;;  %6276 = vpow2.f32 %v3383_v50  ;;  %3834 = vst [vmem:[%s8405_s8 + $0x98] sm:$0xff] %v3802_v26  ;;  %v3600_v40 = vmul.f32 -0.5, %v8969_v55  ;;  %v3385_v6 = vmul.f32 1.442695, %v3328_v23 }
 0x8d2   : > { %v3739_v7 = vsel %vm3227_vm10, %v8804_v11, %v3707_v33  ;;  %v3596_v21 = vsel %vm3595_vm12, %v3593_v60, %v3590_v51  ;;  %v8993_v38 = vadd.f32 %v8481_v16, %v8186_v47  ;;  %v2846_v18 = vmul.f32 1.442695, %v2780_v48  ;;  %v10061_v50 = vld [vmem:[#allocation57_spill] sm:$0xff] }
 0x8d3   : > { %v3771_v34 = vmax.f32 %v3739_v7, 0.0001  ;;  %v2914_v9 = vmin.f32 %v2882_v22, 1000000.0  ;;  %v3708_v0 = vadd.f32 %v3596_v21, %v3196_v29  ;;  %6278 = vpow2.f32 %v3385_v6  ;;  %v6271_v12 = vpop.eup %6270 }
 0x8d4   : > { %v2782_v11 = vadd.f32 %v8490_v14, %v8189_v3  ;;  %vm3228_vm13 = vcmp.ne.f32.partialorder %v8825_v42, %v8825_v42  ;;  %v3197_v27 = vmax.f32 %v8864_v41, 0.0  ;;  %v3297_v57 = vand.u32 2147483647, %v8993_v38 }
 0x8d5   : > { %v3803_v17 = vmin.f32 %v3771_v34, 10000.0  ;;  %2946 = vst [vmem:[%s8239_s17 + $0xc0] sm:$0xff] %v2914_v9  ;;  %v3740_v24 = vsel %vm3228_vm13, %v8825_v42, %v3708_v0  ;;  %v3601_v16 = vadd.f32 1.0, %v3600_v40  ;;  %v3603_v8 = vand.u32 2147483647, %v8969_v55 }
 0x8d6   : > { %v3606_v29 = vadd.f32 1.0, %v6271_v12  ;;  %v3772_v31 = vmax.f32 %v3740_v24, 0.0001  ;;  %6280 = vpow2.f32 %v2846_v18  ;;  %v3329_v14 = vsub.f32 0.0, %v3297_v57 }
 0x8d7   : > { %3835 = vst [vmem:[%s8405_s8 + $0xa0] sm:$0xff] %v3803_v17  ;;  %v2848_v36 = vmul.f32 1.442695, %v2782_v11  ;;  %vm3229_vm14 = vcmp.ne.f32.partialorder %v8864_v41, %v8864_v41  ;;  %v3609_v58 = vmul.f32 -0.5, %v6271_v12  ;;  %v9009_v23 = vadd.f32 %v10061_v50, %v8192_v5 }
 0x8d8   : > { %6282 = vlog2.f32 %v3606_v29  ;;  %v6273_v42 = vpop.eup %6272  ;;  %v3804_v35 = vmin.f32 %v3772_v31, 10000.0  ;;  %v3387_v26 = vmul.f32 1.442695, %v3329_v14  ;;  %v2786_v39 = vadd.f32 %v8502_v30, %v8183_v46 }
 0x8d9   : > { %6284 = vpow2.f32 %v2848_v36  ;;  %v3602_v51 = vmul.f32 %v8969_v55, %v3601_v16  ;;  %vm9014_vm15 = vcmp.lt.f32.partialorder %v3603_v8, 0.0004427343  ;;  %v3198_v22 = vmax.f32 %v8901_v45, 0.0 }
 0x8da   : > { %v6275_v33 = vpop.eup %6274  ;;  %v2883_v7 = vmax.f32 %v6273_v42, 1e-05  ;;  %3836 = vst [vmem:[%s8405_s8 + $0xa8] sm:$0xff] %v3804_v35  ;;  %6286 = vpow2.f32 %v3387_v26  ;;  %v3298_v48 = vand.u32 2147483647, %v9009_v23  ;;  %v3610_v21 = vadd.f32 1.0, %v3609_v58 }
 0x8db   : > { %v6277_v40 = vpop.eup %6276  ;;  %v3599_v6 = vmul.f32 0.6931472, %v6275_v33  ;;  %v2850_v34 = vmul.f32 1.442695, %v2786_v39  ;;  %v3612_v30 = vand.u32 2147483647, %v6271_v12  ;;  %v9029_v16 = vadd.f32 %v8504_v43, %v8186_v47 }
 0x8dc   : > { %v3615_v9 = vadd.f32 1.0, %v6277_v40  ;;  %v2915_v0 = vmin.f32 %v2883_v7, 1000000.0  ;;  %v3618_v18 = vmul.f32 -0.5, %v6277_v40  ;;  %v3330_v11 = vsub.f32 0.0, %v3298_v48 }
 0x8dd   : > { %v3605_v55 = vsel %vm9014_vm15, %v3602_v51, %v3599_v6  ;;  %6288 = vpow2.f32 %v2850_v34  ;;  %v9023_v17 = vpop.eup %6278  ;;  %v3199_v24 = vmax.f32 %v8937_v1, 0.0  ;;  %vm3230_vm0 = vcmp.ne.f32.partialorder %v8901_v45, %v8901_v45 }
 0x8de   : > { %v3709_v57 = vadd.f32 %v3605_v55, %v3197_v27  ;;  %6290 = vlog2.f32 %v3615_v9  ;;  %2947 = vst [vmem:[%s8239_s17 + $0xc8] sm:$0xff] %v2915_v0  ;;  %v3200_v8 = vmax.f32 %v8966_v20, 0.0  ;;  %v3624_v29 = vadd.f32 1.0, %v9023_v17 }
 0x8df   : > { %v3201_v31 = vmax.f32 %v8993_v38, 0.0  ;;  %v3389_v14 = vmul.f32 1.442695, %v3330_v11  ;;  %v3611_v36 = vmul.f32 %v6271_v12, %v3610_v21  ;;  %vm9040_vm1 = vcmp.lt.f32.partialorder %v3612_v30, 0.0004427343 }
 0x8e0   : > { %v3741_v27 = vsel %vm3229_vm14, %v8864_v41, %v3709_v57  ;;  %v3627_v43 = vmul.f32 -0.5, %v9023_v17  ;;  %v6281_v50 = vpop.eup %6280  ;;  %v3619_v35 = vadd.f32 1.0, %v3618_v18  ;;  %v3621_v26 = vand.u32 2147483647, %v6277_v40 }
 0x8e1   : > { %v3773_v42 = vmax.f32 %v3741_v27, 0.0001  ;;  %6292 = vlog2.f32 %v3624_v29  ;;  %v2884_v33 = vmax.f32 %v6281_v50, 1e-05  ;;  %v3299_v51 = vand.u32 2147483647, %v9029_v16 }
 0x8e2   : > { %v6283_v39 = vpop.eup %6282  ;;  %6294 = vpow2.f32 %v3389_v14  ;;  %v2788_v41 = vadd.f32 %v8506_v54, %v8189_v3  ;;  %v3202_v6 = vmax.f32 %v9009_v23, 0.0  ;;  %v9051_v48 = vadd.f32 %v8514_v13, %v8192_v5  ;;  %v10068_v14 = vld [vmem:[#allocation58_spill] sm:$0xff] }
 0x8e3   : > { %v6285_v12 = vpop.eup %6284  ;;  %v3805_v60 = vmin.f32 %v3773_v42, 10000.0  ;;  %v3608_v7 = vmul.f32 0.6931472, %v6283_v39  ;;  %v3628_v34 = vadd.f32 1.0, %v3627_v43  ;;  %v2916_v21 = vmin.f32 %v2884_v33, 1000000.0 }
 0x8e4   : > { %v2885_v30 = vmax.f32 %v6285_v12, 1e-05  ;;  %v3331_v9 = vsub.f32 0.0, %v3299_v51  ;;  %v9053_v0 = vpop.eup %6286  ;;  %vm3231_vm2 = vcmp.ne.f32.partialorder %v8937_v1, %v8937_v1  ;;  %vm9060_vm3 = vcmp.lt.f32.partialorder %v3621_v26, 0.0004427343 }
 0x8e5   : > { %3837 = vst [vmem:[%s8405_s8 + $0xb0] sm:$0xff] %v3805_v60  ;;  %v3614_v54 = vsel %vm9040_vm1, %v3611_v36, %v3608_v7  ;;  %v3630_v13 = vand.u32 2147483647, %v9023_v17  ;;  %v2852_v18 = vmul.f32 1.442695, %v2788_v41  ;;  %v3620_v57 = vmul.f32 %v6277_v40, %v3619_v35  ;;  %2948 = vst [vmem:[%s8239_s17 + $0xd0] sm:$0xff] %v2916_v21 }
 0x8e6   : > { %v3710_v11 = vadd.f32 %v3614_v54, %v3198_v22  ;;  %v3633_v29 = vadd.f32 1.0, %v9053_v0  ;;  %v2790_v27 = vadd.f32 %v10068_v14, %v8183_v46  ;;  %v2917_v58 = vmin.f32 %v2885_v30, 1000000.0  ;;  %v10070_v21 = vld [vmem:[#allocation60_spill] sm:$0xff] }
 0x8e7   : > { %v6289_v36 = vpop.eup %6288  ;;  %v3391_v43 = vmul.f32 1.442695, %v3331_v9  ;;  %6296 = vpow2.f32 %v2852_v18  ;;  %v3300_v50 = vand.u32 2147483647, %v9051_v48  ;;  %vm3232_vm4 = vcmp.ne.f32.partialorder %v8966_v20, %v8966_v20 }
 0x8e8   : > { %v6291_v42 = vpop.eup %6290  ;;  %v3742_v22 = vsel %vm3230_vm0, %v8901_v45, %v3710_v11  ;;  %v3629_v40 = vmul.f32 %v9023_v17, %v3628_v34  ;;  %6298 = vlog2.f32 %v3633_v29  ;;  %v3636_v46 = vmul.f32 -0.5, %v9053_v0  ;;  %2949 = vst [vmem:[%s8239_s17 + $0xd8] sm:$0xff] %v2917_v58  ;;  %v10069_v45 = vld [vmem:[#allocation59_spill] sm:$0xff] }
 0x8e9   : > { %v3774_v35 = vmax.f32 %v3742_v22, 0.0001  ;;  %v3617_v26 = vmul.f32 0.6931472, %v6291_v42  ;;  %v2886_v39 = vmax.f32 %v6289_v36, 1e-05  ;;  %6300 = vpow2.f32 %v3391_v43 }
 0x8ea   : > { %v3639_v33 = vand.u32 2147483647, %v9053_v0  ;;  %v3332_v51 = vsub.f32 0.0, %v3300_v50  ;;  %v2854_v41 = vmul.f32 1.442695, %v2790_v27  ;;  %v9082_v12 = vadd.f32 %v10069_v45, %v8186_v47 }
 0x8eb   : > { %v6293_v60 = vpop.eup %6292  ;;  %v3806_v17 = vmin.f32 %v3774_v35, 10000.0  ;;  %v3623_v7 = vsel %vm9060_vm3, %v3620_v57, %v3617_v26  ;;  %v2918_v34 = vmin.f32 %v2886_v39, 1000000.0  ;;  %v2792_v30 = vadd.f32 %v10070_v21, %v8189_v3 }
 0x8ec   : > { %v9088_v9 = vpop.eup %6294  ;;  %v3711_v54 = vadd.f32 %v3623_v7, %v3199_v24  ;;  %v3626_v18 = vmul.f32 0.6931472, %v6293_v60  ;;  %v3393_v11 = vmul.f32 1.442695, %v3332_v51  ;;  %6302 = vpow2.f32 %v2854_v41 }
 0x8ed   : > { %3838 = vst [vmem:[%s8405_s8 + $0xb8] sm:$0xff] %v3806_v17  ;;  %vm3631_vm5 = vcmp.lt.f32.partialorder %v3630_v13, 0.0004427343  ;;  %v3637_v47 = vadd.f32 1.0, %v3636_v46  ;;  %v3642_v29 = vadd.f32 1.0, %v9088_v9  ;;  %2950 = vst [vmem:[%s8239_s17 + $0xe0] sm:$0xff] %v2918_v34  ;;  %vm3233_vm6 = vcmp.ne.f32.partialorder %v8993_v38, %v8993_v38 }
 0x8ee   : > { %v3203_v55 = vmax.f32 %v9029_v16, 0.0  ;;  %v3743_v3 = vsel %vm3231_vm2, %v8937_v1, %v3711_v54  ;;  %v3632_v57 = vsel %vm3631_vm5, %v3629_v40, %v3626_v18  ;;  %v3204_v14 = vmax.f32 %v9051_v48, 0.0  ;;  %v3863_v1 = vld [vmem:[%s10073_s16] sm:$0x3]  ;;  %v10075_v17 = vld [vmem:[#allocation55_spill] sm:$0xff]  ;;  %v10078_v13 = vld [vmem:[#allocation62_spill] sm:$0xff] }
 0x8ef   : > { %6304 = vpow2.f32 %v3393_v11  ;;  %v3775_v24 = vmax.f32 %v3743_v3, 0.0001  ;;  %v3712_v27 = vadd.f32 %v3632_v57, %v3200_v8  ;;  %vm9105_vm7 = vcmp.lt.f32.partialorder %v3639_v33, 0.0004427343  ;;  %v10074_v8 = vld [vmem:[#allocation61_spill] sm:$0xff]  ;;  %v10086_v3 = vld [vmem:[#allocation66_spill] sm:$0xff] }
 0x8f0   : > { %6306 = vlog2.f32 %v3642_v29  ;;  %v3645_v36 = vmul.f32 -0.5, %v9088_v9  ;;  %v3301_v58 = vand.u32 2147483647, %v9082_v12  ;;  %v2856_v43 = vmul.f32 1.442695, %v2792_v30  ;;  %s10134_s16 = sld [smem:[#allocation115_spill]] }
 0x8f1   : > { %v9116_v50 = vadd.f32 %v10074_v8, %v8192_v5  ;;  %v6297_v42 = vpop.eup %6296  ;;  %v3807_v22 = vmin.f32 %v3775_v24, 10000.0  ;;  %v3744_v40 = vsel %vm3232_vm4, %v8966_v20, %v3712_v27  ;;  %v3638_v46 = vmul.f32 %v9053_v0, %v3637_v47 }
 0x8f2   : > { %v3648_v35 = vand.u32 2147483647, %v9088_v9  ;;  %v6299_v26 = vpop.eup %6298  ;;  %v3776_v39 = vmax.f32 %v3744_v40, 0.0001  ;;  %v2887_v33 = vmax.f32 %v6297_v42, 1e-05  ;;  %6308 = vpow2.f32 %v2856_v43 }
 0x8f3   : > { %v3333_v51 = vsub.f32 0.0, %v3301_v58  ;;  %v6301_v41 = vpop.eup %6300  ;;  %3839 = vst [vmem:[%s8405_s8 + $0xc0] sm:$0xff] %v3807_v22  ;;  %v3635_v5 = vmul.f32 0.6931472, %v6299_v26  ;;  %v3205_v45 = vmax.f32 %v9082_v12, 0.0  ;;  %v9128_v7 = vrot.slane %v3863_v1, %v10075_v17  ;;  %v10080_v22 = vld [vmem:[#allocation56_spill] sm:$0xff] }
 0x8f4   : > { %v3302_v60 = vand.u32 2147483647, %v9116_v50  ;;  %v3808_v20 = vmin.f32 %v3776_v39, 10000.0  ;;  %v3646_v0 = vadd.f32 1.0, %v3645_v36  ;;  %v3651_v34 = vadd.f32 1.0, %v6301_v41 }
 0x8f5   : > { %v3654_v21 = vmul.f32 -0.5, %v6301_v41  ;;  %v3641_v30 = vsel %vm9105_vm7, %v3638_v46, %v3635_v5  ;;  %v2919_v54 = vmin.f32 %v2887_v33, 1000000.0  ;;  %v3395_v18 = vmul.f32 1.442695, %v3333_v51 }
 0x8f6   : > { %v3334_v11 = vsub.f32 0.0, %v3302_v60  ;;  %v6303_v47 = vpop.eup %6302  ;;  %3840 = vst [vmem:[%s8405_s8 + $0xc8] sm:$0xff] %v3808_v20  ;;  %v3713_v29 = vadd.f32 %v3641_v30, %v3201_v31  ;;  %vm3234_vm8 = vcmp.ne.f32.partialorder %v9009_v23, %v9009_v23  ;;  %vm9137_vm9 = vcmp.lt.f32.partialorder %v3648_v35, 0.0004427343  ;;  %v9153_v42 = vld [vmem:[%s10079_s1] ss:$0 sm:$0xff]  ;;  %s9610_s23 = scalar_lea.hbm %s10134_s16, %s9604_s0 }
 0x8f7   : > { %6310 = vlog2.f32 %v3651_v34  ;;  %v3657_v57 = vand.u32 2147483647, %v6301_v41  ;;  %2951 = vst [vmem:[%s8239_s17 + $0xe8] sm:$0xff] %v2919_v54  ;;  %v2888_v24 = vmax.f32 %v6303_v47, 1e-05  ;;  %v3990_v36 = vadd.f32 %v10078_v13, %v9128_v7  ;;  %v10084_v30 = vld [vmem:[#allocation64_spill] sm:$0xff] }
 0x8f8   : > { %6312 = vpow2.f32 %v3395_v18  ;;  %v3397_v27 = vmul.f32 1.442695, %v3334_v11  ;;  %v3745_v31 = vsel %vm3233_vm6, %v8993_v38, %v3713_v29  ;;  %v3647_v43 = vmul.f32 %v9088_v9, %v3646_v0  ;;  %v10085_v47 = vld [vmem:[#allocation65_spill] sm:$0xff]  ;;  %v10087_v13 = vld [vmem:[#allocation67_spill] sm:$0xff] }
 0x8f9   : > { %v6305_v58 = vpop.eup %6304  ;;  %v3206_v8 = vmax.f32 %v9116_v50, 0.0  ;;  %v9156_v40 = vrot.slane %v3863_v1, %v10080_v22  ;;  %v3777_v35 = vmax.f32 %v3745_v31, 0.0001  ;;  %v3655_v26 = vadd.f32 1.0, %v3654_v21  ;;  %v10083_v1 = vld [vmem:[#allocation63_spill] sm:$0xff] }
 0x8fa   : > { %v6307_v46 = vpop.eup %6306  ;;  %v3660_v39 = vadd.f32 1.0, %v6305_v58  ;;  %v3663_v33 = vmul.f32 -0.5, %v6305_v58  ;;  %vm9158_vm10 = vcmp.lt.f32.partialorder %v3657_v57, 0.0004427343  ;;  %v2920_v51 = vmin.f32 %v2888_v24, 1000000.0 }
 0x8fb   : > { %v3644_v38 = vmul.f32 0.6931472, %v6307_v46  ;;  %6314 = vpow2.f32 %v3397_v27  ;;  %v5320_v5 = vmul.f32 -1.442695, %v3990_v36  ;;  %v3809_v60 = vmin.f32 %v3777_v35, 10000.0 }
 0x8fc   : > { %6316 = vlog2.f32 %v3660_v39  ;;  %v3666_v17 = vand.u32 2147483647, %v6305_v58  ;;  %v9164_v20 = vadd.f32 %v10083_v1, %v9153_v42  ;;  %v6309_v0 = vpop.eup %6308  ;;  %v3664_v21 = vadd.f32 1.0, %v3663_v33  ;;  %2952 = vst [vmem:[%s8239_s17 + $0xf0] sm:$0xff] %v2920_v51 }
 0x8fd   : > { %v3650_v34 = vsel %vm9137_vm9, %v3647_v43, %v3644_v38  ;;  %6318 = vpow2.f32 %v5320_v5  ;;  %v3992_v54 = vadd.f32 %v10084_v30, %v9156_v40  ;;  %3841 = vst [vmem:[%s8405_s8 + $0xd0] sm:$0xff] %v3809_v60  ;;  %vm3235_vm11 = vcmp.ne.f32.partialorder %v9029_v16, %v9029_v16 }
 0x8fe   : > { %v3714_v18 = vadd.f32 %v3650_v34, %v3202_v6  ;;  %v2889_v11 = vmax.f32 %v6309_v0, 1e-05  ;;  %v9178_v29 = vadd.f32 %v9153_v42, %v10085_v47  ;;  %v3994_v57 = vadd.f32 %v10086_v3, %v9128_v7  ;;  %v10088_v6 = vld [vmem:[#allocation68_spill] sm:$0xff]  ;;  %v10091_v0 = vld [vmem:[#allocation69_spill] sm:$0xff] }
 0x8ff   : > { %v3656_v24 = vmul.f32 %v6301_v41, %v3655_v26  ;;  %v5321_v27 = vmul.f32 -1.442695, %v3992_v54  ;;  %v9184_v36 = vadd.f32 %v10087_v13, %v9153_v42  ;;  %v3996_v31 = vadd.f32 %v10088_v6, %v9156_v40 }
 0x900   : > { %v3746_v43 = vsel %vm3234_vm8, %v9009_v23, %v3714_v18  ;;  %vm9192_vm12 = vcmp.lt.f32.partialorder %v3666_v17, 0.0004427343  ;;  %v2921_v46 = vmin.f32 %v2889_v11, 1000000.0  ;;  %v5322_v41 = vmul.f32 -1.442695, %v3994_v57 }
 0x901   : > { %vm4404_vm13 = vcmask 64512   ;;  %v6311_v35 = vpop.eup %6310  ;;  %v3778_v26 = vmax.f32 %v3746_v43, 0.0001  ;;  %6320 = vpow2.f32 %v5321_v27  ;;  %v5323_v39 = vmul.f32 -1.442695, %v3996_v31 }
 0x902   : > { %v4411_v33 = vsel %vm4404_vm13, %v9164_v20, -inf  ;;  %v6313_v38 = vpop.eup %6312  ;;  %v3653_v51 = vmul.f32 0.6931472, %v6311_v35  ;;  %v3665_v5 = vmul.f32 %v6305_v58, %v3664_v21  ;;  %2953 = vst [vmem:[%s8239_s17 + $0xf8] sm:$0xff] %v2921_v46  ;;  %6322 = vpow2.f32 %v5322_v41  ;;  %v10093_v35 = vld [vmem:[#allocation71_spill] sm:$0xff] }
 0x903   : > { %4412 = vmax.xlane.f32.xlu1 %v4411_v33  ;;  %v4405_v23 = vsel %vm4404_vm13, %v9178_v29, -inf  ;;  %v3810_v60 = vmin.f32 %v3778_v26, 10000.0  ;;  %vm3236_vm14 = vcmp.ne.f32.partialorder %v9051_v48, %v9051_v48  ;;  %v3669_v17 = vadd.f32 1.0, %v6313_v38 }
 0x904   : > { %v3672_v1 = vmul.f32 -0.5, %v6313_v38  ;;  %v9205_v34 = vadd.f32 %v9153_v42, %v10091_v0  ;;  %4406 = vmax.xlane.f32.xlu0 %v4405_v23  ;;  %v3659_v58 = vsel %vm9158_vm10, %v3656_v24, %v3653_v51  ;;  %6324 = vpow2.f32 %v5323_v39  ;;  %v10092_v24 = vld [vmem:[#allocation70_spill] sm:$0xff]  ;;  %v10097_v0 = vld [vmem:[#allocation73_spill] sm:$0xff] }
 0x905   : > { %v4414_v21 = vsel %vm4404_vm13, %v9184_v36, -inf  ;;  %v4000_v30 = vadd.f32 %v8582_v32, %v9128_v7  ;;  %v6315_v54 = vpop.eup %6314  ;;  %3842 = vst [vmem:[%s8405_s8 + $0xd8] sm:$0xff] %v3810_v60  ;;  %v3715_v18 = vadd.f32 %v3659_v58, %v3203_v55  ;;  %6326 = vlog2.f32 %v3669_v17  ;;  %v10096_v17 = vld [vmem:[#allocation72_spill] sm:$0xff] }
 0x906   : > { %v3673_v11 = vadd.f32 1.0, %v3672_v1  ;;  %v3675_v47 = vand.u32 2147483647, %v6313_v38  ;;  %v6317_v3 = vpop.eup %6316  ;;  %v3678_v57 = vadd.f32 1.0, %v6315_v54  ;;  %v3681_v27 = vmul.f32 -0.5, %v6315_v54 }
 0x907   : > { %4415 = vmax.xlane.f32.xlu1 %v4414_v21  ;;  %v5324_v9 = vmul.f32 -1.442695, %v4000_v30  ;;  %v9218_v13 = vadd.f32 %v10092_v24, %v9153_v42  ;;  %v6319_v6 = vpop.eup %6318  ;;  %v3747_v32 = vsel %vm3235_vm11, %v9029_v16, %v3715_v18  ;;  %v3662_v31 = vmul.f32 0.6931472, %v6317_v3  ;;  %v10100_v24 = vld [vmem:[#allocation74_spill] sm:$0xff] }
 0x908   : > { %v9224_v55 = vmul.f32 %v6313_v38, %v3673_v11  ;;  %v3684_v43 = vand.u32 2147483647, %v6315_v54  ;;  %v3779_v46 = vmax.f32 %v3747_v32, 0.0001  ;;  %6328 = vlog2.f32 %v3678_v57 }
 0x909   : > { %v3682_v41 = vadd.f32 1.0, %v3681_v27  ;;  %v9228_v26 = vadd.f32 %v9153_v42, %v10093_v35  ;;  %v3668_v39 = vsel %vm9192_vm12, %v3665_v5, %v3662_v31  ;;  %vm9232_vm15 = vcmp.lt.f32.partialorder %v3675_v47, 0.0004427343 }
 0x90a   : > { %v4164_v16 = vadd.f32 1.0, %v6319_v6  ;;  %6330 = vpow2.f32 %v5324_v9  ;;  %v4408_v38 = vsel %vm4404_vm13, %v9205_v34, -inf  ;;  %v3811_v51 = vmin.f32 %v3779_v46, 10000.0 }
 0x90b   : > { %v3716_v23 = vadd.f32 %v3668_v39, %v3204_v14  ;;  %v9240_v60 = vmul.f32 %v6315_v54, %v3682_v41  ;;  %4409 = vmax.xlane.f32.xlu0 %v4408_v38  ;;  %v4002_v22 = vadd.f32 %v8610_v19, %v9156_v40  ;;  %v6321_v5 = vpop.eup %6320  ;;  %v4004_v1 = vadd.f32 %v10096_v17, %v9128_v7  ;;  %v10102_v39 = vld [vmem:[#allocation76_spill] sm:$0xff] }
 0x90c   : > { %6332 = vrcp.f32 %v4164_v16  ;;  %v9248_v58 = vadd.f32 %v10097_v0, %v9153_v42  ;;  %v4006_v21 = vadd.f32 %v8631_v28, %v9156_v40  ;;  %v6323_v30 = vpop.eup %6322  ;;  %3843 = vst [vmem:[%s8405_s8 + $0xe0] sm:$0xff] %v3811_v51  ;;  %vm3237_vm0 = vcmp.ne.f32.partialorder %v9082_v12, %v9082_v12  ;;  %v10104_v0 = vld [vmem:[#allocation78_spill] sm:$0xff] }
 0x90d   : > { %v3748_v14 = vsel %vm3236_vm14, %v9051_v48, %v3716_v23  ;;  %vm9259_vm1 = vcmp.lt.f32.partialorder %v3684_v43, 0.0004427343  ;;  %v4165_v54 = vadd.f32 1.0, %v6321_v5  ;;  %v5325_v18 = vmul.f32 -1.442695, %v4002_v22  ;;  %v10101_v43 = vld [vmem:[#allocation75_spill] sm:$0xff] }
 0x90e   : > { %v9265_v11 = vadd.f32 %v9153_v42, %v8633_v4  ;;  %v3780_v28 = vmax.f32 %v3748_v14, 0.0001  ;;  %v4166_v47 = vadd.f32 1.0, %v6323_v30  ;;  %v5326_v3 = vmul.f32 -1.442695, %v4004_v1  ;;  %v6325_v48 = vpop.eup %6324  ;;  %v10103_v23 = vld [vmem:[#allocation77_spill] sm:$0xff] }
 0x90f   : > { %v4423_v57 = vsel %vm4404_vm13, %v9218_v13, -inf  ;;  %6334 = vrcp.f32 %v4165_v54  ;;  %v5327_v27 = vmul.f32 -1.442695, %v4006_v21  ;;  %v4426_v9 = vsel %vm4404_vm13, %v9248_v58, -inf  ;;  %v6327_v32 = vpop.eup %6326 }
 0x910   : > { %4424 = vmax.xlane.f32.xlu0 %v4423_v57  ;;  %v4010_v6 = vadd.f32 %v10100_v24, %v9128_v7  ;;  %v3812_v4 = vmin.f32 %v3780_v28, 10000.0  ;;  %vm3238_vm2 = vcmp.ne.f32.partialorder %v9116_v50, %v9116_v50  ;;  %6336 = vrcp.f32 %v4166_v47  ;;  %4427 = vmax.xlane.f32.xlu1 %v4426_v9 }
 0x911   : > { %v4167_v31 = vadd.f32 1.0, %v6325_v48  ;;  %v9277_v46 = vadd.f32 %v10101_v43, %v9153_v42  ;;  %v3671_v41 = vmul.f32 0.6931472, %v6327_v32  ;;  %6338 = vpow2.f32 %v5325_v18 }
 0x912   : > { %v5328_v35 = vmul.f32 -1.442695, %v4010_v6  ;;  %v9281_v16 = vadd.f32 %v9153_v42, %v10102_v39  ;;  %3844 = vst [vmem:[%s8405_s8 + $0xe8] sm:$0xff] %v3812_v4  ;;  %v4417_v38 = vsel %vm4404_vm13, %v9228_v26, -inf  ;;  %v4012_v51 = vadd.f32 %v8689_v37, %v9156_v40  ;;  %v6329_v5 = vpop.eup %6328  ;;  %v10105_v39 = vld [vmem:[#allocation80_spill] sm:$0xff] }
 0x913   : > { %6340 = vrcp.f32 %v4167_v31  ;;  %v9290_v22 = vadd.f32 %v10103_v23, %v9153_v42  ;;  %v3677_v17 = vsel %vm9232_vm15, %v9224_v55, %v3671_v41  ;;  %v4420_v1 = vsel %vm4404_vm13, %v9265_v11, -inf  ;;  %v10106_v23 = vld [vmem:[#allocation79_spill] sm:$0xff] }
 0x914   : > { %6342 = vpow2.f32 %v5326_v3  ;;  %4418 = vmax.xlane.f32.xlu0 %v4417_v38  ;;  %v4014_v21 = vadd.f32 %v10104_v0, %v9128_v7  ;;  %v6331_v30 = vpop.eup %6330  ;;  %v3717_v37 = vadd.f32 %v3677_v17, %v3205_v45  ;;  %v3680_v14 = vmul.f32 0.6931472, %v6329_v5  ;;  %4421 = vmax.xlane.f32.xlu1 %v4420_v1  ;;  %v10107_v5 = vld [vmem:[#allocation81_spill] sm:$0xff]  ;;  %v10108_v1 = vld [vmem:[#allocation82_spill] sm:$0xff] }
 0x915   : > { %6344 = vpow2.f32 %v5327_v27  ;;  %v5329_v54 = vmul.f32 -1.442695, %v4012_v51  ;;  %v4168_v18 = vadd.f32 1.0, %v6331_v30  ;;  %v4016_v33 = vadd.f32 %v8701_v53, %v9156_v40 }
 0x916   : > { %6346 = vpow2.f32 %v5328_v35  ;;  %v5330_v55 = vmul.f32 -1.442695, %v4014_v21  ;;  %v6333_v28 = vpop.eup %6332  ;;  %v3749_v47 = vsel %vm3237_vm0, %v9082_v12, %v3717_v37  ;;  %v3686_v45 = vsel %vm9259_vm1, %v9240_v60, %v3680_v14 }
 0x917   : > { %6348 = vpow2.f32 %v5329_v54  ;;  %v9312_v3 = vadd.f32 %v9153_v42, %v8703_v59  ;;  %v3781_v57 = vmax.f32 %v3749_v47, 0.0001  ;;  %v3718_v48 = vadd.f32 %v3686_v45, %v3206_v8  ;;  %4260 = vst [vmem:[%s9317_s3] sm:$0xff] %v6333_v28 }
 0x918   : > { %6350 = vrcp.f32 %v4168_v18  ;;  %v5331_v53 = vmul.f32 -1.442695, %v4016_v33  ;;  %v4435_v12 = vsel %vm4404_vm13, %v9277_v46, -inf  ;;  %v4438_v59 = vsel %vm4404_vm13, %v9290_v22, -inf }
 0x919   : > { %6352 = vpow2.f32 %v5330_v55  ;;  %v4020_v60 = vadd.f32 %v8724_v44, %v9128_v7  ;;  %v6335_v8 = vpop.eup %6334  ;;  %v3813_v19 = vmin.f32 %v3781_v57, 10000.0  ;;  %v3750_v27 = vsel %vm3238_vm2, %v9116_v50, %v3718_v48  ;;  %4436 = vmax.xlane.f32.xlu0 %v4435_v12  ;;  %4439 = vmax.xlane.f32.xlu1 %v4438_v59 }
 0x91a   : > { %6354 = vpow2.f32 %v5331_v53  ;;  %v6337_v9 = vpop.eup %6336  ;;  %v3782_v24 = vmax.f32 %v3750_v27, 0.0001  ;;  %4261 = vst [vmem:[%s9317_s3 + $0x8] sm:$0xff] %v6335_v8  ;;  %v9333_v32 = vadd.f32 %v9153_v42, %v8735_v52  ;;  %v4429_v4 = vsel %vm4404_vm13, %v9281_v16, -inf }
 0x91b   : > { %v5332_v6 = vmul.f32 -1.442695, %v4020_v60  ;;  %v6339_v44 = vpop.eup %6338  ;;  %3845 = vst [vmem:[%s8405_s8 + $0xf0] sm:$0xff] %v3813_v19  ;;  %4262 = vst [vmem:[%s9317_s3 + $0x10] sm:$0xff] %v6337_v9  ;;  %v4022_v50 = vadd.f32 %v8737_v62, %v9156_v40  ;;  %v9343_v31 = vadd.f32 %v8741_v15, %v9153_v42  ;;  %v4432_v43 = vsel %vm4404_vm13, %v9312_v3, -inf }
 0x91c   : > { %v3814_v52 = vmin.f32 %v3782_v24, 10000.0  ;;  %v4169_v35 = vadd.f32 1.0, %v6339_v44  ;;  %v4024_v38 = vadd.f32 %v10105_v39, %v9128_v7  ;;  %v9352_v62 = vadd.f32 %v10106_v23, %v9153_v42  ;;  %v10109_v24 = vld [vmem:[#allocation83_spill] sm:$0xff] }
 0x91d   : > { %v6341_v41 = vpop.eup %6340  ;;  %6356 = vpow2.f32 %v5332_v6  ;;  %4430 = vmax.xlane.f32.xlu0 %v4429_v4  ;;  %v5333_v15 = vmul.f32 -1.442695, %v4022_v50  ;;  %4433 = vmax.xlane.f32.xlu1 %v4432_v43  ;;  %v4026_v17 = vadd.f32 %v10107_v5, %v9156_v40  ;;  %v9358_v0 = vadd.f32 %v9153_v42, %v10108_v1 }
 0x91e   : > { %v6343_v51 = vpop.eup %6342  ;;  %4263 = vst [vmem:[%s9317_s3 + $0x18] sm:$0xff] %v6341_v41  ;;  %3846 = vst [vmem:[%s8405_s8 + $0xf8] sm:$0xff] %v3814_v52  ;;  %6358 = vrcp.f32 %v4169_v35  ;;  %v4441_v37 = vsel %vm4404_vm13, %v9333_v32, -inf  ;;  %v4450_v14 = vsel %vm4404_vm13, %v9343_v31, -inf  ;;  %v4030_v55 = vadd.f32 %v8782_v2, %v9128_v7  ;;  %v10111_v35 = vld [vmem:[#allocation85_spill] sm:$0xff]  ;;  %s7064_s8 = smov [#allocation23]  }
 0x91f   : > { %v6345_v21 = vpop.eup %6344  ;;  %v4170_v30 = vadd.f32 1.0, %v6343_v51  ;;  %6360 = vpow2.f32 %v5333_v15  ;;  %v5334_v28 = vmul.f32 -1.442695, %v4024_v38  ;;  %v5335_v57 = vmul.f32 -1.442695, %v4026_v17  ;;  %v10112_v51 = vld [vmem:[#allocation86_spill] sm:$0xff] }
 0x920   : > { %v6347_v54 = vpop.eup %6346  ;;  %v4171_v18 = vadd.f32 1.0, %v6345_v21  ;;  %v4447_v53 = vsel %vm4404_vm13, %v9352_v62, -inf  ;;  %v4032_v12 = vadd.f32 %v8786_v63, %v9156_v40  ;;  %v4444_v2 = vsel %vm4404_vm13, %v9358_v0, -inf }
 0x921   : > { %v6349_v33 = vpop.eup %6348  ;;  %6362 = vrcp.f32 %v4170_v30  ;;  %v4172_v42 = vadd.f32 1.0, %v6347_v54  ;;  %4442 = vmax.xlane.f32.xlu0 %v4441_v37  ;;  %4451 = vmax.xlane.f32.xlu1 %v4450_v14  ;;  %v5336_v8 = vmul.f32 -1.442695, %v4030_v55  ;;  %v4034_v19 = vadd.f32 %v8789_v10, %v9128_v7  ;;  %v10110_v10 = vld [vmem:[#allocation84_spill] sm:$0xff]  ;;  %v10113_v30 = vld [vmem:[#allocation91_spill] sm:$0xff] }
 0x922   : > { %v6351_v47 = vpop.eup %6350  ;;  %6364 = vrcp.f32 %v4171_v18  ;;  %v4173_v45 = vadd.f32 1.0, %v6349_v33  ;;  %v4036_v9 = vadd.f32 %v8799_v25, %v9156_v40  ;;  %v4040_v6 = vadd.f32 %v10109_v24, %v9128_v7 }
 0x923   : > { %v6353_v48 = vpop.eup %6352  ;;  %4264 = vst [vmem:[%s9317_s3 + $0x20] sm:$0xff] %v6351_v47  ;;  %6366 = vrcp.f32 %v4172_v42  ;;  %v5337_v44 = vmul.f32 -1.442695, %v4032_v12  ;;  %v5338_v50 = vmul.f32 -1.442695, %v4034_v19  ;;  %v4042_v43 = vadd.f32 %v10110_v10, %v9156_v40 }
 0x924   : > { %v6355_v59 = vpop.eup %6354  ;;  %6368 = vrcp.f32 %v4173_v45  ;;  %v4174_v60 = vadd.f32 1.0, %v6353_v48  ;;  %v5339_v25 = vmul.f32 -1.442695, %v4036_v9  ;;  %v5340_v52 = vmul.f32 -1.442695, %v4040_v6 }
 0x925   : > { %v4175_v27 = vadd.f32 1.0, %v6355_v59  ;;  %6370 = vpow2.f32 %v5334_v28  ;;  %4448 = vmax.xlane.f32.xlu0 %v4447_v53  ;;  %4445 = vmax.xlane.f32.xlu1 %v4444_v2  ;;  %v4044_v39 = vadd.f32 %v10111_v35, %v9128_v7  ;;  %v4046_v23 = vadd.f32 %v10112_v51, %v9156_v40  ;;  %v10115_v28 = vld [vmem:[#allocation88_spill] sm:$0xff]  ;;  %v10116_v2 = vld [vmem:[#allocation89_spill] sm:$0xff] }
 0x926   : > { %6372 = vrcp.f32 %v4174_v60  ;;  %v9389_v15 = vadd.f32 %v8892_v56, %v9128_v7  ;;  %v9393_v5 = vadd.f32 %v8895_v49, %v9156_v40  ;;  %v9397_v21 = vadd.f32 %v8905_v61, %v9128_v7  ;;  %v10114_v49 = vld [vmem:[#allocation87_spill] sm:$0xff] }
 0x927   : > { %v6357_v63 = vpop.eup %6356  ;;  %6374 = vrcp.f32 %v4175_v27  ;;  %v9401_v37 = vadd.f32 %v10113_v30, %v9156_v40  ;;  %v5341_v56 = vmul.f32 -1.442695, %v4042_v43  ;;  %v4050_v54 = vadd.f32 %v10114_v49, %v9128_v7 }
 0x928   : > { %v4176_v4 = vadd.f32 1.0, %v6357_v63  ;;  %6376 = vpow2.f32 %v5335_v57  ;;  %v6359_v41 = vpop.eup %6358  ;;  %v5342_v55 = vmul.f32 -1.442695, %v4044_v39  ;;  %v5343_v42 = vmul.f32 -1.442695, %v4046_v23 }
 0x929   : > { %6378 = vpow2.f32 %v5336_v8  ;;  %v6361_v38 = vpop.eup %6360  ;;  %4265 = vst [vmem:[%s9317_s3 + $0x28] sm:$0xff] %v6359_v41  ;;  %v4052_v47 = vadd.f32 %v10115_v28, %v9156_v40  ;;  %v5344_v48 = vmul.f32 -1.442695, %v4050_v54  ;;  %v4054_v59 = vadd.f32 %v10116_v2, %v9128_v7  ;;  %v10117_v7 = vld [vmem:[#allocation90_spill] sm:$0xff] }
 0x92a   : > { %6380 = vrcp.f32 %v4176_v4  ;;  %v4177_v1 = vadd.f32 1.0, %v6361_v38  ;;  %v4056_v10 = vadd.f32 %v10117_v7, %v9156_v40  ;;  %v5349_v54 = vmul.f32 -1.442695, %v9393_v5 }
 0x92b   : > { %v6363_v17 = vpop.eup %6362  ;;  %6382 = vpow2.f32 %v5337_v44  ;;  %v5345_v19 = vmul.f32 -1.442695, %v4052_v47  ;;  %v5346_v44 = vmul.f32 -1.442695, %v4054_v59  ;;  %vm4677_vm3 = vcmask 261248  }
 0x92c   : > { %v6365_v14 = vpop.eup %6364  ;;  %4266 = vst [vmem:[%s9317_s3 + $0x30] sm:$0xff] %v6363_v17  ;;  %6384 = vpow2.f32 %v5338_v50  ;;  %v5347_v51 = vmul.f32 -1.442695, %v4056_v10 }
 0x92d   : > { %v6367_v18 = vpop.eup %6366  ;;  %4267 = vst [vmem:[%s9317_s3 + $0x38] sm:$0xff] %v6365_v14  ;;  %6386 = vrcp.f32 %v4177_v1  ;;  %v5348_v14 = vmul.f32 -1.442695, %v9389_v15  ;;  %v5351_v15 = vmul.f32 -1.442695, %v9401_v37 }
 0x92e   : > { %v6369_v33 = vpop.eup %6368  ;;  %4268 = vst [vmem:[%s9317_s3 + $0x40] sm:$0xff] %v6367_v18  ;;  %6388 = vpow2.f32 %v5339_v25 }
 0x92f   : > { %v6371_v61 = vpop.eup %6370  ;;  %4269 = vst [vmem:[%s9317_s3 + $0x48] sm:$0xff] %v6369_v33  ;;  %6390 = vpow2.f32 %v5340_v52  ;;  %v5350_v33 = vmul.f32 -1.442695, %v9397_v21 }
 0x930   : > { %v6373_v45 = vpop.eup %6372  ;;  %v4178_v57 = vadd.f32 1.0, %v6371_v61  ;;  %6392 = vpow2.f32 %v5341_v56 }
 0x931   : > { %v6375_v53 = vpop.eup %6374  ;;  %4270 = vst [vmem:[%s9317_s3 + $0x50] sm:$0xff] %v6373_v45  ;;  %6394 = vpow2.f32 %v5342_v55 }
 0x932   : > { %v6377_v12 = vpop.eup %6376  ;;  %4271 = vst [vmem:[%s9317_s3 + $0x58] sm:$0xff] %v6375_v53  ;;  %6396 = vrcp.f32 %v4178_v57 }
 0x933   : > { %v6379_v60 = vpop.eup %6378  ;;  %v4179_v8 = vadd.f32 1.0, %v6377_v12  ;;  %6398 = vpow2.f32 %v5343_v42 }
 0x934   : > { %v6381_v27 = vpop.eup %6380  ;;  %v4180_v9 = vadd.f32 1.0, %v6379_v60  ;;  %6400 = vpow2.f32 %v5344_v48 }
 0x935   : > { %v6383_v24 = vpop.eup %6382  ;;  %4272 = vst [vmem:[%s9317_s3 + $0x60] sm:$0xff] %v6381_v27  ;;  %6402 = vrcp.f32 %v4179_v8 }
 0x936   : > { %v6385_v6 = vpop.eup %6384  ;;  %6404 = vrcp.f32 %v4180_v9  ;;  %v4181_v63 = vadd.f32 1.0, %v6383_v24 }
 0x937   : > { %v6387_v4 = vpop.eup %6386  ;;  %v4182_v50 = vadd.f32 1.0, %v6385_v6  ;;  %6406 = vpow2.f32 %v5345_v19 }
 0x938   : > { %v6389_v43 = vpop.eup %6388  ;;  %4273 = vst [vmem:[%s9317_s3 + $0x68] sm:$0xff] %v6387_v4  ;;  %6408 = vrcp.f32 %v4181_v63 }
 0x939   : > { %v6391_v41 = vpop.eup %6390  ;;  %6410 = vrcp.f32 %v4182_v50  ;;  %v4183_v25 = vadd.f32 1.0, %v6389_v43 }
 0x93a   : > { %v6393_v52 = vpop.eup %6392  ;;  %v4184_v35 = vadd.f32 1.0, %v6391_v41  ;;  %6412 = vpow2.f32 %v5346_v44 }
 0x93b   : > { %v6395_v39 = vpop.eup %6394  ;;  %6414 = vrcp.f32 %v4183_v25  ;;  %v4185_v38 = vadd.f32 1.0, %v6393_v52 }
 0x93c   : > { %v6397_v23 = vpop.eup %6396  ;;  %6416 = vrcp.f32 %v4184_v35  ;;  %v4186_v17 = vadd.f32 1.0, %v6395_v39 }
 0x93d   : > { %v6399_v40 = vpop.eup %6398  ;;  %4274 = vst [vmem:[%s9317_s3 + $0x70] sm:$0xff] %v6397_v23  ;;  %6418 = vrcp.f32 %v4185_v38 }
 0x93e   : > { %v6401_v1 = vpop.eup %6400  ;;  %6420 = vrcp.f32 %v4186_v17  ;;  %v4187_v30 = vadd.f32 1.0, %v6399_v40 }
 0x93f   : > { %v6403_v56 = vpop.eup %6402  ;;  %v4188_v49 = vadd.f32 1.0, %v6401_v1  ;;  %6422 = vpow2.f32 %v5347_v51 }
 0x940   : > { %v6405_v18 = vpop.eup %6404  ;;  %4275 = vst [vmem:[%s9317_s3 + $0x78] sm:$0xff] %v6403_v56  ;;  %6424 = vrcp.f32 %v4187_v30 }
 0x941   : > { %v6407_v55 = vpop.eup %6406  ;;  %4276 = vst [vmem:[%s9317_s3 + $0x80] sm:$0xff] %v6405_v18  ;;  %6426 = vrcp.f32 %v4188_v49 }
 0x942   : > { %v6409_v61 = vpop.eup %6408  ;;  %v4189_v42 = vadd.f32 1.0, %v6407_v55  ;;  %6428 = vpow2.f32 %v5348_v14 }
 0x943   : > { %v6411_v28 = vpop.eup %6410  ;;  %4277 = vst [vmem:[%s9317_s3 + $0x88] sm:$0xff] %v6409_v61  ;;  %6430 = vpow2.f32 %v5349_v54 }
 0x944   : > { %v6413_v5 = vpop.eup %6412  ;;  %4278 = vst [vmem:[%s9317_s3 + $0x90] sm:$0xff] %v6411_v28  ;;  %6432 = vrcp.f32 %v4189_v42 }
 0x945   : > { %v6415_v47 = vpop.eup %6414  ;;  %v4190_v45 = vadd.f32 1.0, %v6413_v5  ;;  %6434 = vpow2.f32 %v5350_v33 }
 0x946   : > { %v6417_v21 = vpop.eup %6416  ;;  %4279 = vst [vmem:[%s9317_s3 + $0x98] sm:$0xff] %v6415_v47  ;;  %6436 = vpow2.f32 %v5351_v15 }
 0x947   : > { %v6419_v57 = vpop.eup %6418  ;;  %4280 = vst [vmem:[%s9317_s3 + $0xa0] sm:$0xff] %v6417_v21  ;;  %6438 = vrcp.f32 %v4190_v45 }
 0x948   : > { %v6421_v37 = vpop.eup %6420  ;;  %4281 = vst [vmem:[%s9317_s3 + $0xa8] sm:$0xff] %v6419_v57 }
 0x949   : > { %v6423_v48 = vpop.eup %6422  ;;  %4282 = vst [vmem:[%s9317_s3 + $0xb0] sm:$0xff] %v6421_v37 }
 0x94a   : > { %v6425_v53 = vpop.eup %6424  ;;  %v4191_v12 = vadd.f32 1.0, %v6423_v48 }
 0x94b   : > { %v6427_v2 = vpop.eup %6426  ;;  %4283 = vst [vmem:[%s9317_s3 + $0xb8] sm:$0xff] %v6425_v53 }
 0x94c   : > { %v6429_v59 = vpop.eup %6428  ;;  %4284 = vst [vmem:[%s9317_s3 + $0xc0] sm:$0xff] %v6427_v2  ;;  %6440 = vrcp.f32 %v4191_v12 }
 0x94d   : > { %v6431_v60 = vpop.eup %6430  ;;  %v4192_v8 = vadd.f32 1.0, %v6429_v59 }
 0x94e   : > { %v6433_v19 = vpop.eup %6432  ;;  %v4193_v27 = vadd.f32 1.0, %v6431_v60 }
 0x94f   : > { %v6435_v9 = vpop.eup %6434  ;;  %4285 = vst [vmem:[%s9317_s3 + $0xc8] sm:$0xff] %v6433_v19  ;;  %6442 = vrcp.f32 %v4192_v8 }
 0x950   : > { %v6437_v24 = vpop.eup %6436  ;;  %6444 = vrcp.f32 %v4193_v27  ;;  %v4194_v6 = vadd.f32 1.0, %v6435_v9 }
 0x951   : > { %v6439_v63 = vpop.eup %6438  ;;  %v4195_v44 = vadd.f32 1.0, %v6437_v24 }
 0x952   : > { %4286 = vst [vmem:[%s9317_s3 + $0xd0] sm:$0xff] %v6439_v63  ;;  %6446 = vrcp.f32 %v4194_v6 }
 0x953   : > { %6448 = vrcp.f32 %v4195_v44 }
 0x956   : > { %v6441_v4 = vpop.eup %6440 }
 0x957   : > { %4287 = vst [vmem:[%s9317_s3 + $0xd8] sm:$0xff] %v6441_v4 }
 0x959   : > { %v6443_v50 = vpop.eup %6442 }
 0x95a   : > { %v6445_v7 = vpop.eup %6444  ;;  %4288 = vst [vmem:[%s9317_s3 + $0xe0] sm:$0xff] %v6443_v50 }
 0x95b   : > { %4289 = vst [vmem:[%s9317_s3 + $0xe8] sm:$0xff] %v6445_v7 }
 0x95c   : > { %v6447_v10 = vpop.eup %6446 }
 0x95d   : > { %v6449_v43 = vpop.eup %6448  ;;  %4290 = vst [vmem:[%s9317_s3 + $0xf0] sm:$0xff] %v6447_v10 }
 0x95e   : > { %4291 = vst [vmem:[%s9317_s3 + $0xf8] sm:$0xff] %v6449_v43 }
 0x990   : > { %v4413_v41 = vpop.xlane.xlu1 %4412 }
 0x991   : > { %v4455_v25 = vsub.f32 %v9164_v20, %v4413_v41  ;;  %v4407_v52 = vpop.xlane.xlu0 %4406 }
 0x992   : > { %v4453_v35 = vsub.f32 %v9178_v29, %v4407_v52 }
 0x993   : > { %v4473_v39 = vmul.f32 1.442695, %v4455_v25 }
 0x994   : > { %v4469_v38 = vmul.f32 1.442695, %v4453_v35  ;;  %v4416_v51 = vpop.xlane.xlu1 %4415 }
 0x995   : > { %6450 = vpow2.f32 %v4473_v39  ;;  %v4456_v23 = vsub.f32 %v9184_v36, %v4416_v51 }
 0x996   : > { %6452 = vpow2.f32 %v4469_v38 }
 0x997   : > { %v4475_v17 = vmul.f32 1.442695, %v4456_v23 }
 0x998   : > { %v4410_v40 = vpop.xlane.xlu0 %4409 }
 0x999   : > { %6454 = vpow2.f32 %v4475_v17  ;;  %v4454_v1 = vsub.f32 %v9205_v34, %v4410_v40  ;;  %v10118_v17 = vld [vmem:[#allocation41_spill] sm:$0xff]  ;;  %v10119_v40 = vld [vmem:[#allocation42_spill] sm:$0xff] }
 0x99b   : > { %v4471_v30 = vmul.f32 1.442695, %v4454_v1  ;;  %v10120_v1 = vld [vmem:[#allocation39_spill] sm:$0xff] }
 0x99d   : > { %v4425_v14 = vpop.xlane.xlu0 %4424  ;;  %6456 = vpow2.f32 %v4471_v30  ;;  %v4428_v56 = vpop.xlane.xlu1 %4427  ;;  %v10121_v30 = vld [vmem:[#allocation40_spill] sm:$0xff] }
 0x99e   : > { %v4459_v20 = vsub.f32 %v9218_v13, %v4425_v14  ;;  %v4460_v29 = vsub.f32 %v9248_v58, %v4428_v56 }
 0x99f   : > { %v9447_v49 = vpop.eup %6450 }
 0x9a0   : > { %v4481_v54 = vmul.f32 1.442695, %v4459_v20  ;;  %v4483_v18 = vmul.f32 1.442695, %v4460_v29  ;;  %v4507_v36 = vsel %vm4404_vm13, %v9447_v49, 0.0  ;;  %v9451_v33 = vpop.eup %6452  ;;  %v10122_v20 = vld [vmem:[#allocation44_spill] sm:$0xff] }
 0x9a1   : > { %v4419_v55 = vpop.xlane.xlu0 %4418  ;;  %v4422_v61 = vpop.xlane.xlu1 %4421  ;;  %4508 = vadd.xlane.f32.xlu0 %v4507_v36  ;;  %v4501_v5 = vsel %vm4404_vm13, %v9451_v33, 0.0  ;;  %v10124_v36 = vld [vmem:[#allocation48_spill] sm:$0xff] }
 0x9a2   : > { %6458 = vpow2.f32 %v4481_v54  ;;  %v4457_v34 = vsub.f32 %v9228_v26, %v4419_v55  ;;  %v4458_v13 = vsub.f32 %v9265_v11, %v4422_v61  ;;  %v10123_v54 = vld [vmem:[#allocation46_spill] sm:$0xff] }
 0x9a3   : > { %6460 = vpow2.f32 %v4483_v18  ;;  %v9455_v42 = vpop.eup %6454  ;;  %v10125_v61 = vld [vmem:[#allocation50_spill] sm:$0xff] }
 0x9a4   : > { %v4477_v58 = vmul.f32 1.442695, %v4457_v34  ;;  %v4479_v15 = vmul.f32 1.442695, %v4458_v13  ;;  %v4510_v28 = vsel %vm4404_vm13, %v9455_v42, 0.0  ;;  %v10126_v13 = vld [vmem:[#allocation52_spill] sm:$0xff] }
 0x9a5   : > { %4511 = vadd.xlane.f32.xlu1 %v4510_v28  ;;  %4502 = vadd.xlane.f32.xlu0 %v4501_v5  ;;  %v10128_v5 = vld [vmem:[#allocation45_spill] sm:$0xff] }
 0x9a6   : > { %6462 = vpow2.f32 %v4477_v58  ;;  %v4437_v26 = vpop.xlane.xlu0 %4436  ;;  %v4440_v47 = vpop.xlane.xlu1 %4439  ;;  %v10127_v58 = vld [vmem:[#allocation54_spill] sm:$0xff] }
 0x9a7   : > { %6464 = vpow2.f32 %v4479_v15  ;;  %v9461_v45 = vpop.eup %6456  ;;  %v4463_v11 = vsub.f32 %v9277_v46, %v4437_v26  ;;  %v4464_v21 = vsub.f32 %v9290_v22, %v4440_v47  ;;  %v10129_v26 = vld [vmem:[#allocation43_spill] sm:$0xff]  ;;  %v10130_v47 = vld [vmem:[#allocation49_spill] sm:$0xff] }
 0x9a8   : > { %v4504_v57 = vsel %vm4404_vm13, %v9461_v45, 0.0 }
 0x9a9   : > { %v4489_v37 = vmul.f32 1.442695, %v4463_v11  ;;  %v4491_v48 = vmul.f32 1.442695, %v4464_v21  ;;  %4505 = vadd.xlane.f32.xlu1 %v4504_v57  ;;  %v10131_v11 = vld [vmem:[#allocation47_spill] sm:$0xff]  ;;  %v10132_v21 = vld [vmem:[#allocation53_spill] sm:$0xff] }
 0x9aa   : > { %v4431_v53 = vpop.xlane.xlu0 %4430  ;;  %v4434_v12 = vpop.xlane.xlu1 %4433  ;;  %v10133_v57 = vld [vmem:[#allocation51_spill] sm:$0xff] }
 0x9ab   : > { %6466 = vpow2.f32 %v4489_v37  ;;  %v4461_v59 = vsub.f32 %v9281_v16, %v4431_v53  ;;  %v4462_v60 = vsub.f32 %v9312_v3, %v4434_v12 }
 0x9ac   : > { %v9467_v2 = vpop.eup %6458  ;;  %6468 = vpow2.f32 %v4491_v48 }
 0x9ad   : > { %v9471_v8 = vpop.eup %6460  ;;  %v4519_v46 = vsel %vm4404_vm13, %v9467_v2, 0.0  ;;  %v4485_v22 = vmul.f32 1.442695, %v4461_v59  ;;  %v4487_v19 = vmul.f32 1.442695, %v4462_v60 }
 0x9ae   : > { %4520 = vadd.xlane.f32.xlu0 %v4519_v46  ;;  %v4522_v27 = vsel %vm4404_vm13, %v9471_v8, 0.0  ;;  %v4443_v9 = vpop.xlane.xlu0 %4442  ;;  %v4452_v14 = vpop.xlane.xlu1 %4451 }
 0x9af   : > { %4523 = vadd.xlane.f32.xlu1 %v4522_v27  ;;  %6470 = vpow2.f32 %v4485_v22  ;;  %v4465_v6 = vsub.f32 %v9333_v32, %v4443_v9  ;;  %v4468_v56 = vsub.f32 %v9343_v31, %v4452_v14 }
 0x9b0   : > { %v9477_v24 = vpop.eup %6462  ;;  %6472 = vpow2.f32 %v4487_v19 }
 0x9b1   : > { %v9479_v16 = vpop.eup %6464  ;;  %v4513_v3 = vsel %vm4404_vm13, %v9477_v24, 0.0  ;;  %v4493_v7 = vmul.f32 1.442695, %v4465_v6  ;;  %v4499_v18 = vmul.f32 1.442695, %v4468_v56 }
 0x9b2   : > { %4514 = vadd.xlane.f32.xlu0 %v4513_v3  ;;  %v4516_v63 = vsel %vm4404_vm13, %v9479_v16, 0.0  ;;  %v4449_v44 = vpop.xlane.xlu0 %4448  ;;  %v4446_v29 = vpop.xlane.xlu1 %4445 }
 0x9b3   : > { %4517 = vadd.xlane.f32.xlu1 %v4516_v63  ;;  %v4467_v4 = vsub.f32 %v9352_v62, %v4449_v44  ;;  %v4466_v55 = vsub.f32 %v9358_v0, %v4446_v29 }
 0x9b5   : > { %v9487_v50 = vpop.eup %6466  ;;  %v4497_v10 = vmul.f32 1.442695, %v4467_v4  ;;  %v4495_v34 = vmul.f32 1.442695, %v4466_v55 }
 0x9b6   : > { %v9489_v43 = vpop.eup %6468  ;;  %v4531_v41 = vsel %vm4404_vm13, %v9487_v50, 0.0 }
 0x9b7   : > { %6474 = vpow2.f32 %v4497_v10  ;;  %4532 = vadd.xlane.f32.xlu0 %v4531_v41  ;;  %v4534_v32 = vsel %vm4404_vm13, %v9489_v43, 0.0 }
 0x9b8   : > { %4535 = vadd.xlane.f32.xlu1 %v4534_v32  ;;  %6476 = vpow2.f32 %v4493_v7 }
 0x9b9   : > { %v9495_v25 = vpop.eup %6470  ;;  %6478 = vpow2.f32 %v4499_v18 }
 0x9ba   : > { %v9497_v52 = vpop.eup %6472  ;;  %v4525_v62 = vsel %vm4404_vm13, %v9495_v25, 0.0  ;;  %6480 = vpow2.f32 %v4495_v34 }
 0x9bb   : > { %4526 = vadd.xlane.f32.xlu0 %v4525_v62  ;;  %v4528_v35 = vsel %vm4404_vm13, %v9497_v52, 0.0 }
 0x9bc   : > { %4529 = vadd.xlane.f32.xlu1 %v4528_v35 }
 0x9c1   : > { %v9503_v39 = vpop.eup %6474 }
 0x9c2   : > { %v4543_v38 = vsel %vm4404_vm13, %v9503_v39, 0.0  ;;  %v9507_v51 = vpop.eup %6476 }
 0x9c3   : > { %4544 = vadd.xlane.f32.xlu0 %v4543_v38  ;;  %v4537_v23 = vsel %vm4404_vm13, %v9507_v51, 0.0  ;;  %v9531_v31 = vpop.eup %6478 }
 0x9c4   : > { %v4546_v0 = vsel %vm4404_vm13, %v9531_v31, 0.0  ;;  %v9537_v15 = vpop.eup %6480 }
 0x9c5   : > { %v4540_v28 = vsel %vm4404_vm13, %v9537_v15, 0.0 }
 0x9c7   : > { %4538 = vadd.xlane.f32.xlu0 %v4537_v23 }
 0x9cd   : > { %4631 = vrot.lane.b32.xlu1 %v10118_v17, %s9887_s10 }
 0x9d1   : > { %4633 = vrot.lane.b32.xlu1 %v10119_v40, %s9887_s10 }
 0x9d5   : > { %4635 = vrot.lane.b32.xlu1 %v10120_v1, %s9887_s10 }
 0x9dd   : > { %4629 = vrot.lane.b32.xlu0 %v10121_v30, %s9887_s10 }
 0x9e1   : > { %4637 = vrot.lane.b32.xlu0 %v10122_v20, %s9887_s10 }
 0x9e5   : > { %4641 = vrot.lane.b32.xlu0 %v10123_v54, %s9887_s10 }
 0x9e9   : > { %4645 = vrot.lane.b32.xlu0 %v10124_v36, %s9887_s10 }
 0x9ed   : > { %4649 = vrot.lane.b32.xlu0 %v10125_v61, %s9887_s10 }
 0x9f1   : > { %4653 = vrot.lane.b32.xlu0 %v10126_v13, %s9887_s10 }
 0x9f5   : > { %4657 = vrot.lane.b32.xlu0 %v10127_v58, %s9887_s10 }
 0x9f9   : > { %4547 = vadd.xlane.f32.xlu1 %v4546_v0 }
 0x9fd   : > { %4541 = vadd.xlane.f32.xlu1 %v4540_v28 }
 0xa0e   : > { %4639 = vrot.lane.b32.xlu1 %v10128_v5, %s9887_s10 }
 0xa12   : > { %4643 = vrot.lane.b32.xlu1 %v10129_v26, %s9887_s10 }
 0xa16   : > { %4647 = vrot.lane.b32.xlu1 %v10130_v47, %s9887_s10 }
 0xa1a   : > { %4651 = vrot.lane.b32.xlu1 %v10131_v11, %s9887_s10 }
 0xa1e   : > { %4655 = vrot.lane.b32.xlu1 %v10132_v21, %s9887_s10 }
 0xa22   : > { %4659 = vrot.lane.b32.xlu1 %v10133_v57, %s9887_s10  ;;  %s10135_s10 = sld [smem:[#allocation116_spill]] }
 0xa28   : > { %s9617_s18 = scalar_lea.hbm %s10135_s10, %s9604_s0 }
 0xa2e   : > { %v4509_v37 = vpop.xlane.xlu0 %4508 }
 0xa2f   : > { %6482 = vrcp.f32 %v4509_v37 }
 0xa32   : > { %v4512_v48 = vpop.xlane.xlu1 %4511  ;;  %v4503_v53 = vpop.xlane.xlu0 %4502 }
 0xa33   : > { %6484 = vrcp.f32 %v4512_v48 }
 0xa34   : > { %6486 = vrcp.f32 %v4503_v53 }
 0xa36   : > { %v4506_v12 = vpop.xlane.xlu1 %4505 }
 0xa37   : > { %6488 = vrcp.f32 %v4506_v12 }
 0xa39   : > { %v6483_v59 = vpop.eup %6482 }
 0xa3a   : > { %v4567_v46 = vmul.f32 %v6483_v59, %v9447_v49 }
 0xa3b   : > { %v4521_v60 = vpop.xlane.xlu0 %4520 }
 0xa3c   : > { %6490 = vrcp.f32 %v4521_v60  ;;  %v4524_v22 = vpop.xlane.xlu1 %4523  ;;  %4714 = vrot.lane.b32.xlu0 %v4567_v46, %s9885_s13 }
 0xa3d   : > { %6492 = vrcp.f32 %v4524_v22  ;;  %v6485_v19 = vpop.eup %6484 }
 0xa3e   : > { %v6487_v27 = vpop.eup %6486  ;;  %v4568_v3 = vmul.f32 %v6485_v19, %v9455_v42 }
 0xa3f   : > { %v4515_v9 = vpop.xlane.xlu0 %4514  ;;  %v4565_v63 = vmul.f32 %v6487_v27, %v9451_v33 }
 0xa40   : > { %6494 = vrcp.f32 %v4515_v9  ;;  %v4518_v6 = vpop.xlane.xlu1 %4517  ;;  %4716 = vrot.lane.b32.xlu1 %v4568_v3, %s9885_s13 }
 0xa41   : > { %6496 = vrcp.f32 %v4518_v6  ;;  %v6489_v44 = vpop.eup %6488  ;;  %4710 = vrot.lane.b32.xlu0 %v4565_v63, %s9885_s13 }
 0xa42   : > { %v4566_v49 = vmul.f32 %v6489_v44, %v9461_v45 }
 0xa44   : > { %v4533_v4 = vpop.xlane.xlu0 %4532  ;;  %4712 = vrot.lane.b32.xlu1 %v4566_v49, %s9885_s13 }
 0xa45   : > { %6498 = vrcp.f32 %v4533_v4  ;;  %v4536_v10 = vpop.xlane.xlu1 %4535 }
 0xa46   : > { %v6491_v7 = vpop.eup %6490  ;;  %6500 = vrcp.f32 %v4536_v10 }
 0xa47   : > { %v6493_v41 = vpop.eup %6492  ;;  %v4571_v42 = vmul.f32 %v6491_v7, %v9467_v2 }
 0xa48   : > { %v4572_v33 = vmul.f32 %v6493_v41, %v9471_v8  ;;  %v4527_v32 = vpop.xlane.xlu0 %4526 }
 0xa49   : > { %4722 = vrot.lane.b32.xlu0 %v4571_v42, %s9885_s13  ;;  %6502 = vrcp.f32 %v4527_v32  ;;  %v4530_v35 = vpop.xlane.xlu1 %4529 }
 0xa4a   : > { %v6495_v62 = vpop.eup %6494  ;;  %4724 = vrot.lane.b32.xlu1 %v4572_v33, %s9885_s13  ;;  %6504 = vrcp.f32 %v4530_v35 }
 0xa4b   : > { %v6497_v45 = vpop.eup %6496  ;;  %v4569_v38 = vmul.f32 %v6495_v62, %v9477_v24 }
 0xa4c   : > { %v4570_v23 = vmul.f32 %v6497_v45, %v9479_v16 }
 0xa4d   : > { %4718 = vrot.lane.b32.xlu0 %v4569_v38, %s9885_s13  ;;  %v4632_v2 = vpop.permute.xlu1 %4631 }
 0xa4e   : > { %4720 = vrot.lane.b32.xlu1 %v4570_v23, %s9885_s13  ;;  %4679 = vst.msk [vmem:[%s7897_s21 + $0x8] sm:$0xff] %vm4677_vm3, %v4632_v2 }
 0xa4f   : > { %v6499_v8 = vpop.eup %6498 }
 0xa50   : > { %v6501_v17 = vpop.eup %6500  ;;  %v4545_v40 = vpop.xlane.xlu0 %4544  ;;  %v4575_v1 = vmul.f32 %v6499_v8, %v9487_v50 }
 0xa51   : > { %v4634_v30 = vpop.permute.xlu1 %4633  ;;  %v4576_v14 = vmul.f32 %v6501_v17, %v9489_v43 }
 0xa52   : > { %4730 = vrot.lane.b32.xlu0 %v4575_v1, %s9885_s13  ;;  %4680 = vst.msk [vmem:[%s7897_s21 + $0x10] sm:$0xff] %vm4677_vm3, %v4634_v30 }
 0xa53   : > { %v6503_v24 = vpop.eup %6502  ;;  %4732 = vrot.lane.b32.xlu1 %v4576_v14, %s9885_s13 }
 0xa54   : > { %v6505_v16 = vpop.eup %6504  ;;  %v4539_v20 = vpop.xlane.xlu0 %4538  ;;  %v4573_v56 = vmul.f32 %v6503_v24, %v9495_v25 }
 0xa55   : > { %6506 = vrcp.f32 %v4539_v20  ;;  %v4636_v29 = vpop.permute.xlu1 %4635  ;;  %v4574_v50 = vmul.f32 %v6505_v16, %v9497_v52 }
 0xa56   : > { %4726 = vrot.lane.b32.xlu0 %v4573_v56, %s9885_s13  ;;  %4681 = vst.msk [vmem:[%s7897_s21 + $0x18] sm:$0xff] %vm4677_vm3, %v4636_v29  ;;  %6508 = vrcp.f32 %v4545_v40 }
 0xa57   : > { %4728 = vrot.lane.b32.xlu1 %v4574_v50, %s9885_s13 }
 0xa58   : > { %v4630_v43 = vpop.permute.xlu0 %4629 }
 0xa59   : > { %4678 = vst.msk [vmem:[%s7897_s21] sm:$0xff] %vm4677_vm3, %v4630_v43 }
 0xa5c   : > { %v4638_v54 = vpop.permute.xlu0 %4637 }
 0xa5d   : > { %4682 = vst.msk [vmem:[%s7897_s21 + $0x20] sm:$0xff] %vm4677_vm3, %v4638_v54 }
 0xa5f   : > { %v6507_v25 = vpop.eup %6506 }
 0xa60   : > { %v4642_v18 = vpop.permute.xlu0 %4641  ;;  %v4577_v52 = vmul.f32 %v6507_v25, %v9507_v51  ;;  %v6509_v55 = vpop.eup %6508 }
 0xa61   : > { %4684 = vst.msk [vmem:[%s7897_s21 + $0x30] sm:$0xff] %vm4677_vm3, %v4642_v18  ;;  %v4579_v34 = vmul.f32 %v6509_v55, %v9503_v39 }
 0xa62   : > { %4734 = vrot.lane.b32.xlu0 %v4577_v52, %s9885_s13 }
 0xa64   : > { %v4646_v36 = vpop.permute.xlu0 %4645 }
 0xa65   : > { %4686 = vst.msk [vmem:[%s7897_s21 + $0x40] sm:$0xff] %vm4677_vm3, %v4646_v36 }
 0xa66   : > { %4738 = vrot.lane.b32.xlu0 %v4579_v34, %s9885_s13  ;;  %s6858_s13 = sshll.u32 %s7064_s8, 4  ;;  %s6859_s13 = int_to_ptr.vmem [resolvable:$false] %s6858_s13 }
 0xa67   : > { %s6860_s14 = scalar_lea.vmem %s6859_s13, 8192  ;;  %p6861_p4 = scmp.lt.s32.totalorder %s9619_s19, %s6859_s13 }
 0xa68   : > { %v4650_v61 = vpop.permute.xlu0 %4649  ;;  %p6862_p13 = scmp.lt.s32.totalorder %s6860_s14, %s6854_s15 }
 0xa69   : > { %4688 = vst.msk [vmem:[%s7897_s21 + $0x50] sm:$0xff] %vm4677_vm3, %v4650_v61 }
 0xa6a   : > { %p6863_p1 = por %p6862_p13, %p6861_p4 }
 0xa6c   : > { %v4654_v13 = vpop.permute.xlu0 %4653  ;;  %p6864_p3 = pnand %p6863_p1, %p6857_p0 }
 0xa6d   : > { %4690 = vst.msk [vmem:[%s7897_s21 + $0x60] sm:$0xff] %vm4677_vm3, %v4654_v13 }
 0xa70   : > { %v4658_v51 = vpop.permute.xlu0 %4657 }
 0xa71   : > { %4692 = vst.msk [vmem:[%s7897_s21 + $0x70] sm:$0xff] %vm4677_vm3, %v4658_v51 }
 0xa86   : > { %v4548_v58 = vpop.xlane.xlu1 %4547 }
 0xa8a   : > { %v4542_v0 = vpop.xlane.xlu1 %4541 }
 0xa8b   : > { %6510 = vrcp.f32 %v4542_v0 }
 0xa8c   : > { %6512 = vrcp.f32 %v4548_v58 }
 0xa8e   : > { %v4640_v39 = vpop.permute.xlu1 %4639 }
 0xa8f   : > { %4683 = vst.msk [vmem:[%s7897_s21 + $0x28] sm:$0xff] %vm4677_vm3, %v4640_v39 }
 0xa92   : > { %v4644_v28 = vpop.permute.xlu1 %4643 }
 0xa93   : > { %4685 = vst.msk [vmem:[%s7897_s21 + $0x38] sm:$0xff] %vm4677_vm3, %v4644_v28 }
 0xa94   : > { %6867 = shalt.err (!%p6864_p3)
}
 0xa95   : > { %s6868_s5 = scalar_lea.hbm %s9610_s23, 4096  ;;  %s6872_s8 = scalar_lea.hbm %s10134_s16, 8192 }
 0xa96   : > { %p6869_p6 = scmp.ne.s32.totalorder %s9610_s23, %s6868_s5  ;;  %p6873_p11 = scmp.lt.u32.totalorder %s9610_s23, %s10134_s16 }
 0xa97   : > { %p6874_p5 = scmp.lt.u32.totalorder %s6872_s8, %s6868_s5  ;;  %p6876_p9 = scmp.lt.u32.totalorder %s6868_s5, %s9610_s23 }
 0xa98   : > { %p6870_p2 = pnand %p6869_p6, %p10137_p8 }
 0xa99   : > { %p6875_p7 = por %p6874_p5, %p6873_p11 }
 0xa9a   : > { %p6871_p10 = pneg %p6870_p2 }
 0xa9b   : > { %p6877_p12 = por %p6876_p9, %p6875_p7 }
 0xa9d   : > { %p6878_p0 = pnand %p6877_p12, %p6871_p10 }
 0xa9f   : > { %6881 = shalt.err (!%p6878_p0)
}
 0xaa0   : > { %s7065_s15 = smov 256   ;;  %s10138_s14 = smov 16   ;;  %v6511_v5 = vpop.eup %6510  ;;  %v4648_v26 = vpop.permute.xlu1 %4647 }
 0xaa1   : > { %5817 = dma.vmem_to_hbm [thread:$0]  (%p10137_p8), %s9619_s19, 4096, %s9610_s23, %s9625_s9, %s7065_s15, %s7065_s15, %s10138_s14   ;;  %v4578_v47 = vmul.f32 %v6511_v5, %v9537_v15 }
 0xaa2   : > { %s10139_s5 = sld [smem:[#allocation114_spill]]  ;;  %s4805_s8 = sshll.u32 %s8239_s17, 4  ;;  %s9659_s8 = int_to_ptr.vmem [resolvable:$true] %s4805_s8 }
 0xaa3   : > { %s4776_s16 = scalar_lea.sflag [#allocation4], %s7608_s22  ;;  %s6882_s24 = scalar_lea.vmem %s9659_s8, 4096 }
 0xaa4   : > { %p6883_p4 = scmp.ne.s32.totalorder %s9659_s8, %s6882_s24  ;;  %s7066_s23 = smov [#allocation22]  }
 0xaa6   : > { %p6884_p13 = pnand %p6883_p4, %p10137_p8 }
 0xaa8   : > { %s9656_s1 = scalar_lea.hbm %s10139_s5, %s9604_s0  ;;  %p6885_p1 = pneg %p6884_p13 }
 0xaa9   : > { %s6886_s0 = sshll.u32 %s7066_s23, 4  ;;  %s6887_s0 = int_to_ptr.vmem [resolvable:$false] %s6886_s0 }
 0xaaa   : > { %s6888_s17 = scalar_lea.vmem %s6887_s0, 8192  ;;  %p6889_p3 = scmp.lt.s32.totalorder %s9659_s8, %s6887_s0 }
 0xaab   : > { %p6890_p6 = scmp.lt.s32.totalorder %s6888_s17, %s6882_s24 }
 0xaad   : > { %p6891_p2 = por %p6890_p6, %p6889_p3 }
 0xaaf   : > { %p6892_p10 = pnand %p6891_p2, %p6885_p1 }
 0xab1   : > { %6895 = shalt.err (!%p6892_p10)
}
 0xab2   : > { %s6896_s19 = scalar_lea.hbm %s9656_s1, 4096  ;;  %s6900_s23 = scalar_lea.hbm %s10139_s5, 8192 }
 0xab3   : > { %p6897_p11 = scmp.ne.s32.totalorder %s9656_s1, %s6896_s19  ;;  %p6901_p9 = scmp.lt.u32.totalorder %s9656_s1, %s10139_s5 }
 0xab4   : > { %p6902_p12 = scmp.lt.u32.totalorder %s6900_s23, %s6896_s19  ;;  %p6904_p4 = scmp.lt.u32.totalorder %s6896_s19, %s9656_s1 }
 0xab5   : > { %p6898_p5 = pnand %p6897_p11, %p10137_p8 }
 0xab6   : > { %p6903_p0 = por %p6902_p12, %p6901_p9 }
 0xab7   : > { %p6899_p7 = pneg %p6898_p5 }
 0xab8   : > { %p6905_p13 = por %p6904_p4, %p6903_p0 }
 0xaba   : > { %p6906_p1 = pnand %p6905_p13, %p6899_p7 }
 0xabc   : > { %6909 = shalt.err (!%p6906_p1)
}
 0xabd   : > { %5816 = dma.vmem_to_hbm [thread:$0]  (%p10137_p8), %s9659_s8, 4096, %s9656_s1, %s4776_s16, %s7065_s15, %s7065_s15, %s10138_s14   ;;  %v6513_v15 = vpop.eup %6512 }
 0xabe   : > { %4687 = vst.msk [vmem:[%s7897_s21 + $0x48] sm:$0xff] %vm4677_vm3, %v4648_v26  ;;  %s10140_s24 = sshll.u32 %s9317_s3, 4  ;;  %s10141_s13 = smov 32   ;;  %s9694_s24 = int_to_ptr.vmem [resolvable:$true] %s10140_s24 }
 0xabf   : > { %4736 = vrot.lane.b32.xlu1 %v4578_v47, %s10141_s13  ;;  %s6910_s17 = scalar_lea.vmem %s9694_s24, 4096  ;;  %s7067_s19 = smov [#allocation25]  }
 0xac0   : > { %p6911_p3 = scmp.ne.s32.totalorder %s9694_s24, %s6910_s17  ;;  %s6914_s12 = sshll.u32 %s7067_s19, 4  ;;  %s6915_s12 = int_to_ptr.vmem [resolvable:$false] %s6914_s12 }
 0xac1   : > { %s6916_s16 = scalar_lea.vmem %s6915_s12, 8192  ;;  %p6917_p10 = scmp.lt.s32.totalorder %s9694_s24, %s6915_s12 }
 0xac2   : > { %p6912_p6 = pnand %p6911_p3, %p10137_p8  ;;  %p6918_p11 = scmp.lt.s32.totalorder %s6916_s16, %s6910_s17 }
 0xac4   : > { %p6913_p2 = pneg %p6912_p6  ;;  %p6919_p5 = por %p6918_p11, %p6917_p10 }
 0xac6   : > { %p6920_p7 = pnand %p6919_p5, %p6913_p2 }
 0xac8   : > { %6923 = shalt.err (!%p6920_p7)
}
 0xac9   : > { %s6924_s3 = scalar_lea.hbm %s9617_s18, 4096  ;;  %s6928_s20 = scalar_lea.hbm %s10135_s10, 8192 }
 0xaca   : > { %p6925_p9 = scmp.ne.s32.totalorder %s9617_s18, %s6924_s3  ;;  %p6929_p4 = scmp.lt.u32.totalorder %s9617_s18, %s10135_s10 }
 0xacb   : > { %p6930_p13 = scmp.lt.u32.totalorder %s6928_s20, %s6924_s3  ;;  %p6932_p3 = scmp.lt.u32.totalorder %s6924_s3, %s9617_s18 }
 0xacc   : > { %p6926_p12 = pnand %p6925_p9, %p10137_p8 }
 0xacd   : > { %p6931_p1 = por %p6930_p13, %p6929_p4 }
 0xace   : > { %p6927_p0 = pneg %p6926_p12 }
 0xacf   : > { %p6933_p6 = por %p6932_p3, %p6931_p1 }
 0xad1   : > { %p6934_p2 = pnand %p6933_p6, %p6927_p0 }
 0xad3   : > { %6937 = shalt.err (!%p6934_p2)
}
 0xad4   : > { %5818 = dma.vmem_to_hbm [thread:$0]  (%p10137_p8), %s9694_s24, 4096, %s9617_s18, %s9625_s9, %s7065_s15, %s7065_s15, %s10138_s14   ;;  %v4652_v11 = vpop.permute.xlu1 %4651  ;;  %v4580_v21 = vmul.f32 %v6513_v15, %v9531_v31  ;;  %vm4758_vm4 = vcmask 326912   ;;  %v4715_v48 = vpop.permute.xlu0 %4714 }
 0xad5   : > { %4689 = vst.msk [vmem:[%s7897_s21 + $0x58] sm:$0xff] %vm4677_vm3, %v4652_v11  ;;  %s5389_s18 = sshll.u32 %s7222_s26, 11  ;;  %s4855_s9 = sshll.u32 %s7897_s21, 4  ;;  %s9767_s9 = int_to_ptr.vmem [resolvable:$true] %s4855_s9 }
 0xad6   : > { %4740 = vrot.lane.b32.xlu1 %v4580_v21, %s10141_s13  ;;  %4761 = vst.msk [vmem:[%s7897_s21 + $0x10] sm:$0xff] %vm4758_vm4, %v4715_v48  ;;  %s10142_s24 = sld [smem:[#allocation117_spill]]  ;;  %s4791_s17 = scalar_lea.sflag [#allocation27], %s7608_s22 }
 0xad7   : > { %s6938_s19 = scalar_lea.vmem %s9767_s9, 2048  ;;  %s7068_s26 = smov [#allocation26]  }
 0xad8   : > { %v4656_v57 = vpop.permute.xlu1 %4655  ;;  %v4711_v53 = vpop.permute.xlu0 %4710  ;;  %p6939_p10 = scmp.ne.s32.totalorder %s9767_s9, %s6938_s19  ;;  %s6942_s12 = sshll.u32 %s7068_s26, 4  ;;  %s6943_s12 = int_to_ptr.vmem [resolvable:$false] %s6942_s12 }
 0xad9   : > { %4691 = vst.msk [vmem:[%s7897_s21 + $0x68] sm:$0xff] %vm4677_vm3, %v4656_v57  ;;  %s6944_s16 = scalar_lea.vmem %s6943_s12, 4096  ;;  %p6945_p7 = scmp.lt.s32.totalorder %s9767_s9, %s6943_s12 }
 0xada   : > { %4759 = vst.msk [vmem:[%s7897_s21] sm:$0xff] %vm4758_vm4, %v4711_v53  ;;  %p6940_p11 = pnand %p6939_p10, %p10137_p8  ;;  %p6946_p9 = scmp.lt.s32.totalorder %s6944_s16, %s6938_s19 }
 0xadc   : > { %v4660_v37 = vpop.permute.xlu1 %4659  ;;  %v4723_v59 = vpop.permute.xlu0 %4722  ;;  %s9765_s13 = scalar_lea.hbm %s10142_s24, %s5389_s18  ;;  %p6941_p5 = pneg %p6940_p11 }
 0xadd   : > { %4693 = vst.msk [vmem:[%s7897_s21 + $0x78] sm:$0xff] %vm4677_vm3, %v4660_v37  ;;  %p6947_p12 = por %p6946_p9, %p6945_p7 }
 0xade   : > { %4765 = vst.msk [vmem:[%s7897_s21 + $0x30] sm:$0xff] %vm4758_vm4, %v4723_v59 }
 0xadf   : > { %p6948_p0 = pnand %p6947_p12, %p6941_p5 }
 0xae0   : > { %v4717_v31 = vpop.permute.xlu1 %4716  ;;  %v4719_v46 = vpop.permute.xlu0 %4718 }
 0xae1   : > { %4762 = vst.msk [vmem:[%s7897_s21 + $0x18] sm:$0xff] %vm4758_vm4, %v4717_v31  ;;  %4763 = vst.msk [vmem:[%s7897_s21 + $0x20] sm:$0xff] %vm4758_vm4, %v4719_v46 }
 0xae4   : > { %v4713_v12 = vpop.permute.xlu1 %4712  ;;  %v4731_v19 = vpop.permute.xlu0 %4730 }
 0xae5   : > { %4760 = vst.msk [vmem:[%s7897_s21 + $0x8] sm:$0xff] %vm4758_vm4, %v4713_v12  ;;  %4769 = vst.msk [vmem:[%s7897_s21 + $0x50] sm:$0xff] %vm4758_vm4, %v4731_v19 }
 0xae8   : > { %v4725_v60 = vpop.permute.xlu1 %4724  ;;  %v4727_v9 = vpop.permute.xlu0 %4726 }
 0xae9   : > { %4766 = vst.msk [vmem:[%s7897_s21 + $0x38] sm:$0xff] %vm4758_vm4, %v4725_v60  ;;  %4767 = vst.msk [vmem:[%s7897_s21 + $0x40] sm:$0xff] %vm4758_vm4, %v4727_v9 }
 0xaec   : > { %v4721_v22 = vpop.permute.xlu1 %4720  ;;  %v4735_v6 = vpop.permute.xlu0 %4734 }
 0xaed   : > { %4764 = vst.msk [vmem:[%s7897_s21 + $0x28] sm:$0xff] %vm4758_vm4, %v4721_v22  ;;  %4771 = vst.msk [vmem:[%s7897_s21 + $0x60] sm:$0xff] %vm4758_vm4, %v4735_v6 }
 0xaf0   : > { %v4733_v27 = vpop.permute.xlu1 %4732  ;;  %v4739_v63 = vpop.permute.xlu0 %4738 }
 0xaf1   : > { %4770 = vst.msk [vmem:[%s7897_s21 + $0x58] sm:$0xff] %vm4758_vm4, %v4733_v27  ;;  %4773 = vst.msk [vmem:[%s7897_s21 + $0x70] sm:$0xff] %vm4758_vm4, %v4739_v63 }
 0xaf4   : > { %v4729_v3 = vpop.permute.xlu1 %4728 }
 0xaf5   : > { %4768 = vst.msk [vmem:[%s7897_s21 + $0x48] sm:$0xff] %vm4758_vm4, %v4729_v3 }
 0xb31   : > { %v4737_v44 = vpop.permute.xlu1 %4736 }
 0xb32   : > { %4772 = vst.msk [vmem:[%s7897_s21 + $0x68] sm:$0xff] %vm4758_vm4, %v4737_v44 }
 0xb48   : > { %v4741_v49 = vpop.permute.xlu1 %4740 }
 0xb49   : > { %4774 = vst.msk [vmem:[%s7897_s21 + $0x78] sm:$0xff] %vm4758_vm4, %v4741_v49 }
 0xb4a   : > { %6951 = shalt.err (!%p6948_p0)
}
 0xb4b   : > { %s6952_s21 = scalar_lea.hbm %s9765_s13, 2048  ;;  %s6956_s8 = scalar_lea.hbm %s10142_s24, 4096 }
 0xb4c   : > { %p6953_p4 = scmp.ne.s32.totalorder %s9765_s13, %s6952_s21  ;;  %p6957_p3 = scmp.lt.u32.totalorder %s9765_s13, %s10142_s24 }
 0xb4d   : > { %p6958_p6 = scmp.lt.u32.totalorder %s6956_s8, %s6952_s21  ;;  %p6960_p10 = scmp.lt.u32.totalorder %s6952_s21, %s9765_s13 }
 0xb4e   : > { %p6954_p13 = pnand %p6953_p4, %p10137_p8 }
 0xb4f   : > { %p6959_p2 = por %p6958_p6, %p6957_p3 }
 0xb50   : > { %p6955_p1 = pneg %p6954_p13 }
 0xb51   : > { %p6961_p11 = por %p6960_p10, %p6959_p2 }
 0xb53   : > { %p6962_p5 = pnand %p6961_p11, %p6955_p1 }
 0xb55   : > { %6965 = shalt.err (!%p6962_p5)
}
 0xb56   : > { %s7069_s0 = smov 128   ;;  %s7070_s18 = smov 8  }
 0xb57   : > { %5819 = dma.vmem_to_hbm [thread:$0]  (%p10137_p8), %s9767_s9, 2048, %s9765_s13, %s4791_s17, %s7069_s0, %s7069_s0, %s7070_s18  }
 0xb58 PF: > { %s4870_s15 = sand.u32 1, %s7028_s29   ;;  %p10143_p7 = scmp.ne.s32.totalorder %s9939_s11, 0 }
 0xb59   : > { %p10144_p9 = scmp.ge.s32.totalorder %s7040_s30, 2  ;;  %s4871_s14 = scalar_lea.sflag [#allocation4], %s4870_s15 }
 0xb5b   : > { %p5863_p12 = pnand %p10144_p9, %p10143_p7 }
 0xb5d   : > { %7015 = dma.done.wait (!%p5863_p12), %s4871_s14, 4096  }
 0xb5e   : > { %7017 = vsyncadd (!%p5863_p12), %s4871_s14, 4294963200  ;;  %s10145_s19 = sadd.s32 4294967294, %s7040_s30  }
 0xb5f   : > { %s4879_s26 = sand.u32 1, %s10145_s19  }
 0xb60   : > { %s4880_s12 = scalar_lea.sflag [#allocation24], %s4879_s26 }
 0xb61   : > { %7019 = dma.done.wait (!%p5863_p12), %s4880_s12, 8192  }
 0xb62   : > { %7021 = vsyncadd (!%p5863_p12), %s4880_s12, 4294959104  ;;  %s4898_s7 = scalar_lea.sflag [#allocation27], %s4870_s15 }
 0xb63   : > { %7023 = dma.done.wait (!%p5863_p12), %s4898_s7, 2048  }
 0xb64   : > { %7025 = vsyncadd (!%p5863_p12), %s4898_s7, 4294965248  ;;  %p53_p8 = scmp.ge.s32.totalorder %s7479_s4, 4   ;;  %s10146_s29 = smov %s7032_s2 }
 0xb65   : > { %s10147_s2 = smov %s7036_s6  ;;  %s10148_s6 = smov %s7490_s28 }
 0xb66   : > { %s10149_s30 = smov %s7479_s4  ;;  %55 = sbr.rel (!%p53_p8) target bundleno = 43 (0x2b), region = 255 }
 0xb6d   :  { %4903 = vsyncpa [#allocation3], 1 }
 0xb6e   :  { %4905 = vsyncpa [#allocation3 + $0x1], 1 }
 0xb6f   :  { %4906 = vsyncpa [#allocation6], 1 }
 0xb70   :  { %4908 = vsyncpa [#allocation6 + $0x1], 1 }
 0xb71   :  { %4909 = vsyncpa [#allocation9], 1 }
 0xb72   :  { %4910 = vsyncpa [#allocation12], 1 }
 0xb73   :  { %4911 = vsyncpa [#allocation15], 1 }
 0xb74   :  { %4912 = vsyncpa [#allocation18], 1 }
 0xb75   :  { %4913 = vsyncpa [#allocation21], 1 }
 0xb76   :  { %4914 = vsyncpa [#allocation4], 1 }
 0xb77   :  { %4916 = vsyncpa [#allocation4 + $0x1], 1 }
 0xb78   :  { %4917 = vsyncpa [#allocation24], 1 }
 0xb79   :  { %4919 = vsyncpa [#allocation24 + $0x1], 1 }
 0xb7a   :  { %4920 = vsyncpa [#allocation27], 1 }
 0xb7b   :  { %4922 = vsyncpa [#allocation27 + $0x1], 1 }

</bundles_post_ra>
